<compile_context>
chip_gen: v7x
topology: tpu7x:2x2x1
jax: 0.10.0
libtpu: 0.0.40
codegen_flags: <defaults>
</compile_context>

<pallas_src>
import functools

import jax
import jax.numpy as jnp
from jax import lax
from jax.experimental import pallas as pl
from jax.experimental.pallas import tpu as pltpu

EPS = 1e-5
LANE = 128


def _ceil_to(n, m):
    return ((n + m - 1) // m) * m


# ---------------------------------------------------------------------------
# Fused bottleneck kernel: one grid step == one image.
# TODO(synk): for large spatial sizes (e.g. 224x224 stem) add a second grid
#             axis over H-row tiles with a 1-row halo so the padded-out1
#             scratch stays small; per-image tiling is sufficient for the
#             standard ResNet bottleneck feature-map sizes.
# ---------------------------------------------------------------------------
def _bottleneck_kernel(x_ref, w1_ref, b1_ref, w2_ref, b2_ref,
                       w3_ref, b3_ref, wsc_ref, bsc_ref,
                       o_ref, buf_ref,
                       *, H, W, Hout, Wout, stride):
    Cp = x_ref.shape[-1]      # padded in_planes
    Pp = w1_ref.shape[-1]     # padded planes
    Cop = w3_ref.shape[-1]    # padded planes * expansion

    x2d = x_ref[...].reshape(H * W, Cp)                       # (H*W, Cp)

    # --- convBN1: 1x1 + folded BN + ReLU (single K=Cp MXU matmul) -----------
    out1 = jnp.dot(x2d, w1_ref[...], preferred_element_type=jnp.float32)
    out1 = jnp.maximum(out1 + b1_ref[...], 0.0)                # (H*W, Pp)

    # --- stage out1 into a zero-padded VMEM scratch (halo = 1 for the 3x3) --
    buf_ref[...] = jnp.zeros_like(buf_ref)
    buf_ref[1:H + 1, 1:W + 1, :] = out1.reshape(H, W, Pp)

    # --- convBN2: 3x3 / stride + folded BN + ReLU ---------------------------
    # 9 shifted-window matmuls read straight from VMEM (no im2col in HBM).
    acc = jnp.zeros((Hout * Wout, Pp), jnp.float32)
    for t in range(9):
        dy, dx = divmod(t, 3)
        if stride == 1:
            win = buf_ref[dy:dy + Hout, dx:dx + Wout, :]
        else:
            # TODO(synk): stride>1 uses strided ref reads (pl.ds with stride);
            # only stride==1 is exercised by the test below.
            win = buf_ref[pl.ds(dy, Hout, stride), pl.ds(dx, Wout, stride), :]
        acc = acc + jnp.dot(win.reshape(Hout * Wout, Pp), w2_ref[t],
                            preferred_element_type=jnp.float32)
    out2 = jnp.maximum(acc + b2_ref[...], 0.0)                 # (Hout*Wout, Pp)

    # --- convBN3: 1x1 + folded BN (no ReLU) ---------------------------------
    main = jnp.dot(out2, w3_ref[...], preferred_element_type=jnp.float32)
    main = main + b3_ref[...]

    # --- projection shortcut: 1x1 / stride + folded BN ----------------------
    if stride == 1:
        xs = x2d
    else:
        xs = x_ref[pl.ds(0, Hout, stride), pl.ds(0, Wout, stride), :]
        xs = xs.reshape(Hout * Wout, Cp)
    sc = jnp.dot(xs, wsc_ref[...], preferred_element_type=jnp.float32)
    sc = sc + bsc_ref[...]

    # --- EltwiseAdd(relu=True); lane-dense store (Cop % 128 == 0) -----------
    o_ref[...] = jnp.maximum(main + sc, 0.0).reshape(Hout, Wout, Cop)


# ---------------------------------------------------------------------------
# Wrapper
# ---------------------------------------------------------------------------
def bottleneck_forward(x_nchw, p, *, planes, stride):
    expansion = 4
    cout = planes * expansion
    Cp, Pp, Cop = p["Cp"], p["Pp"], p["Cop"]

    x = jnp.transpose(x_nchw, (0, 2, 3, 1)).astype(jnp.float32)   # NCHW -> NHWC
    N, H, W, Cin = x.shape
    if Cin < Cp:                                   # lane-pad input channels
        x = jnp.pad(x, ((0, 0), (0, 0), (0, 0), (0, Cp - Cin)))
    Hout = (H - 1) // stride + 1
    Wout = (W - 1) // stride + 1

    kernel = functools.partial(_bottleneck_kernel, H=H, W=W,
                               Hout=Hout, Wout=Wout, stride=stride)

    def _rep(shape):                               # grid-invariant whole array
        nd = len(shape)
        return pl.BlockSpec(shape, lambda b, _nd=nd: (0,) * _nd)

    m1, m2 = N * H * W, N * Hout * Wout
    flops = (2 * m1 * Cp * Pp + 9 * 2 * m2 * Pp * Pp
             + 2 * m2 * Pp * Cop + 2 * m2 * Cp * Cop)
    bytes_accessed = 4 * (x.size + Cp * Pp + 9 * Pp * Pp + Pp * Cop + Cp * Cop
                          + 2 * Pp + 2 * Cop + N * Hout * Wout * Cop)

    out = pl.pallas_call(
        kernel,
        out_shape=jax.ShapeDtypeStruct((N, Hout, Wout, Cop), jnp.float32),
        grid_spec=pltpu.PrefetchScalarGridSpec(
            num_scalar_prefetch=0,
            grid=(N,),
            in_specs=[
                pl.BlockSpec((None, H, W, Cp), lambda b: (b, 0, 0, 0)),
                _rep((Cp, Pp)), _rep((1, Pp)),
                _rep((9, Pp, Pp)), _rep((1, Pp)),
                _rep((Pp, Cop)), _rep((1, Cop)),
                _rep((Cp, Cop)), _rep((1, Cop)),
            ],
            out_specs=pl.BlockSpec((None, Hout, Wout, Cop),
                                   lambda b: (b, 0, 0, 0)),
            scratch_shapes=[pltpu.VMEM((H + 2, W + 2, Pp), jnp.float32)],
        ),
        compiler_params=pltpu.CompilerParams(
            dimension_semantics=("parallel",),     # shard images across TCs (v7x)
            vmem_limit_bytes=32 * 1024 * 1024),
        cost_estimate=pl.CostEstimate(flops=flops, transcendentals=0,
                                      bytes_accessed=bytes_accessed),
    )(x, p["w1"], p["b1"], p["w2"], p["b2"],
      p["w3"], p["b3"], p["wsc"], p["bsc"])

    out = out[..., :cout]                          # drop lane padding
    return jnp.transpose(out, (0, 3, 1, 2))        # NHWC -> NCHW


# ---------------------------------------------------------------------------
# Parameter packing: fold BN into scale/bias, fold scale into the weights,
# repack to (Cin, Cout) matmul layout, zero-pad channels to multiples of 128.
# ---------------------------------------------------------------------------
def pack_params(raw, in_planes, planes):
    cout = planes * 4
    Cp = _ceil_to(in_planes, LANE)
    Pp = _ceil_to(planes, LANE)
    Cop = _ceil_to(cout, LANE)

    def fold(bn):
        g, b, m, v = bn
        s = g / jnp.sqrt(v + EPS)
        return s.astype(jnp.float32), (b - m * s).astype(jnp.float32)

    def pad_mat(w, rows, cols):
        return jnp.zeros((rows, cols), jnp.float32).at[:w.shape[0], :w.shape[1]].set(w)

    def pad_vec(v, cols):
        return jnp.zeros((1, cols), jnp.float32).at[0, :v.shape[0]].set(v)

    s1, b1 = fold(raw["bn1"])
    s2, b2 = fold(raw["bn2"])
    s3, b3 = fold(raw["bn3"])
    ssc, bsc = fold(raw["bnsc"])

    w1 = pad_mat(raw["w1"][:, :, 0, 0].T * s1[None, :], Cp, Pp)
    w2 = jnp.stack([pad_mat(raw["w2"][:, :, dy, dx].T * s2[None, :], Pp, Pp)
                    for dy in range(3) for dx in range(3)], axis=0)
    w3 = pad_mat(raw["w3"][:, :, 0, 0].T * s3[None, :], Pp, Cop)
    wsc = pad_mat(raw["wsc"][:, :, 0, 0].T * ssc[None, :], Cp, Cop)

    return {"w1": w1, "b1": pad_vec(b1, Pp),
            "w2": w2, "b2": pad_vec(b2, Pp),
            "w3": w3, "b3": pad_vec(b3, Cop),
            "wsc": wsc, "bsc": pad_vec(bsc, Cop),
            "Cp": Cp, "Pp": Pp, "Cop": Cop}


# ---------------------------------------------------------------------------
# Pure-JAX reference (for correctness check)
# ---------------------------------------------------------------------------
def ref_forward(x_nchw, raw, *, stride):
    x = jnp.transpose(x_nchw, (0, 2, 3, 1))

    def convbn(x, w_oihw, bn, stride, pad, relu):
        w = jnp.transpose(w_oihw, (2, 3, 1, 0))  # OIHW -> HWIO
        y = lax.conv_general_dilated(x, w, (stride, stride),
                                     [(pad, pad), (pad, pad)],
                                     dimension_numbers=("NHWC", "HWIO", "NHWC"))
        g, b, m, v = bn
        y = (y - m) * g / jnp.sqrt(v + EPS) + b
        return jnp.maximum(y, 0.0) if relu else y

    o = convbn(x, raw["w1"], raw["bn1"], 1, 0, True)
    o = convbn(o, raw["w2"], raw["bn2"], stride, 1, True)
    o = convbn(o, raw["w3"], raw["bn3"], 1, 0, False)
    sc = convbn(x, raw["wsc"], raw["bnsc"], stride, 0, False)
    out = jnp.maximum(o + sc, 0.0)
    return jnp.transpose(out, (0, 3, 1, 2))


# ---------------------------------------------------------------------------
if __name__ == "__main__":
    key = jax.random.PRNGKey(0)
    N, Cin, H, W = 2, 4, 16, 16
    planes, stride, expansion = 4, 1, 4
    cout = planes * expansion

    ks = jax.random.split(key, 20)
    f32 = jnp.float32

    # deterministic "checkpoint" in PyTorch layouts (OIHW conv weights, BN vectors)
    raw = {
        "w1": 0.1 * jax.random.normal(ks[0], (planes, Cin, 1, 1), f32),
        "bn1": (1.0 + 0.1 * jax.random.normal(ks[1], (planes,), f32),
                0.1 * jax.random.normal(ks[2], (planes,), f32),
                0.1 * jax.random.normal(ks[3], (planes,), f32),
                0.5 + jax.random.uniform(ks[4], (planes,), f32)),
        "w2": 0.1 * jax.random.normal(ks[5], (planes, planes, 3, 3), f32),
        "bn2": (1.0 + 0.1 * jax.random.normal(ks[6], (planes,), f32),
                0.1 * jax.random.normal(ks[7], (planes,), f32),
                0.1 * jax.random.normal(ks[8], (planes,), f32),
                0.5 + jax.random.uniform(ks[9], (planes,), f32)),
        "w3": 0.1 * jax.random.normal(ks[10], (cout, planes, 1, 1), f32),
        "bn3": (1.0 + 0.1 * jax.random.normal(ks[11], (cout,), f32),
                0.1 * jax.random.normal(ks[12], (cout,), f32),
                0.1 * jax.random.normal(ks[13], (cout,), f32),
                0.5 + jax.random.uniform(ks[14], (cout,), f32)),
        "wsc": 0.1 * jax.random.normal(ks[15], (cout, Cin, 1, 1), f32),
        "bnsc": (1.0 + 0.1 * jax.random.normal(ks[16], (cout,), f32),
                 0.1 * jax.random.normal(ks[17], (cout,), f32),
                 0.1 * jax.random.normal(ks[18], (cout,), f32),
                 0.5 + jax.random.uniform(ks[19], (cout,), f32)),
    }

    params = pack_params(raw, Cin, planes)
    x = jax.random.normal(jax.random.PRNGKey(1), (N, Cin, H, W), f32)

    out = bottleneck_forward(x, params, planes=planes, stride=stride)
    out = jax.block_until_ready(out)

    ref = jax.block_until_ready(ref_forward(x, raw, stride=stride))
    assert out.shape == (N, cout, H // stride, W // stride)
    assert jnp.allclose(out, ref, rtol=1e-4, atol=1e-4), "mismatch vs reference"

    print("KERNEL_OK")
</pallas_src>

<mosaic_0001>
module attributes {stable_mosaic.version = 11 : i64} {
  func.func @_bottleneck_kernel(%arg0: i32, %arg1: memref<1x16x16x128xf32, #tpu.memory_space<vmem>>, %arg2: memref<128x128xf32, #tpu.memory_space<vmem>>, %arg3: memref<1x128xf32, #tpu.memory_space<vmem>>, %arg4: memref<9x128x128xf32, #tpu.memory_space<vmem>>, %arg5: memref<1x128xf32, #tpu.memory_space<vmem>>, %arg6: memref<128x128xf32, #tpu.memory_space<vmem>>, %arg7: memref<1x128xf32, #tpu.memory_space<vmem>>, %arg8: memref<128x128xf32, #tpu.memory_space<vmem>>, %arg9: memref<1x128xf32, #tpu.memory_space<vmem>>, %arg10: memref<1x16x16x128xf32, #tpu.memory_space<vmem>>, %arg11: memref<18x18x128xf32, #tpu.memory_space<vmem>>) attributes {dimension_semantics = [#tpu.dimension_semantics<parallel>], iteration_bounds = array<i64: 2>, scalar_prefetch = 0 : i64, scratch_operands = 1 : i64, tpu.core_type = #tpu.core_type<tc>, window_params = [{transform_indices = @transform_0, window_bounds = array<i64: 1, 16, 16, 128>}, {pipeline_mode = #tpu.pipeline_mode<synchronous>, transform_indices = @transform_1, window_bounds = array<i64: 128, 128>}, {pipeline_mode = #tpu.pipeline_mode<synchronous>, transform_indices = @transform_2, window_bounds = array<i64: 1, 128>}, {pipeline_mode = #tpu.pipeline_mode<synchronous>, transform_indices = @transform_3, window_bounds = array<i64: 9, 128, 128>}, {pipeline_mode = #tpu.pipeline_mode<synchronous>, transform_indices = @transform_4, window_bounds = array<i64: 1, 128>}, {pipeline_mode = #tpu.pipeline_mode<synchronous>, transform_indices = @transform_5, window_bounds = array<i64: 128, 128>}, {pipeline_mode = #tpu.pipeline_mode<synchronous>, transform_indices = @transform_6, window_bounds = array<i64: 1, 128>}, {pipeline_mode = #tpu.pipeline_mode<synchronous>, transform_indices = @transform_7, window_bounds = array<i64: 128, 128>}, {pipeline_mode = #tpu.pipeline_mode<synchronous>, transform_indices = @transform_8, window_bounds = array<i64: 1, 128>}, {transform_indices = @transform_9, window_bounds = array<i64: 1, 16, 16, 128>}]} {
    %c0 = arith.constant 0 : index
    %c0_0 = arith.constant 0 : index
    %c0_1 = arith.constant 0 : index
    %c0_2 = arith.constant 0 : index
    %0 = vector.load %arg1[%c0, %c0_0, %c0_1, %c0_2] : memref<1x16x16x128xf32, #tpu.memory_space<vmem>>, vector<1x16x16x128xf32>
    %1 = vector.shape_cast %0 : vector<1x16x16x128xf32> to vector<16x16x128xf32>
    %2 = vector.shape_cast %1 : vector<16x16x128xf32> to vector<256x128xf32>
    %c0_3 = arith.constant 0 : index
    %c0_4 = arith.constant 0 : index
    %3 = vector.load %arg2[%c0_3, %c0_4] : memref<128x128xf32, #tpu.memory_space<vmem>>, vector<128x128xf32>
    %cst = arith.constant dense<0.000000e+00> : vector<256x128xf32>
    %4 = tpu.matmul %2, %3, %cst {dimension_numbers = #tpu.dot_dimension_numbers<[1], [0], [0], [1], [0, 0, 1, 1], [], []>} : vector<256x128xf32>, vector<128x128xf32>, vector<256x128xf32> -> vector<256x128xf32>
    %c0_5 = arith.constant 0 : index
    %c0_6 = arith.constant 0 : index
    %5 = vector.load %arg3[%c0_5, %c0_6] : memref<1x128xf32, #tpu.memory_space<vmem>>, vector<1x128xf32>
    %6 = vector.broadcast %5 : vector<1x128xf32> to vector<256x128xf32>
    %7 = arith.addf %4, %6 : vector<256x128xf32>
    %cst_7 = arith.constant 0.000000e+00 : f32
    %8 = vector.broadcast %cst_7 : f32 to vector<256x128xf32>
    %9 = arith.maximumf %7, %8 : vector<256x128xf32>
    %cst_8 = arith.constant 0.000000e+00 : f32
    %10 = vector.broadcast %cst_8 : f32 to vector<18x18x128xf32>
    %c0_9 = arith.constant 0 : index
    %c0_10 = arith.constant 0 : index
    %c0_11 = arith.constant 0 : index
    %11 = vector.load %arg11[%c0_9, %c0_10, %c0_11] : memref<18x18x128xf32, #tpu.memory_space<vmem>>, vector<18x18x128xf32>
    tpu.vector_store %arg11[%c0_9, %c0_10, %c0_11], %10 {strides = array<i32>} : memref<18x18x128xf32, #tpu.memory_space<vmem>>, vector<18x18x128xf32>,
    %12 = vector.shape_cast %9 : vector<256x128xf32> to vector<16x16x128xf32>
    %c1 = arith.constant 1 : index
    %c1_12 = arith.constant 1 : index
    %c0_13 = arith.constant 0 : index
    %13 = vector.load %arg11[%c1, %c1_12, %c0_13] : memref<18x18x128xf32, #tpu.memory_space<vmem>>, vector<16x16x128xf32>
    tpu.vector_store %arg11[%c1, %c1_12, %c0_13], %12 {strides = array<i32>} : memref<18x18x128xf32, #tpu.memory_space<vmem>>, vector<16x16x128xf32>,
    %cst_14 = arith.constant 0.000000e+00 : f32
    %14 = vector.broadcast %cst_14 : f32 to vector<256x128xf32>
    %c0_15 = arith.constant 0 : index
    %c0_16 = arith.constant 0 : index
    %c0_17 = arith.constant 0 : index
    %15 = vector.load %arg11[%c0_15, %c0_16, %c0_17] : memref<18x18x128xf32, #tpu.memory_space<vmem>>, vector<16x16x128xf32>
    %16 = vector.shape_cast %15 : vector<16x16x128xf32> to vector<256x128xf32>
    %c0_18 = arith.constant 0 : index
    %c0_19 = arith.constant 0 : index
    %c0_20 = arith.constant 0 : index
    %17 = vector.load %arg4[%c0_18, %c0_19, %c0_20] : memref<9x128x128xf32, #tpu.memory_space<vmem>>, vector<1x128x128xf32>
    %18 = vector.shape_cast %17 : vector<1x128x128xf32> to vector<128x128xf32>
    %cst_21 = arith.constant dense<0.000000e+00> : vector<256x128xf32>
    %19 = tpu.matmul %16, %18, %cst_21 {dimension_numbers = #tpu.dot_dimension_numbers<[1], [0], [0], [1], [0, 0, 1, 1], [], []>} : vector<256x128xf32>, vector<128x128xf32>, vector<256x128xf32> -> vector<256x128xf32>
    %20 = arith.addf %14, %19 : vector<256x128xf32>
    %c0_22 = arith.constant 0 : index
    %c1_23 = arith.constant 1 : index
    %c0_24 = arith.constant 0 : index
    %21 = vector.load %arg11[%c0_22, %c1_23, %c0_24] : memref<18x18x128xf32, #tpu.memory_space<vmem>>, vector<16x16x128xf32>
    %22 = vector.shape_cast %21 : vector<16x16x128xf32> to vector<256x128xf32>
    %c1_25 = arith.constant 1 : index
    %c0_26 = arith.constant 0 : index
    %c0_27 = arith.constant 0 : index
    %23 = vector.load %arg4[%c1_25, %c0_26, %c0_27] : memref<9x128x128xf32, #tpu.memory_space<vmem>>, vector<1x128x128xf32>
    %24 = vector.shape_cast %23 : vector<1x128x128xf32> to vector<128x128xf32>
    %cst_28 = arith.constant dense<0.000000e+00> : vector<256x128xf32>
    %25 = tpu.matmul %22, %24, %cst_28 {dimension_numbers = #tpu.dot_dimension_numbers<[1], [0], [0], [1], [0, 0, 1, 1], [], []>} : vector<256x128xf32>, vector<128x128xf32>, vector<256x128xf32> -> vector<256x128xf32>
    %26 = arith.addf %20, %25 : vector<256x128xf32>
    %c0_29 = arith.constant 0 : index
    %c2 = arith.constant 2 : index
    %c0_30 = arith.constant 0 : index
    %27 = vector.load %arg11[%c0_29, %c2, %c0_30] : memref<18x18x128xf32, #tpu.memory_space<vmem>>, vector<16x16x128xf32>
    %28 = vector.shape_cast %27 : vector<16x16x128xf32> to vector<256x128xf32>
    %c2_31 = arith.constant 2 : index
    %c0_32 = arith.constant 0 : index
    %c0_33 = arith.constant 0 : index
    %29 = vector.load %arg4[%c2_31, %c0_32, %c0_33] : memref<9x128x128xf32, #tpu.memory_space<vmem>>, vector<1x128x128xf32>
    %30 = vector.shape_cast %29 : vector<1x128x128xf32> to vector<128x128xf32>
    %cst_34 = arith.constant dense<0.000000e+00> : vector<256x128xf32>
    %31 = tpu.matmul %28, %30, %cst_34 {dimension_numbers = #tpu.dot_dimension_numbers<[1], [0], [0], [1], [0, 0, 1, 1], [], []>} : vector<256x128xf32>, vector<128x128xf32>, vector<256x128xf32> -> vector<256x128xf32>
    %32 = arith.addf %26, %31 : vector<256x128xf32>
    %c1_35 = arith.constant 1 : index
    %c0_36 = arith.constant 0 : index
    %c0_37 = arith.constant 0 : index
    %33 = vector.load %arg11[%c1_35, %c0_36, %c0_37] : memref<18x18x128xf32, #tpu.memory_space<vmem>>, vector<16x16x128xf32>
    %34 = vector.shape_cast %33 : vector<16x16x128xf32> to vector<256x128xf32>
    %c3 = arith.constant 3 : index
    %c0_38 = arith.constant 0 : index
    %c0_39 = arith.constant 0 : index
    %35 = vector.load %arg4[%c3, %c0_38, %c0_39] : memref<9x128x128xf32, #tpu.memory_space<vmem>>, vector<1x128x128xf32>
    %36 = vector.shape_cast %35 : vector<1x128x128xf32> to vector<128x128xf32>
    %cst_40 = arith.constant dense<0.000000e+00> : vector<256x128xf32>
    %37 = tpu.matmul %34, %36, %cst_40 {dimension_numbers = #tpu.dot_dimension_numbers<[1], [0], [0], [1], [0, 0, 1, 1], [], []>} : vector<256x128xf32>, vector<128x128xf32>, vector<256x128xf32> -> vector<256x128xf32>
    %38 = arith.addf %32, %37 : vector<256x128xf32>
    %c1_41 = arith.constant 1 : index
    %c1_42 = arith.constant 1 : index
    %c0_43 = arith.constant 0 : index
    %39 = vector.load %arg11[%c1_41, %c1_42, %c0_43] : memref<18x18x128xf32, #tpu.memory_space<vmem>>, vector<16x16x128xf32>
    %40 = vector.shape_cast %39 : vector<16x16x128xf32> to vector<256x128xf32>
    %c4 = arith.constant 4 : index
    %c0_44 = arith.constant 0 : index
    %c0_45 = arith.constant 0 : index
    %41 = vector.load %arg4[%c4, %c0_44, %c0_45] : memref<9x128x128xf32, #tpu.memory_space<vmem>>, vector<1x128x128xf32>
    %42 = vector.shape_cast %41 : vector<1x128x128xf32> to vector<128x128xf32>
    %cst_46 = arith.constant dense<0.000000e+00> : vector<256x128xf32>
    %43 = tpu.matmul %40, %42, %cst_46 {dimension_numbers = #tpu.dot_dimension_numbers<[1], [0], [0], [1], [0, 0, 1, 1], [], []>} : vector<256x128xf32>, vector<128x128xf32>, vector<256x128xf32> -> vector<256x128xf32>
    %44 = arith.addf %38, %43 : vector<256x128xf32>
    %c1_47 = arith.constant 1 : index
    %c2_48 = arith.constant 2 : index
    %c0_49 = arith.constant 0 : index
    %45 = vector.load %arg11[%c1_47, %c2_48, %c0_49] : memref<18x18x128xf32, #tpu.memory_space<vmem>>, vector<16x16x128xf32>
    %46 = vector.shape_cast %45 : vector<16x16x128xf32> to vector<256x128xf32>
    %c5 = arith.constant 5 : index
    %c0_50 = arith.constant 0 : index
    %c0_51 = arith.constant 0 : index
    %47 = vector.load %arg4[%c5, %c0_50, %c0_51] : memref<9x128x128xf32, #tpu.memory_space<vmem>>, vector<1x128x128xf32>
    %48 = vector.shape_cast %47 : vector<1x128x128xf32> to vector<128x128xf32>
    %cst_52 = arith.constant dense<0.000000e+00> : vector<256x128xf32>
    %49 = tpu.matmul %46, %48, %cst_52 {dimension_numbers = #tpu.dot_dimension_numbers<[1], [0], [0], [1], [0, 0, 1, 1], [], []>} : vector<256x128xf32>, vector<128x128xf32>, vector<256x128xf32> -> vector<256x128xf32>
    %50 = arith.addf %44, %49 : vector<256x128xf32>
    %c2_53 = arith.constant 2 : index
    %c0_54 = arith.constant 0 : index
    %c0_55 = arith.constant 0 : index
    %51 = vector.load %arg11[%c2_53, %c0_54, %c0_55] : memref<18x18x128xf32, #tpu.memory_space<vmem>>, vector<16x16x128xf32>
    %52 = vector.shape_cast %51 : vector<16x16x128xf32> to vector<256x128xf32>
    %c6 = arith.constant 6 : index
    %c0_56 = arith.constant 0 : index
    %c0_57 = arith.constant 0 : index
    %53 = vector.load %arg4[%c6, %c0_56, %c0_57] : memref<9x128x128xf32, #tpu.memory_space<vmem>>, vector<1x128x128xf32>
    %54 = vector.shape_cast %53 : vector<1x128x128xf32> to vector<128x128xf32>
    %cst_58 = arith.constant dense<0.000000e+00> : vector<256x128xf32>
    %55 = tpu.matmul %52, %54, %cst_58 {dimension_numbers = #tpu.dot_dimension_numbers<[1], [0], [0], [1], [0, 0, 1, 1], [], []>} : vector<256x128xf32>, vector<128x128xf32>, vector<256x128xf32> -> vector<256x128xf32>
    %56 = arith.addf %50, %55 : vector<256x128xf32>
    %c2_59 = arith.constant 2 : index
    %c1_60 = arith.constant 1 : index
    %c0_61 = arith.constant 0 : index
    %57 = vector.load %arg11[%c2_59, %c1_60, %c0_61] : memref<18x18x128xf32, #tpu.memory_space<vmem>>, vector<16x16x128xf32>
    %58 = vector.shape_cast %57 : vector<16x16x128xf32> to vector<256x128xf32>
    %c7 = arith.constant 7 : index
    %c0_62 = arith.constant 0 : index
    %c0_63 = arith.constant 0 : index
    %59 = vector.load %arg4[%c7, %c0_62, %c0_63] : memref<9x128x128xf32, #tpu.memory_space<vmem>>, vector<1x128x128xf32>
    %60 = vector.shape_cast %59 : vector<1x128x128xf32> to vector<128x128xf32>
    %cst_64 = arith.constant dense<0.000000e+00> : vector<256x128xf32>
    %61 = tpu.matmul %58, %60, %cst_64 {dimension_numbers = #tpu.dot_dimension_numbers<[1], [0], [0], [1], [0, 0, 1, 1], [], []>} : vector<256x128xf32>, vector<128x128xf32>, vector<256x128xf32> -> vector<256x128xf32>
    %62 = arith.addf %56, %61 : vector<256x128xf32>
    %c2_65 = arith.constant 2 : index
    %c2_66 = arith.constant 2 : index
    %c0_67 = arith.constant 0 : index
    %63 = vector.load %arg11[%c2_65, %c2_66, %c0_67] : memref<18x18x128xf32, #tpu.memory_space<vmem>>, vector<16x16x128xf32>
    %64 = vector.shape_cast %63 : vector<16x16x128xf32> to vector<256x128xf32>
    %c8 = arith.constant 8 : index
    %c0_68 = arith.constant 0 : index
    %c0_69 = arith.constant 0 : index
    %65 = vector.load %arg4[%c8, %c0_68, %c0_69] : memref<9x128x128xf32, #tpu.memory_space<vmem>>, vector<1x128x128xf32>
    %66 = vector.shape_cast %65 : vector<1x128x128xf32> to vector<128x128xf32>
    %cst_70 = arith.constant dense<0.000000e+00> : vector<256x128xf32>
    %67 = tpu.matmul %64, %66, %cst_70 {dimension_numbers = #tpu.dot_dimension_numbers<[1], [0], [0], [1], [0, 0, 1, 1], [], []>} : vector<256x128xf32>, vector<128x128xf32>, vector<256x128xf32> -> vector<256x128xf32>
    %68 = arith.addf %62, %67 : vector<256x128xf32>
    %c0_71 = arith.constant 0 : index
    %c0_72 = arith.constant 0 : index
    %69 = vector.load %arg5[%c0_71, %c0_72] : memref<1x128xf32, #tpu.memory_space<vmem>>, vector<1x128xf32>
    %70 = vector.broadcast %69 : vector<1x128xf32> to vector<256x128xf32>
    %71 = arith.addf %68, %70 : vector<256x128xf32>
    %cst_73 = arith.constant 0.000000e+00 : f32
    %72 = vector.broadcast %cst_73 : f32 to vector<256x128xf32>
    %73 = arith.maximumf %71, %72 : vector<256x128xf32>
    %c0_74 = arith.constant 0 : index
    %c0_75 = arith.constant 0 : index
    %74 = vector.load %arg6[%c0_74, %c0_75] : memref<128x128xf32, #tpu.memory_space<vmem>>, vector<128x128xf32>
    %cst_76 = arith.constant dense<0.000000e+00> : vector<256x128xf32>
    %75 = tpu.matmul %73, %74, %cst_76 {dimension_numbers = #tpu.dot_dimension_numbers<[1], [0], [0], [1], [0, 0, 1, 1], [], []>} : vector<256x128xf32>, vector<128x128xf32>, vector<256x128xf32> -> vector<256x128xf32>
    %c0_77 = arith.constant 0 : index
    %c0_78 = arith.constant 0 : index
    %76 = vector.load %arg7[%c0_77, %c0_78] : memref<1x128xf32, #tpu.memory_space<vmem>>, vector<1x128xf32>
    %77 = vector.broadcast %76 : vector<1x128xf32> to vector<256x128xf32>
    %78 = arith.addf %75, %77 : vector<256x128xf32>
    %c0_79 = arith.constant 0 : index
    %c0_80 = arith.constant 0 : index
    %79 = vector.load %arg8[%c0_79, %c0_80] : memref<128x128xf32, #tpu.memory_space<vmem>>, vector<128x128xf32>
    %cst_81 = arith.constant dense<0.000000e+00> : vector<256x128xf32>
    %80 = tpu.matmul %2, %79, %cst_81 {dimension_numbers = #tpu.dot_dimension_numbers<[1], [0], [0], [1], [0, 0, 1, 1], [], []>} : vector<256x128xf32>, vector<128x128xf32>, vector<256x128xf32> -> vector<256x128xf32>
    %c0_82 = arith.constant 0 : index
    %c0_83 = arith.constant 0 : index
    %81 = vector.load %arg9[%c0_82, %c0_83] : memref<1x128xf32, #tpu.memory_space<vmem>>, vector<1x128xf32>
    %82 = vector.broadcast %81 : vector<1x128xf32> to vector<256x128xf32>
    %83 = arith.addf %80, %82 : vector<256x128xf32>
    %84 = arith.addf %78, %83 : vector<256x128xf32>
    %cst_84 = arith.constant 0.000000e+00 : f32
    %85 = vector.broadcast %cst_84 : f32 to vector<256x128xf32>
    %86 = arith.maximumf %84, %85 : vector<256x128xf32>
    %87 = vector.shape_cast %86 : vector<256x128xf32> to vector<16x16x128xf32>
    %c0_85 = arith.constant 0 : index
    %c0_86 = arith.constant 0 : index
    %c0_87 = arith.constant 0 : index
    %c0_88 = arith.constant 0 : index
    %88 = vector.load %arg10[%c0_85, %c0_86, %c0_87, %c0_88] : memref<1x16x16x128xf32, #tpu.memory_space<vmem>>, vector<1x16x16x128xf32>
    %89 = vector.shape_cast %88 : vector<1x16x16x128xf32> to vector<16x16x128xf32>
    %90 = vector.shape_cast %87 : vector<16x16x128xf32> to vector<1x16x16x128xf32>
    tpu.vector_store %arg10[%c0_85, %c0_86, %c0_87, %c0_88], %90 {strides = array<i32>} : memref<1x16x16x128xf32, #tpu.memory_space<vmem>>, vector<1x16x16x128xf32>,
    return
  }
  func.func @transform_0(%arg0: i32) -> (i32, i32, i32, i32) {
    %c0_i32 = arith.constant 0 : i32
    %c0_i32_0 = arith.constant 0 : i32
    %c0_i32_1 = arith.constant 0 : i32
    %c0_i32_2 = arith.constant 0 : i32
    return %arg0, %c0_i32, %c0_i32_0, %c0_i32_1 : i32, i32, i32, i32
  }
  func.func @transform_1(%arg0: i32) -> (i32, i32) {
    %c0_i32 = arith.constant 0 : i32
    %c0_i32_0 = arith.constant 0 : i32
    %c0_i32_1 = arith.constant 0 : i32
    return %c0_i32, %c0_i32_0 : i32, i32
  }
  func.func @transform_2(%arg0: i32) -> (i32, i32) {
    %c0_i32 = arith.constant 0 : i32
    %c0_i32_0 = arith.constant 0 : i32
    %c0_i32_1 = arith.constant 0 : i32
    return %c0_i32, %c0_i32_0 : i32, i32
  }
  func.func @transform_3(%arg0: i32) -> (i32, i32, i32) {
    %c0_i32 = arith.constant 0 : i32
    %c0_i32_0 = arith.constant 0 : i32
    %c0_i32_1 = arith.constant 0 : i32
    %c0_i32_2 = arith.constant 0 : i32
    return %c0_i32, %c0_i32_0, %c0_i32_1 : i32, i32, i32
  }
  func.func @transform_4(%arg0: i32) -> (i32, i32) {
    %c0_i32 = arith.constant 0 : i32
    %c0_i32_0 = arith.constant 0 : i32
    %c0_i32_1 = arith.constant 0 : i32
    return %c0_i32, %c0_i32_0 : i32, i32
  }
  func.func @transform_5(%arg0: i32) -> (i32, i32) {
    %c0_i32 = arith.constant 0 : i32
    %c0_i32_0 = arith.constant 0 : i32
    %c0_i32_1 = arith.constant 0 : i32
    return %c0_i32, %c0_i32_0 : i32, i32
  }
  func.func @transform_6(%arg0: i32) -> (i32, i32) {
    %c0_i32 = arith.constant 0 : i32
    %c0_i32_0 = arith.constant 0 : i32
    %c0_i32_1 = arith.constant 0 : i32
    return %c0_i32, %c0_i32_0 : i32, i32
  }
  func.func @transform_7(%arg0: i32) -> (i32, i32) {
    %c0_i32 = arith.constant 0 : i32
    %c0_i32_0 = arith.constant 0 : i32
    %c0_i32_1 = arith.constant 0 : i32
    return %c0_i32, %c0_i32_0 : i32, i32
  }
  func.func @transform_8(%arg0: i32) -> (i32, i32) {
    %c0_i32 = arith.constant 0 : i32
    %c0_i32_0 = arith.constant 0 : i32
    %c0_i32_1 = arith.constant 0 : i32
    return %c0_i32, %c0_i32_0 : i32, i32
  }
  func.func @transform_9(%arg0: i32) -> (i32, i32, i32, i32) {
    %c0_i32 = arith.constant 0 : i32
    %c0_i32_0 = arith.constant 0 : i32
    %c0_i32_1 = arith.constant 0 : i32
    %c0_i32_2 = arith.constant 0 : i32
    return %arg0, %c0_i32, %c0_i32_0, %c0_i32_1 : i32, i32, i32, i32
  }
}

</mosaic_0001>

<bundles_post_ra>
// kernel: tpu_custom_call.1
= control target key start
LH: loop header
LB: loop body
LE: loop exit
PB: predicated region body
PF: predicated region fallthrough
CT: control target
= control target key end

     0   :  { %s8110_s0 = inlined_call_operand.hbm [shape: f32[2,16,16,128], index: 0, kind: input, shape index: {}]   ;;  %s8111_s1 = inlined_call_operand.hbm [shape: f32[128,128], index: 1, kind: input, shape index: {}]   ;;  %s8112_s2 = inlined_call_operand.vmem [shape: f32[1,128], index: 2, kind: input, shape index: {}]   ;;  %s8113_s3 = inlined_call_operand.hbm [shape: f32[9,128,128], index: 3, kind: input, shape index: {}]   ;;  %s8114_s4 = inlined_call_operand.vmem [shape: f32[1,128], index: 4, kind: input, shape index: {}]   ;;  %s8115_s5 = inlined_call_operand.hbm [shape: f32[128,128], index: 5, kind: input, shape index: {}]   ;;  %s8116_s6 = inlined_call_operand.vmem [shape: f32[1,128], index: 6, kind: input, shape index: {}]   ;;  %s8117_s7 = inlined_call_operand.hbm [shape: f32[128,128], index: 7, kind: input, shape index: {}]   ;;  %s8118_s8 = inlined_call_operand.vmem [shape: f32[1,128], index: 8, kind: input, shape index: {}]   ;;  %s8119_s9 = inlined_call_operand.hbm [shape: f32[2,16,16,128], index: 9, kind: output, shape index: {}]  }
   0x1   :  { %8139 = sst [smem:[#allocation28_spill]] %s8119_s9 }
   0x2   :  { %14 = vsyncpa [#allocation4], 0 }
   0x3   :  { %16 = vsyncpa [#allocation4 + $0x1], 0 }
   0x4   :  { %17 = vsyncpa [#allocation7], 0 }
   0x5   :  { %18 = vsyncpa [#allocation10], 0 }
   0x6   :  { %19 = vsyncpa [#allocation5], 0 }
   0x7   :  { %21 = vsyncpa [#allocation5 + $0x1], 0  ;;  %s6990_s30 = smov 0   ;;  %s6992_s10 = smov 0  }
   0x8   :  { %s6994_s11 = smov 0   ;;  %s6996_s12 = smov 0  }
   0x9 LB: > { %8140 = sst [smem:[#allocation17_spill]] %s6915_s30  ;;  %s7011_s13 = sadd.s32 4294967295, %s6927_s12   ;;  %s6927_s12 = sphi %s6996_s12, %s8185_s12   ;;  %s6923_s11 = sphi %s6994_s11, %s8184_s11   ;;  %s6919_s10 = sphi %s6992_s10, %s8183_s10   ;;  %s6915_s30 = sphi %s6990_s30, %s8182_s30  }
   0xa   : > { %s4286_s14 = sadd.s32 4294967294, %s6927_s12   ;;  %p47_p0 = scmp.ne.s32.totalorder %s6919_s10, %s6915_s30 }
   0xb   : > { %p8120_p1 = scmp.eq.s32.totalorder %s7011_s13, 0  ;;  %p245_p3 = scmp.eq.s32.totalorder %s4286_s14, 1 }
   0xc   : > { %p4287_p5 = scmp.ge.s32.totalorder %s6927_s12, 1  ;;  %p252_p7 = scmp.lt.s32.totalorder %s6927_s12, 3 }
   0xd   : > { %p7020_p4 = por %p8120_p1, %p47_p0  ;;  %p7025_p6 = por %p245_p3, %p47_p0 }
   0xe   : > { %p7030_p8 = pnand %p4287_p5, %p252_p7  ;;  %s6929_s18 = smov [#allocation6]  }
   0xf   : > { %s8141_s15 = scalar_select %p7020_p4, 1, 0 }
  0x10   : > { %s8142_s16 = scalar_select %p7025_p6, 1, 0 }
  0x11   : > { %s8144_s17 = scalar_select %p7030_p8, 1, 0 }
  0x12   : > { %8143 = sst [smem:[#allocation18_spill]] %s8142_s16  ;;  %s264_s19 = sshll.u32 %s6929_s18, 4  ;;  %s7034_s19 = int_to_ptr.vmem [resolvable:$true] %s264_s19 }
  0x13   : > { %p6606_p9 = pneg %p7030_p8  ;;  %s6930_s21 = smov [#allocation9]  }
  0x14   : > { %s296_s22 = sshll.u32 %s6930_s21, 4  ;;  %s6931_s23 = smov [#allocation8]   ;;  %s7045_s22 = int_to_ptr.vmem [resolvable:$true] %s296_s22 }
  0x15   : > { %p7041_p11 = pnand %p6606_p9, %p8120_p1  ;;  %s7047_s24 = sshll.u32 %s6931_s23, 4  ;;  %s281_s24 = int_to_ptr.vmem [resolvable:$true] %s7047_s24 }
  0x16   : > { %s6711_s27 = scalar_lea.hbm %s8111_s1, 2048 }
  0x17   : > { %p6712_p12 = scmp.ne.s32.totalorder %s8111_s1, %s6711_s27  ;;  %p7057_p13 = pneg %p7041_p11 }
  0x18   : > { %p6718_p5 = scmp.lt.u32.totalorder %s6711_s27, %s8111_s1 }
  0x19   : > { %p6714_p0 = pnand %p7057_p13, %p6712_p12 }
  0x1b   : > { %p6715_p3 = pneg %p6714_p0 }
  0x1d   : > { %p6720_p7 = pnand %p6718_p5, %p6715_p3 }
  0x1f   : > { %6723 = shalt.err (!%p6720_p7)
}
  0x20   : > { %s6724_s23 = scalar_lea.vmem %s7034_s19, 2048  ;;  %p6732_p2 = scmp.lt.s32.totalorder %s7034_s19, %s7034_s19 }
  0x21   : > { %p6725_p9 = scmp.ne.s32.totalorder %s7034_s19, %s6724_s23  ;;  %p6733_p6 = scmp.lt.s32.totalorder %s6724_s23, %s6724_s23 }
  0x23   : > { %p6727_p10 = pnand %p6725_p9, %p7057_p13  ;;  %p6734_p12 = por %p6733_p6, %p6732_p2 }
  0x25   : > { %p6728_p1 = pneg %p6727_p10 }
  0x27   : > { %p6735_p0 = pnand %p6734_p12, %p6728_p1 }
  0x29   : > { %6738 = shalt.err (!%p6735_p0)
}
  0x2a   : > { %s6932_s25 = smov 128   ;;  %s6933_s26 = smov 8  }
  0x2b   : > { %6609 = dma.hbm_to_vmem [thread:$0]  (!%p7041_p11), %s8111_s1, 2048, %s7034_s19, [#allocation7], %s6932_s25, %s6932_s25, %s6933_s26  }
  0x2c   : > { %s6739_s21 = scalar_lea.hbm %s8115_s5, 2048 }
  0x2d   : > { %p6740_p1 = scmp.ne.s32.totalorder %s8115_s5, %s6739_s21  ;;  %p6746_p10 = scmp.lt.u32.totalorder %s6739_s21, %s8115_s5 }
  0x2f   : > { %p6742_p2 = pnand %p6740_p1, %p7057_p13 }
  0x31   : > { %p6743_p6 = pneg %p6742_p2 }
  0x33   : > { %p6748_p3 = pnand %p6746_p10, %p6743_p6 }
  0x35   : > { %6751 = shalt.err (!%p6748_p3)
}
  0x36   : > { %s6752_s19 = scalar_lea.vmem %s7045_s22, 2048  ;;  %p6760_p12 = scmp.lt.s32.totalorder %s7045_s22, %s7045_s22 }
  0x37   : > { %p6753_p5 = scmp.ne.s32.totalorder %s7045_s22, %s6752_s19  ;;  %p6761_p0 = scmp.lt.s32.totalorder %s6752_s19, %s6752_s19 }
  0x39   : > { %p6755_p7 = pnand %p6753_p5, %p7057_p13  ;;  %p6762_p1 = por %p6761_p0, %p6760_p12 }
  0x3b   : > { %p6756_p9 = pneg %p6755_p7 }
  0x3d   : > { %p6763_p2 = pnand %p6762_p1, %p6756_p9 }
  0x3f   : > { %6766 = shalt.err (!%p6763_p2)
}
  0x40   : > { %6615 = dma.hbm_to_vmem [thread:$0]  (!%p7041_p11), %s8115_s5, 2048, %s7045_s22, [#allocation10], %s6932_s25, %s6932_s25, %s6933_s26  }
  0x41   : > { %s6767_s28 = scalar_lea.hbm %s8113_s3, 18432 }
  0x42   : > { %p6768_p6 = scmp.ne.s32.totalorder %s8113_s3, %s6767_s28  ;;  %p6774_p5 = scmp.lt.u32.totalorder %s6767_s28, %s8113_s3 }
  0x44   : > { %p6770_p10 = pnand %p6768_p6, %p7057_p13 }
  0x46   : > { %p6771_p3 = pneg %p6770_p10 }
  0x48   : > { %p6776_p7 = pnand %p6774_p5, %p6771_p3 }
  0x4a   : > { %6779 = shalt.err (!%p6776_p7)
}
  0x4b   : > { %s6780_s19 = scalar_lea.vmem %s281_s24, 18432  ;;  %p6788_p1 = scmp.lt.s32.totalorder %s281_s24, %s281_s24 }
  0x4c   : > { %p6781_p9 = scmp.ne.s32.totalorder %s281_s24, %s6780_s19  ;;  %p6789_p2 = scmp.lt.s32.totalorder %s6780_s19, %s6780_s19 }
  0x4e   : > { %p6783_p12 = pnand %p6781_p9, %p7057_p13  ;;  %p6790_p4 = por %p6789_p2, %p6788_p1 }
  0x50   : > { %p6784_p0 = pneg %p6783_p12 }
  0x52   : > { %p6791_p8 = pnand %p6790_p4, %p6784_p0 }
  0x54   : > { %6794 = shalt.err (!%p6791_p8)
}
  0x55   : > { %6612 = dma.hbm_to_vmem [thread:$0]  (!%p7041_p11), %s8113_s3, 18432, %s281_s24, [#allocation7], %s6932_s25, %s6932_s25, %s6933_s26  }
  0x56   : > { %s6934_s30 = smov [#allocation11]   ;;  %s6795_s29 = scalar_lea.hbm %s8117_s7, 2048 }
  0x57   : > { %s312_s16 = sshll.u32 %s6934_s30, 4  ;;  %p6796_p4 = scmp.ne.s32.totalorder %s8117_s7, %s6795_s29  ;;  %s313_s16 = int_to_ptr.vmem [resolvable:$true] %s312_s16 }
  0x58   : > { %p6802_p10 = scmp.lt.u32.totalorder %s6795_s29, %s8117_s7 }
  0x59   : > { %p6798_p8 = pnand %p6796_p4, %p7057_p13 }
  0x5b   : > { %p6799_p6 = pneg %p6798_p8 }
  0x5d   : > { %p6804_p3 = pnand %p6802_p10, %p6799_p6 }
  0x5f   : > { %6807 = shalt.err (!%p6804_p3)
}
  0x60   : > { %s6808_s24 = scalar_lea.vmem %s313_s16, 2048  ;;  %p6816_p12 = scmp.lt.s32.totalorder %s313_s16, %s313_s16 }
  0x61   : > { %p6809_p5 = scmp.ne.s32.totalorder %s313_s16, %s6808_s24  ;;  %p6817_p0 = scmp.lt.s32.totalorder %s6808_s24, %s6808_s24 }
  0x63   : > { %p6811_p7 = pnand %p6809_p5, %p7057_p13  ;;  %p6818_p1 = por %p6817_p0, %p6816_p12 }
  0x65   : > { %p6812_p9 = pneg %p6811_p7 }
  0x67   : > { %p6819_p2 = pnand %p6818_p1, %p6812_p9 }
  0x69   : > { %6822 = shalt.err (!%p6819_p2)
}
  0x6a   : > { %6618 = dma.hbm_to_vmem [thread:$0]  (!%p7041_p11), %s8117_s7, 2048, %s313_s16, [#allocation10], %s6932_s25, %s6932_s25, %s6933_s26  }
  0x6b   : > { %s7151_s14 = sadd.s32 1, %s6927_s12   ;;  %s34_s20 = sadd.s32 1, %s6923_s11 }
  0x6c   : > { %s31_s30 = ssub.s32 %s6927_s12, %s7151_s14  ;;  %p41_p13 = scmp.ne.s32.totalorder %s6923_s11, %s6919_s10 }
  0x6d   : > { %p32_p4 = scmp.eq.s32.totalorder %s31_s30, 0  ;;  %p42_p8 = scmp.eq.s32.totalorder %s6927_s12, 0 }
  0x6e   : > { %p8147_p6 = scmp.eq.s32.totalorder %s7011_s13, 1  ;;  %p6631_p3 = scmp.lt.s32.totalorder %s6927_s12, 2 }
  0x6f   : > { %s7167_s28 = scalar_select %p32_p4, %s6923_s11, %s34_s20  }
  0x70   : > { %p7161_p10 = por %p8147_p6, %p41_p13  ;;  %p43_p5 = por %p42_p8, %p41_p13 }
  0x71   : > { %s329_s29 = sand.u32 1, %s6923_s11   ;;  %s4312_s16 = sshll.u32 %s6927_s12, 12 }
  0x72   : > { %s4293_s18 = sshll.u32 %s329_s29, 8  ;;  %s7174_s19 = scalar_lea.hbm %s8110_s0, %s4312_s16 }
  0x73   : > { %s333_s24 = scalar_lea.vmem [#allocation3], %s4293_s18  ;;  %p7178_p11 = pnand %p6631_p3, %p43_p5 }
  0x74   : > { %s340_s22 = sshll.u32 %s333_s24, 4  ;;  %s7182_s20 = scalar_lea.sflag [#allocation4], %s329_s29  ;;  %s7176_s22 = int_to_ptr.vmem [resolvable:$true] %s340_s22 }
  0x75   : > { %s6823_s30 = scalar_lea.hbm %s7174_s19, 4096  ;;  %p6825_p9 = pneg %p7178_p11 }
  0x76   : > { %p6824_p7 = scmp.ne.s32.totalorder %s7174_s19, %s6823_s30  ;;  %s6828_s21 = scalar_lea.hbm %s8110_s0, 8192 }
  0x77   : > { %p6829_p1 = scmp.lt.u32.totalorder %s7174_s19, %s8110_s0  ;;  %p6830_p2 = scmp.lt.u32.totalorder %s6828_s21, %s6823_s30 }
  0x78   : > { %p6826_p12 = pnand %p6825_p9, %p6824_p7  ;;  %p6832_p4 = scmp.lt.u32.totalorder %s6823_s30, %s7174_s19 }
  0x79   : > { %p6831_p13 = por %p6830_p2, %p6829_p1 }
  0x7a   : > { %p6827_p0 = pneg %p6826_p12 }
  0x7b   : > { %p6833_p8 = por %p6832_p4, %p6831_p13 }
  0x7d   : > { %p6834_p6 = pnand %p6833_p8, %p6827_p0 }
  0x7f   : > { %6837 = shalt.err (!%p6834_p6)
}
  0x80   : > { %s6838_s29 = scalar_lea.vmem %s7176_s22, 4096  ;;  %s6935_s18 = smov [#allocation3]  }
  0x81   : > { %p6839_p3 = scmp.ne.s32.totalorder %s7176_s22, %s6838_s29  ;;  %s6843_s16 = sshll.u32 %s6935_s18, 4  ;;  %s6844_s16 = int_to_ptr.vmem [resolvable:$false] %s6843_s16 }
  0x82   : > { %s6845_s23 = scalar_lea.vmem %s6844_s16, 8192  ;;  %p6846_p12 = scmp.lt.s32.totalorder %s7176_s22, %s6844_s16 }
  0x83   : > { %p6841_p5 = pnand %p6839_p3, %p6825_p9  ;;  %p6847_p1 = scmp.lt.s32.totalorder %s6845_s23, %s6838_s29 }
  0x85   : > { %p6842_p7 = pneg %p6841_p5  ;;  %p6848_p2 = por %p6847_p1, %p6846_p12 }
  0x87   : > { %p6849_p13 = pnand %p6848_p2, %p6842_p7 }
  0x89   : > { %6852 = shalt.err (!%p6849_p13)
}
  0x8a   : > { %6622 = dma.hbm_to_vmem [thread:$0]  (!%p7178_p11), %s7174_s19, 4096, %s7176_s22, %s7182_s20, %s6932_s25, %s6932_s25, %s6933_s26  }
  0x8b   : > { %p8150_p9 = scmp.ne.s32.totalorder %s8144_s17, 0 }
  0x8d   : > { %352 = sbr.rel (%p8150_p9) target bundleno = 1316 (0x524), region = 56 }
  0x94   : > { %s7216_s30 = sand.u32 1, %s6919_s10   ;;  %p8151_p0 = scmp.ne.s32.totalorder %s8141_s15, 0 }
  0x95   : > { %s4297_s21 = sshll.u32 %s7216_s30, 8  ;;  %s355_s24 = scalar_lea.sflag [#allocation4], %s7216_s30 }
  0x96   : > { %s7222_s9 = scalar_lea.vmem [#allocation3], %s4297_s21 }
  0x97   : > { %6898 = dma.done.wait (%p8151_p0), %s355_s24, 4096  }
  0x98   : > { %6900 = vsyncadd (%p8151_p0), %s355_s24, 4294963200  ;;  %p8152_p11 = scmp.eq.s32.totalorder %s7011_s13, 0 }
  0x9a   : > { %6902 = dma.done.wait (%p8152_p11), [#allocation7], 20480   ;;  %p8153_p4 = pmov %p8152_p11 }
  0x9c   : > { %6904 = vsyncadd (%p8153_p4), [#allocation7], 4294946816  ;;  %p8154_p8 = pmov %p8153_p4 }
  0x9d   : > { %p8155_p6 = pmov %p8153_p4 }
  0x9e   : > { %6906 = dma.done.wait (%p8154_p8), [#allocation10], 4096  }
  0x9f   : > { %6908 = vsyncadd (%p8155_p6), [#allocation10], 4294963200  ;;  %v441_v0 = vld [vmem:[#allocation6] sm:$0xff]  ;;  %v442_v1 = vld [vmem:[#allocation6 + $0x8] sm:$0xff]  ;;  %s7997_s18 = scalar_lea.vmem [#allocation12], %s4297_s21  ;;  %s4313_s16 = sshll.u32 %s7011_s13, 12 }
  0xa0   : > { %v443_v2 = vld [vmem:[#allocation6 + $0x10] sm:$0xff]  ;;  %v5850_v3 = vpack.c.bf16 %v442_v1, %v441_v0  ;;  %v444_v4 = vld [vmem:[#allocation6 + $0x18] sm:$0xff]  ;;  %v445_v6 = vld [vmem:[#allocation6 + $0x20] sm:$0xff]  ;;  %s4175_s23 = sshll.u32 %s7997_s18, 4  ;;  %s4162_s13 = scalar_lea.sflag [#allocation5], %s7216_s30  ;;  %s8064_s23 = int_to_ptr.vmem [resolvable:$true] %s4175_s23 }
  0xa1   : > { %v5854_v5 = vpack.c.bf16 %v444_v4, %v443_v2  ;;  %v446_v7 = vld [vmem:[#allocation6 + $0x28] sm:$0xff]  ;;  %v409_v9 = vld [vmem:[%s7222_s9] sm:$0xff]  ;;  %v447_v10 = vld [vmem:[#allocation6 + $0x30] sm:$0xff]  ;;  %s6853_s17 = scalar_lea.vmem %s8064_s23, 4096  ;;  %s6937_s25 = smov [#allocation12]  }
  0xa2   : > { %5851 = vmatprep.subr.bf16.mxu0 %v5850_v3  ;;  %v5858_v8 = vpack.c.bf16 %v446_v7, %v445_v6  ;;  %v448_v11 = vld [vmem:[#allocation6 + $0x38] sm:$0xff]  ;;  %4922 = vmatprep.mubr.f32.mxu0 %v409_v9  ;;  %v449_v13 = vld [vmem:[#allocation6 + $0x40] sm:$0xff]  ;;  %v450_v14 = vld [vmem:[#allocation6 + $0x48] sm:$0xff]  ;;  %p6854_p3 = scmp.ne.s32.totalorder %s8064_s23, %s6853_s17  ;;  %s6857_s26 = sshll.u32 %s6937_s25, 4  ;;  %s6858_s26 = int_to_ptr.vmem [resolvable:$false] %s6857_s26 }
  0xa3   : > { %5853 = vmatpush3.bf16.msra.mxu0 %v5850_v3  ;;  %v5862_v12 = vpack.c.bf16 %v448_v11, %v447_v10  ;;  %v5866_v15 = vpack.c.bf16 %v450_v14, %v449_v13  ;;  %v451_v16 = vld [vmem:[#allocation6 + $0x50] sm:$0xff]  ;;  %v452_v17 = vld [vmem:[#allocation6 + $0x58] sm:$0xff]  ;;  %v1694_v18 = vld [vmem:[#allocation8 + $0x180] sm:$0xff]  ;;  %s6859_s19 = scalar_lea.vmem %s6858_s26, 8192  ;;  %p6860_p12 = scmp.lt.s32.totalorder %s8064_s23, %s6858_s26 }
  0xa4   : > { %5855 = vmatprep.subr.bf16.mxu0 %v5854_v5  ;;  %v5870_v19 = vpack.c.bf16 %v452_v17, %v451_v16  ;;  %v453_v20 = vld [vmem:[#allocation6 + $0x60] sm:$0xff]  ;;  %v1695_v21 = vld [vmem:[#allocation8 + $0x188] sm:$0xff]  ;;  %v1696_v24 = vld [vmem:[#allocation8 + $0x190] sm:$0xff]  ;;  %p6855_p5 = pnand %p6854_p3, %p7161_p10  ;;  %p6861_p1 = scmp.lt.s32.totalorder %s6859_s19, %s6853_s17 }
  0xa5   : > { %v454_v22 = vld [vmem:[#allocation6 + $0x68] sm:$0xff]  ;;  %v5978_v23 = vpack.c.bf16 %v1695_v21, %v1694_v18  ;;  %v1697_v25 = vld [vmem:[#allocation8 + $0x198] sm:$0xff]  ;;  %v1698_v27 = vld [vmem:[#allocation8 + $0x1a0] sm:$0xff] }
  0xa6   : > { %v5982_v26 = vpack.c.bf16 %v1697_v25, %v1696_v24  ;;  %v1699_v28 = vld [vmem:[#allocation8 + $0x1a8] sm:$0xff]  ;;  %v5874_v29 = vpack.c.bf16 %v454_v22, %v453_v20  ;;  %v455_v30 = vld [vmem:[#allocation6 + $0x70] sm:$0xff]  ;;  %v456_v31 = vld [vmem:[#allocation6 + $0x78] sm:$0xff]  ;;  %p6856_p7 = pneg %p6855_p5  ;;  %p6862_p2 = por %p6861_p1, %p6860_p12 }
  0xa7   : > { %5857 = vmatpush3.bf16.msra.mxu0 %v5854_v5  ;;  %5979 = vmatprep.subr.bf16.mxu1 %v5978_v23  ;;  %v5986_v32 = vpack.c.bf16 %v1699_v28, %v1698_v27  ;;  %v1700_v33 = vld [vmem:[#allocation8 + $0x1b0] sm:$0xff]  ;;  %v1701_v34 = vld [vmem:[#allocation8 + $0x1b8] sm:$0xff]  ;;  %v5878_v35 = vpack.c.bf16 %v456_v31, %v455_v30  ;;  %v889_v36 = vld [vmem:[#allocation8 + $0x80] sm:$0xff]  ;;  %v8126_v28 = vmov 0.0  }
  0xa8   : > { %5859 = vmatprep.subr.bf16.mxu0 %v5858_v8  ;;  %5981 = vmatpush3.bf16.msra.mxu1 %v5978_v23  ;;  %v890_v37 = vld [vmem:[#allocation8 + $0x88] sm:$0xff]  ;;  %v5990_v38 = vpack.c.bf16 %v1701_v34, %v1700_v33  ;;  %v1702_v39 = vld [vmem:[#allocation8 + $0x1c0] sm:$0xff]  ;;  %v891_v42 = vld [vmem:[#allocation8 + $0x90] sm:$0xff]  ;;  %725 = vst [vmem:[#allocation2 + $0x20] sm:$0xff] %v8126_v28  ;;  %p6863_p13 = pnand %p6862_p2, %p6856_p7 }
  0xa9   : > { %5983 = vmatprep.subr.bf16.mxu1 %v5982_v26  ;;  %v1703_v40 = vld [vmem:[#allocation8 + $0x1c8] sm:$0xff]  ;;  %v5882_v41 = vpack.c.bf16 %v890_v37, %v889_v36  ;;  %v892_v43 = vld [vmem:[#allocation8 + $0x98] sm:$0xff]  ;;  %v411_v46 = vld [vmem:[%s7222_s9 + $0x10] sm:$0xff]  ;;  %726 = vst [vmem:[#allocation2 + $0x28] sm:$0x3] %v8126_v28 }
  0xaa   : > { %v5994_v44 = vpack.c.bf16 %v1703_v40, %v1702_v39  ;;  %v410_v45 = vld [vmem:[%s7222_s9 + $0x8] sm:$0xff]  ;;  %v5886_v47 = vpack.c.bf16 %v892_v43, %v891_v42  ;;  %v893_v48 = vld [vmem:[#allocation8 + $0xa0] sm:$0xff]  ;;  %v412_v50 = vld [vmem:[%s7222_s9 + $0x18] sm:$0xff]  ;;  %721 = vst [vmem:[#allocation2] sm:$0xff] %v8126_v28 }
  0xab   : > { %5861 = vmatpush3.bf16.msra.mxu0 %v5858_v8  ;;  %v894_v49 = vld [vmem:[#allocation8 + $0xa8] sm:$0xff]  ;;  %v413_v51 = vld [vmem:[%s7222_s9 + $0x20] sm:$0xff]  ;;  %v895_v53 = vld [vmem:[#allocation8 + $0xb0] sm:$0xff]  ;;  %722 = vst [vmem:[#allocation2 + $0x8] sm:$0xff] %v8126_v28 }
  0xac   : > { %5863 = vmatprep.subr.bf16.mxu0 %v5862_v12  ;;  %5985 = vmatpush3.bf16.msra.mxu1 %v5982_v26  ;;  %v5890_v52 = vpack.c.bf16 %v894_v49, %v893_v48  ;;  %v896_v54 = vld [vmem:[#allocation8 + $0xb8] sm:$0xff]  ;;  %v414_v55 = vld [vmem:[%s7222_s9 + $0x28] sm:$0xff]  ;;  %v415_v56 = vld [vmem:[%s7222_s9 + $0x30] sm:$0xff]  ;;  %723 = vst [vmem:[#allocation2 + $0x10] sm:$0x3] %v8126_v28 }
  0xad   : > { %5987 = vmatprep.subr.bf16.mxu1 %v5986_v32  ;;  %v5894_v57 = vpack.c.bf16 %v896_v54, %v895_v53  ;;  %v897_v58 = vld [vmem:[#allocation8 + $0xc0] sm:$0xff]  ;;  %v898_v59 = vld [vmem:[#allocation8 + $0xc8] sm:$0xff]  ;;  %v416_v60 = vld [vmem:[%s7222_s9 + $0x38] sm:$0xff]  ;;  %724 = vst [vmem:[#allocation2 + $0x18] sm:$0xff] %v8126_v28 }
  0xae   : > { %v417_v61 = vld [vmem:[%s7222_s9 + $0x40] sm:$0xff]  ;;  %v5898_v62 = vpack.c.bf16 %v898_v59, %v897_v58  ;;  %v899_v63 = vld [vmem:[#allocation8 + $0xd0] sm:$0xff]  ;;  %v900_v0 = vld [vmem:[#allocation8 + $0xd8] sm:$0xff]  ;;  %727 = vst [vmem:[#allocation2 + $0x30] sm:$0xff] %v8126_v28 }
  0xaf   : > { %5865 = vmatpush3.bf16.msra.mxu0 %v5862_v12  ;;  %v418_v1 = vld [vmem:[%s7222_s9 + $0x48] sm:$0xff]  ;;  %v419_v2 = vld [vmem:[%s7222_s9 + $0x50] sm:$0xff]  ;;  %v5902_v3 = vpack.c.bf16 %v900_v0, %v899_v63  ;;  %v420_v4 = vld [vmem:[%s7222_s9 + $0x58] sm:$0xff]  ;;  %728 = vst [vmem:[#allocation2 + $0x38] sm:$0xff] %v8126_v28 }
  0xb0   : > { %5867 = vmatprep.subr.bf16.mxu0 %v5866_v15  ;;  %5989 = vmatpush3.bf16.msra.mxu1 %v5986_v32  ;;  %v421_v5 = vld [vmem:[%s7222_s9 + $0x60] sm:$0xff]  ;;  %v422_v6 = vld [vmem:[%s7222_s9 + $0x68] sm:$0xff]  ;;  %v423_v7 = vld [vmem:[%s7222_s9 + $0x70] sm:$0xff]  ;;  %729 = vst [vmem:[#allocation2 + $0x40] sm:$0x3] %v8126_v28 }
  0xb1   : > { %5991 = vmatprep.subr.bf16.mxu1 %v5990_v38  ;;  %v424_v8 = vld [vmem:[%s7222_s9 + $0x78] sm:$0xff]  ;;  %v425_v9 = vld [vmem:[%s7222_s9 + $0x80] sm:$0xff]  ;;  %v426_v10 = vld [vmem:[%s7222_s9 + $0x88] sm:$0xff]  ;;  %730 = vst [vmem:[#allocation2 + $0x48] sm:$0xff] %v8126_v28 }
  0xb2   : > { %v427_v11 = vld [vmem:[%s7222_s9 + $0x90] sm:$0xff]  ;;  %v428_v12 = vld [vmem:[%s7222_s9 + $0x98] sm:$0xff]  ;;  %v429_v13 = vld [vmem:[%s7222_s9 + $0xa0] sm:$0xff]  ;;  %731 = vst [vmem:[#allocation2 + $0x50] sm:$0xff] %v8126_v28 }
  0xb3   : > { %5869 = vmatpush3.bf16.msra.mxu0 %v5866_v15  ;;  %v430_v14 = vld [vmem:[%s7222_s9 + $0xa8] sm:$0xff]  ;;  %v431_v15 = vld [vmem:[%s7222_s9 + $0xb0] sm:$0xff]  ;;  %v432_v16 = vld [vmem:[%s7222_s9 + $0xb8] sm:$0xff]  ;;  %732 = vst [vmem:[#allocation2 + $0x58] sm:$0x3] %v8126_v28 }
  0xb4   : > { %5871 = vmatprep.subr.bf16.mxu0 %v5870_v19  ;;  %5993 = vmatpush3.bf16.msra.mxu1 %v5990_v38  ;;  %v433_v17 = vld [vmem:[%s7222_s9 + $0xc0] sm:$0xff]  ;;  %v434_v18 = vld [vmem:[%s7222_s9 + $0xc8] sm:$0xff]  ;;  %v436_v20 = vld [vmem:[%s7222_s9 + $0xd8] sm:$0xff]  ;;  %733 = vst [vmem:[#allocation2 + $0x60] sm:$0xff] %v8126_v28 }
  0xb5   : > { %5995 = vmatprep.subr.bf16.mxu1 %v5994_v44  ;;  %v437_v21 = vld [vmem:[%s7222_s9 + $0xe0] sm:$0xff]  ;;  %v438_v22 = vld [vmem:[%s7222_s9 + $0xe8] sm:$0xff]  ;;  %v439_v23 = vld [vmem:[%s7222_s9 + $0xf0] sm:$0xff]  ;;  %734 = vst [vmem:[#allocation2 + $0x68] sm:$0xff] %v8126_v28 }
  0xb6   : > { %v440_v24 = vld [vmem:[%s7222_s9 + $0xf8] sm:$0xff]  ;;  %v901_v25 = vld [vmem:[#allocation8 + $0xe0] sm:$0xff]  ;;  %v902_v26 = vld [vmem:[#allocation8 + $0xe8] sm:$0xff]  ;;  %735 = vst [vmem:[#allocation2 + $0x70] sm:$0x3] %v8126_v28 }
  0xb7   : > { %5873 = vmatpush3.bf16.msra.mxu0 %v5870_v19  ;;  %v435_v19 = vld [vmem:[%s7222_s9 + $0xd0] sm:$0xff]  ;;  %v5906_v27 = vpack.c.bf16 %v902_v26, %v901_v25  ;;  %736 = vst [vmem:[#allocation2 + $0x78] sm:$0xff] %v8126_v28  ;;  %737 = vst [vmem:[#allocation2 + $0x80] sm:$0xff] %v8126_v28  ;;  %v904_v30 = vld [vmem:[#allocation8 + $0xf8] sm:$0xff] }
  0xb8   : > { %5875 = vmatprep.subr.bf16.mxu0 %v5874_v29  ;;  %5997 = vmatpush3.bf16.msra.mxu1 %v5994_v44  ;;  %738 = vst [vmem:[#allocation2 + $0x88] sm:$0x3] %v8126_v28  ;;  %739 = vst [vmem:[#allocation2 + $0x90] sm:$0xff] %v8126_v28  ;;  %v1704_v32 = vld [vmem:[#allocation8 + $0x1d0] sm:$0xff]  ;;  %v1705_v33 = vld [vmem:[#allocation8 + $0x1d8] sm:$0xff] }
  0xb9   : > { %740 = vst [vmem:[#allocation2 + $0x98] sm:$0xff] %v8126_v28  ;;  %741 = vst [vmem:[#allocation2 + $0xa0] sm:$0x3] %v8126_v28  ;;  %v5998_v34 = vpack.c.bf16 %v1705_v33, %v1704_v32  ;;  %v857_v36 = vld [vmem:[#allocation2 + $0x9] sm:$0xff]  ;;  %v1707_v38 = vld [vmem:[#allocation8 + $0x1e8] sm:$0xff] }
  0xba   : > { %742 = vst [vmem:[#allocation2 + $0xa8] sm:$0xff] %v8126_v28  ;;  %743 = vst [vmem:[#allocation2 + $0xb0] sm:$0xff] %v8126_v28  ;;  %v1706_v37 = vld [vmem:[#allocation8 + $0x1e0] sm:$0xff]  ;;  %v1708_v40 = vld [vmem:[#allocation8 + $0x1f0] sm:$0xff] }
  0xbb   : > { %5877 = vmatpush3.bf16.msra.mxu0 %v5874_v29  ;;  %744 = vst [vmem:[#allocation2 + $0xb8] sm:$0x3] %v8126_v28  ;;  %745 = vst [vmem:[#allocation2 + $0xc0] sm:$0xff] %v8126_v28  ;;  %v903_v29 = vld [vmem:[#allocation8 + $0xf0] sm:$0xff]  ;;  %5999 = vmatprep.subr.bf16.mxu1 %v5998_v34  ;;  %v6002_v39 = vpack.c.bf16 %v1707_v38, %v1706_v37  ;;  %v2000_v43 = vld [vmem:[#allocation8 + $0x200] sm:$0xff] }
  0xbc   : > { %5879 = vmatprep.subr.bf16.mxu0 %v5878_v35  ;;  %746 = vst [vmem:[#allocation2 + $0xc8] sm:$0xff] %v8126_v28  ;;  %747 = vst [vmem:[#allocation2 + $0xd0] sm:$0x3] %v8126_v28  ;;  %v5910_v31 = vpack.c.bf16 %v904_v30, %v903_v29  ;;  %6001 = vmatpush3.bf16.msra.mxu1 %v5998_v34  ;;  %v2001_v44 = vld [vmem:[#allocation8 + $0x208] sm:$0xff]  ;;  %v842_v49 = vld [vmem:[#allocation8 + $0x10] sm:$0xff] }
  0xbd   : > { %748 = vst [vmem:[#allocation2 + $0xd8] sm:$0xff] %v8126_v28  ;;  %749 = vst [vmem:[#allocation2 + $0xe0] sm:$0xff] %v8126_v28  ;;  %6003 = vmatprep.subr.bf16.mxu1 %v6002_v39  ;;  %v845_v53 = vld [vmem:[#allocation8 + $0x28] sm:$0xff]  ;;  %v848_v58 = vld [vmem:[#allocation8 + $0x40] sm:$0xff] }
  0xbe   : > { %750 = vst [vmem:[#allocation2 + $0xe8] sm:$0x3] %v8126_v28  ;;  %751 = vst [vmem:[#allocation2 + $0xf0] sm:$0xff] %v8126_v28  ;;  %v849_v59 = vld [vmem:[#allocation8 + $0x48] sm:$0xff]  ;;  %v852_v0 = vld [vmem:[#allocation8 + $0x60] sm:$0xff] }
  0xbf   : > { %5881 = vmatpush3.bf16.msra.mxu0 %v5878_v35  ;;  %752 = vst [vmem:[#allocation2 + $0xf8] sm:$0xff] %v8126_v28  ;;  %753 = vst [vmem:[#allocation2 + $0x100] sm:$0x3] %v8126_v28  ;;  %v856_v35 = vld [vmem:[#allocation2 + $0x1] sm:$0xff]  ;;  %v2004_v38 = vld [vmem:[#allocation8 + $0x220] sm:$0xff] }
  0xc0   : > { %5883 = vmatprep.subr.bf16.mxu0 %v5882_v41  ;;  %754 = vst [vmem:[#allocation2 + $0x108] sm:$0xff] %v8126_v28  ;;  %755 = vst [vmem:[#allocation2 + $0x110] sm:$0xff] %v8126_v28  ;;  %6005 = vmatpush3.bf16.msra.mxu1 %v6002_v39  ;;  %v2002_v26 = vld [vmem:[#allocation8 + $0x210] sm:$0xff]  ;;  %v2005_v39 = vld [vmem:[#allocation8 + $0x228] sm:$0xff] }
  0xc1   : > { %756 = vst [vmem:[#allocation2 + $0x118] sm:$0x3] %v8126_v28  ;;  %757 = vst [vmem:[#allocation2 + $0x120] sm:$0xff] %v8126_v28 }
  0xc2   : > { %4923 = vmatmul.mubr.f32.vlgmr.msra.gmra.mrb[0].mxu0 %v410_v45  ;;  %758 = vst [vmem:[#allocation2 + $0x128] sm:$0xff] %v8126_v28  ;;  %759 = vst [vmem:[#allocation2 + $0x130] sm:$0x3] %v8126_v28  ;;  %v7322_v45 = vpack.c.bf16 %v2001_v44, %v2000_v43 }
  0xc3   : > { %4925 = vmatprep.mubr.f32.mxu0 %v411_v46  ;;  %5885 = vmatpush3.bf16.msra.mxu0 %v5882_v41  ;;  %760 = vst [vmem:[#allocation2 + $0x138] sm:$0xff] %v8126_v28  ;;  %761 = vst [vmem:[#allocation2 + $0x140] sm:$0xff] %v8126_v28  ;;  %v1709_v41 = vld [vmem:[#allocation8 + $0x1f8] sm:$0xff]  ;;  %v840_v46 = vld [vmem:[#allocation8] sm:$0xff] }
  0xc4   : > { %5887 = vmatprep.subr.bf16.mxu0 %v5886_v47  ;;  %762 = vst [vmem:[#allocation2 + $0x148] sm:$0x3] %v8126_v28  ;;  %763 = vst [vmem:[#allocation2 + $0x150] sm:$0xff] %v8126_v28  ;;  %v6006_v42 = vpack.c.bf16 %v1709_v41, %v1708_v40 }
  0xc5   : > { %764 = vst [vmem:[#allocation2 + $0x158] sm:$0xff] %v8126_v28  ;;  %765 = vst [vmem:[#allocation2 + $0x160] sm:$0x3] %v8126_v28 }
  0xc6   : > { %4926 = vmatmul.mubr.f32.gmra.mrb[2].mxu0 %v412_v50  ;;  %766 = vst [vmem:[#allocation2 + $0x168] sm:$0xff] %v8126_v28  ;;  %767 = vst [vmem:[#allocation2 + $0x170] sm:$0xff] %v8126_v28  ;;  %6007 = vmatprep.subr.bf16.mxu1 %v6006_v42  ;;  %v843_v50 = vld [vmem:[#allocation8 + $0x18] sm:$0xff] }
  0xc7   : > { %4928 = vmatprep.mubr.f32.mxu0 %v413_v51  ;;  %5889 = vmatpush3.bf16.msra.mxu0 %v5886_v47  ;;  %768 = vst [vmem:[#allocation2 + $0x178] sm:$0x3] %v8126_v28  ;;  %769 = vst [vmem:[#allocation2 + $0x180] sm:$0xff] %v8126_v28  ;;  %v841_v47 = vld [vmem:[#allocation8 + $0x8] sm:$0xff]  ;;  %v5918_v51 = vpack.c.bf16 %v843_v50, %v842_v49  ;;  %v2007_v50 = vld [vmem:[#allocation8 + $0x238] sm:$0xff] }
  0xc8   : > { %5891 = vmatprep.subr.bf16.mxu0 %v5890_v52  ;;  %770 = vst [vmem:[#allocation2 + $0x188] sm:$0xff] %v8126_v28  ;;  %771 = vst [vmem:[#allocation2 + $0x190] sm:$0x3] %v8126_v28  ;;  %6009 = vmatpush3.bf16.msra.mxu1 %v6006_v42  ;;  %v5914_v48 = vpack.c.bf16 %v841_v47, %v840_v46 }
  0xc9   : > { %772 = vst [vmem:[#allocation2 + $0x198] sm:$0xff] %v8126_v28  ;;  %773 = vst [vmem:[#allocation2 + $0x1a0] sm:$0xff] %v8126_v28  ;;  %6011 = vmatprep.subr.bf16.mxu1 %v7322_v45 }
  0xca   : > { %4929 = vmatmul.mubr.f32.gmra.mrb[4].mxu0 %v414_v55  ;;  %774 = vst [vmem:[#allocation2 + $0x1a8] sm:$0x3] %v8126_v28  ;;  %v846_v55 = vld [vmem:[#allocation8 + $0x30] sm:$0xff] }
  0xcb   : > { %4931 = vmatprep.mubr.f32.mxu0 %v415_v56  ;;  %5893 = vmatpush3.bf16.msra.mxu0 %v5890_v52  ;;  %v844_v52 = vld [vmem:[#allocation8 + $0x20] sm:$0xff]  ;;  %v847_v56 = vld [vmem:[#allocation8 + $0x38] sm:$0xff] }
  0xcc   : > { %5895 = vmatprep.subr.bf16.mxu0 %v5894_v57  ;;  %v5922_v54 = vpack.c.bf16 %v845_v53, %v844_v52 }
  0xce   : > { %4932 = vmatmul.mubr.f32.gmra.mrb[6].mxu0 %v416_v60  ;;  %v5930_v60 = vpack.c.bf16 %v849_v59, %v848_v58 }
  0xcf   : > { %4934 = vmatprep.mubr.f32.mxu0 %v417_v61  ;;  %5897 = vmatpush3.bf16.msra.mxu0 %v5894_v57  ;;  %v5926_v57 = vpack.c.bf16 %v847_v56, %v846_v55  ;;  %v850_v61 = vld [vmem:[#allocation8 + $0x50] sm:$0xff] }
  0xd0   : > { %5899 = vmatprep.subr.bf16.mxu0 %v5898_v62 }
  0xd2   : > { %4935 = vmatmul.mubr.f32.gmra.mrb[8].mxu0 %v418_v1  ;;  %v853_v1 = vld [vmem:[#allocation8 + $0x68] sm:$0xff] }
  0xd3   : > { %4937 = vmatprep.mubr.f32.mxu0 %v419_v2  ;;  %5901 = vmatpush3.bf16.msra.mxu0 %v5898_v62  ;;  %v851_v62 = vld [vmem:[#allocation8 + $0x58] sm:$0xff]  ;;  %v5938_v2 = vpack.c.bf16 %v853_v1, %v852_v0 }
  0xd4   : > { %5903 = vmatprep.subr.bf16.mxu0 %v5902_v3  ;;  %v5934_v63 = vpack.c.bf16 %v851_v62, %v850_v61  ;;  %v2009_v61 = vld [vmem:[#allocation8 + $0x248] sm:$0xff] }
  0xd6   : > { %4938 = vmatmul.mubr.f32.gmra.mrb[10].mxu0 %v420_v4  ;;  %v855_v4 = vld [vmem:[#allocation8 + $0x78] sm:$0xff] }
  0xd7   : > { %4940 = vmatprep.mubr.f32.mxu0 %v421_v5  ;;  %5905 = vmatpush3.bf16.msra.mxu0 %v5902_v3  ;;  %v854_v3 = vld [vmem:[#allocation8 + $0x70] sm:$0xff] }
  0xd8   : > { %5907 = vmatprep.subr.bf16.mxu0 %v5906_v27  ;;  %v5942_v5 = vpack.c.bf16 %v855_v4, %v854_v3 }
  0xda   : > { %4941 = vmatmul.mubr.f32.gmra.mrb[12].mxu0 %v422_v6  ;;  %v1388_v6 = vld [vmem:[#allocation8 + $0x100] sm:$0xff] }
  0xdb   : > { %4943 = vmatprep.mubr.f32.mxu0 %v423_v7  ;;  %5909 = vmatpush3.bf16.msra.mxu0 %v5906_v27  ;;  %v1389_v7 = vld [vmem:[#allocation8 + $0x108] sm:$0xff]  ;;  %v2003_v27 = vld [vmem:[#allocation8 + $0x218] sm:$0xff] }
  0xdc   : > { %5911 = vmatprep.subr.bf16.mxu0 %v5910_v31 }
  0xde   : > { %4944 = vmatmul.mubr.f32.gmra.mrb[14].mxu0 %v424_v8  ;;  %v7325_v8 = vpack.c.bf16 %v1389_v7, %v1388_v6  ;;  %v2010_v7 = vld [vmem:[#allocation8 + $0x250] sm:$0xff] }
  0xdf   : > { %4946 = vmatprep.mubr.f32.mxu0 %v425_v9  ;;  %5913 = vmatpush3.bf16.msra.mxu0 %v5910_v31  ;;  %v7331_v9 = vld [vmem:[%s8112_s2] ss:$0 sm:$0xff] }
  0xe0   : > { %5915 = vmatprep.subr.bf16.mxu0 %v5914_v48 }
  0xe2   : > { %4947 = vmatmul.mubr.f32.gmra.mrb[16].mxu0 %v426_v10 }
  0xe3   : > { %4949 = vmatprep.mubr.f32.mxu0 %v427_v11 }
  0xe6   : > { %4950 = vmatmul.mubr.f32.gmra.mrb[18].mxu0 %v428_v12 }
  0xe7   : > { %4952 = vmatprep.mubr.f32.mxu0 %v429_v13 }
  0xea   : > { %4953 = vmatmul.mubr.f32.gmra.mrb[20].mxu0 %v430_v14 }
  0xeb   : > { %4955 = vmatprep.mubr.f32.mxu0 %v431_v15 }
  0xee   : > { %4956 = vmatmul.mubr.f32.gmra.mrb[22].mxu0 %v432_v16 }
  0xef   : > { %4958 = vmatprep.mubr.f32.mxu0 %v433_v17 }
  0xf2   : > { %4959 = vmatmul.mubr.f32.gmra.mrb[24].mxu0 %v434_v18 }
  0xf3   : > { %4961 = vmatprep.mubr.f32.mxu0 %v435_v19 }
  0xf6   : > { %4962 = vmatmul.mubr.f32.gmra.mrb[26].mxu0 %v436_v20 }
  0xf7   : > { %4964 = vmatprep.mubr.f32.mxu0 %v437_v21 }
  0xfa   : > { %4965 = vmatmul.mubr.f32.gmra.mrb[28].mxu0 %v438_v22 }
  0xfb   : > { %4967 = vmatprep.mubr.f32.mxu0 %v439_v23 }
  0xfe   : > { %4968 = vmatmul.mubr.f32.gmra.mrb[30].mxu0 %v440_v24 }
  0xff   : > { %5002 = vmatprep.mubr.f32.mxu0 %v856_v35 }
 0x102   : > { %5003 = vmatmul.mubr.f32.vlgmr.msra.gmra.mrb[32].mxu0 %v857_v36  ;;  %v6014_v36 = vpack.c.bf16 %v2003_v27, %v2002_v26 }
 0x103   : > { %5917 = vmatpush3.bf16.msra.mxu0 %v5914_v48  ;;  %v6018_v48 = vpack.c.bf16 %v2005_v39, %v2004_v38 }
 0x104   : > { %5919 = vmatprep.subr.bf16.mxu0 %v5918_v51 }
 0x107   : > { %5921 = vmatpush3.bf16.msra.mxu0 %v5918_v51 }
 0x108   : > { %5923 = vmatprep.subr.bf16.mxu0 %v5922_v54 }
 0x10b   : > { %5925 = vmatpush3.bf16.msra.mxu0 %v5922_v54 }
 0x10c   : > { %5927 = vmatprep.subr.bf16.mxu0 %v5926_v57 }
 0x10f   : > { %5929 = vmatpush3.bf16.msra.mxu0 %v5926_v57 }
 0x110   : > { %5931 = vmatprep.subr.bf16.mxu0 %v5930_v60 }
 0x113   : > { %5933 = vmatpush3.bf16.msra.mxu0 %v5930_v60  ;;  %v2008_v60 = vld [vmem:[#allocation8 + $0x240] sm:$0xff] }
 0x114   : > { %5935 = vmatprep.subr.bf16.mxu0 %v5934_v63 }
 0x117   : > { %5937 = vmatpush3.bf16.msra.mxu0 %v5934_v63 }
 0x118   : > { %5939 = vmatprep.subr.bf16.mxu0 %v5938_v2 }
 0x11b   : > { %5941 = vmatpush3.bf16.msra.mxu0 %v5938_v2 }
 0x11c   : > { %5943 = vmatprep.subr.bf16.mxu0 %v5942_v5 }
 0x11f   : > { %5945 = vmatpush3.bf16.msra.mxu0 %v5942_v5  ;;  %v6026_v5 = vpack.c.bf16 %v2009_v61, %v2008_v60  ;;  %v2307_v60 = vld [vmem:[#allocation8 + $0x288] sm:$0xff] }
 0x120   : > { %5947 = vmatprep.subr.bf16.mxu0 %v7325_v8 }
 0x195   : > { %v4924_v10 = vpop.f32.mrb[0].mxu0 }
 0x196   : > { %v536_v11 = vadd.f32 %v4924_v10, %v7331_v9  ;;  %v530_v12 = vpop.f32.mrb[1].mxu0  ;;  %v2011_v10 = vld [vmem:[#allocation8 + $0x258] sm:$0xff] }
 0x197   : > { %v531_v13 = vadd.f32 %v7331_v9, %v530_v12 }
 0x198   : > { %v7335_v14 = vmax.f32 %v536_v11, 0.0 }
 0x199   : > { %v7337_v15 = vmax.f32 %v531_v13, 0.0  ;;  %v4927_v16 = vpop.f32.mrb[2].mxu0 }
 0x19a   : > { %777 = vst [vmem:[#allocation2 + $0x21] sm:$0xff] %v7335_v14  ;;  %v546_v17 = vadd.f32 %v4927_v16, %v7331_v9  ;;  %v540_v18 = vpop.f32.mrb[3].mxu0 }
 0x19b   : > { %776 = vst [vmem:[#allocation2 + $0x19] sm:$0xff] %v7337_v15  ;;  %v541_v19 = vadd.f32 %v7331_v9, %v540_v18  ;;  %5005 = vmatprep.mubr.f32.mxu0 %v7337_v15 }
 0x19c   : > { %v7344_v20 = vmax.f32 %v546_v17, 0.0  ;;  %5006 = vmatmul.mubr.f32.gmra.mrb[34].mxu0 %v7335_v14 }
 0x19d   : > { %v7347_v21 = vmax.f32 %v541_v19, 0.0  ;;  %v4930_v22 = vpop.f32.mrb[4].mxu0 }
 0x19e   : > { %779 = vst [vmem:[#allocation2 + $0x39] sm:$0xff] %v7344_v20  ;;  %v556_v23 = vadd.f32 %v4930_v22, %v7331_v9  ;;  %v550_v24 = vpop.f32.mrb[5].mxu0  ;;  %v6030_v22 = vpack.c.bf16 %v2011_v10, %v2010_v7 }
 0x19f   : > { %778 = vst [vmem:[#allocation2 + $0x31] sm:$0xff] %v7347_v21  ;;  %v551_v25 = vadd.f32 %v7331_v9, %v550_v24  ;;  %5008 = vmatprep.mubr.f32.mxu0 %v7347_v21  ;;  %v2012_v24 = vld [vmem:[#allocation8 + $0x260] sm:$0xff] }
 0x1a0   : > { %v7354_v29 = vmax.f32 %v556_v23, 0.0  ;;  %5009 = vmatmul.mubr.f32.gmra.mrb[36].mxu0 %v7344_v20 }
 0x1a1   : > { %v7357_v30 = vmax.f32 %v551_v25, 0.0  ;;  %v4933_v31 = vpop.f32.mrb[6].mxu0  ;;  %v2013_v25 = vld [vmem:[#allocation8 + $0x268] sm:$0xff] }
 0x1a2   : > { %781 = vst [vmem:[#allocation2 + $0x51] sm:$0xff] %v7354_v29  ;;  %v566_v32 = vadd.f32 %v4933_v31, %v7331_v9  ;;  %v560_v33 = vpop.f32.mrb[7].mxu0  ;;  %v7361_v34 = vld [vmem:[#allocation2 + $0x18] sm:$0xff]  ;;  %v7363_v35 = vld [vmem:[#allocation2 + $0x20] sm:$0xff]  ;;  %v6034_v38 = vpack.c.bf16 %v2013_v25, %v2012_v24 }
 0x1a3   : > { %780 = vst [vmem:[#allocation2 + $0x49] sm:$0xff] %v7357_v30  ;;  %v561_v37 = vadd.f32 %v7331_v9, %v560_v33  ;;  %5242 = vmatprep.mubr.f32.mxu1 %v7361_v34  ;;  %5011 = vmatprep.mubr.f32.mxu0 %v7357_v30 }
 0x1a4   : > { %v7369_v40 = vmax.f32 %v566_v32, 0.0  ;;  %5243 = vmatmul.mubr.f32.vlgmr.msra.gmra.mrb[0].mxu1 %v7363_v35  ;;  %5012 = vmatmul.mubr.f32.gmra.mrb[38].mxu0 %v7354_v29 }
 0x1a5   : > { %v7373_v41 = vmax.f32 %v561_v37, 0.0  ;;  %6013 = vmatpush3.bf16.msra.mxu1 %v7322_v45  ;;  %v4936_v42 = vpop.f32.mrb[8].mxu0  ;;  %v2006_v45 = vld [vmem:[#allocation8 + $0x230] sm:$0xff] }
 0x1a6   : > { %783 = vst [vmem:[#allocation2 + $0x69] sm:$0xff] %v7369_v40  ;;  %v576_v43 = vadd.f32 %v4936_v42, %v7331_v9  ;;  %v570_v44 = vpop.f32.mrb[9].mxu0  ;;  %v7378_v46 = vld [vmem:[#allocation2 + $0x30] sm:$0xff]  ;;  %v7380_v47 = vld [vmem:[#allocation2 + $0x38] sm:$0xff]  ;;  %6015 = vmatprep.subr.bf16.mxu1 %v6014_v36  ;;  %v6022_v58 = vpack.c.bf16 %v2007_v50, %v2006_v45  ;;  %v2014_v42 = vld [vmem:[#allocation8 + $0x270] sm:$0xff] }
 0x1a7   : > { %782 = vst [vmem:[#allocation2 + $0x61] sm:$0xff] %v7373_v41  ;;  %v571_v49 = vadd.f32 %v7331_v9, %v570_v44  ;;  %5245 = vmatprep.mubr.f32.mxu1 %v7378_v46  ;;  %5014 = vmatprep.mubr.f32.mxu0 %v7373_v41 }
 0x1a8   : > { %v7386_v51 = vmax.f32 %v576_v43, 0.0  ;;  %5246 = vmatmul.mubr.f32.gmra.mrb[2].mxu1 %v7380_v47  ;;  %5015 = vmatmul.mubr.f32.gmra.mrb[40].mxu0 %v7369_v40  ;;  %v2015_v43 = vld [vmem:[#allocation8 + $0x278] sm:$0xff] }
 0x1a9   : > { %v7390_v52 = vmax.f32 %v571_v49, 0.0  ;;  %v4939_v53 = vpop.f32.mrb[10].mxu0  ;;  %6017 = vmatpush3.bf16.msra.mxu1 %v6014_v36 }
 0x1aa   : > { %785 = vst [vmem:[#allocation2 + $0x81] sm:$0xff] %v7386_v51  ;;  %v586_v54 = vadd.f32 %v4939_v53, %v7331_v9  ;;  %v580_v55 = vpop.f32.mrb[11].mxu0  ;;  %v7394_v56 = vld [vmem:[#allocation2 + $0x48] sm:$0xff]  ;;  %v7396_v57 = vld [vmem:[#allocation2 + $0x50] sm:$0xff]  ;;  %6019 = vmatprep.subr.bf16.mxu1 %v6018_v48 }
 0x1ab   : > { %784 = vst [vmem:[#allocation2 + $0x79] sm:$0xff] %v7390_v52  ;;  %v581_v59 = vadd.f32 %v7331_v9, %v580_v55  ;;  %5248 = vmatprep.mubr.f32.mxu1 %v7394_v56  ;;  %5017 = vmatprep.mubr.f32.mxu0 %v7390_v52  ;;  %v6038_v55 = vpack.c.bf16 %v2015_v43, %v2014_v42 }
 0x1ac   : > { %v7402_v62 = vmax.f32 %v586_v54, 0.0  ;;  %5249 = vmatmul.mubr.f32.gmra.mrb[4].mxu1 %v7396_v57  ;;  %5018 = vmatmul.mubr.f32.gmra.mrb[42].mxu0 %v7386_v51 }
 0x1ad   : > { %v7406_v63 = vmax.f32 %v581_v59, 0.0  ;;  %v4942_v0 = vpop.f32.mrb[12].mxu0  ;;  %6021 = vmatpush3.bf16.msra.mxu1 %v6018_v48  ;;  %v2306_v59 = vld [vmem:[#allocation8 + $0x280] sm:$0xff] }
 0x1ae   : > { %787 = vst [vmem:[#allocation2 + $0x99] sm:$0xff] %v7402_v62  ;;  %v596_v1 = vadd.f32 %v4942_v0, %v7331_v9  ;;  %v590_v2 = vpop.f32.mrb[13].mxu0  ;;  %v7410_v3 = vld [vmem:[#allocation2 + $0x60] sm:$0xff]  ;;  %v7412_v4 = vld [vmem:[#allocation2 + $0x68] sm:$0xff]  ;;  %6023 = vmatprep.subr.bf16.mxu1 %v6022_v58  ;;  %v7478_v10 = vpack.c.bf16 %v2307_v60, %v2306_v59 }
 0x1af   : > { %786 = vst [vmem:[#allocation2 + $0x91] sm:$0xff] %v7406_v63  ;;  %v591_v6 = vadd.f32 %v7331_v9, %v590_v2  ;;  %5251 = vmatprep.mubr.f32.mxu1 %v7410_v3  ;;  %5020 = vmatprep.mubr.f32.mxu0 %v7406_v63 }
 0x1b0   : > { %v7418_v11 = vmax.f32 %v596_v1, 0.0  ;;  %5252 = vmatmul.mubr.f32.gmra.mrb[6].mxu1 %v7412_v4  ;;  %5021 = vmatmul.mubr.f32.gmra.mrb[44].mxu0 %v7402_v62 }
 0x1b1   : > { %v7422_v12 = vmax.f32 %v591_v6, 0.0  ;;  %v4945_v13 = vpop.f32.mrb[14].mxu0  ;;  %6025 = vmatpush3.bf16.msra.mxu1 %v6022_v58 }
 0x1b2   : > { %789 = vst [vmem:[#allocation2 + $0xb1] sm:$0xff] %v7418_v11  ;;  %v606_v16 = vadd.f32 %v4945_v13, %v7331_v9  ;;  %v600_v17 = vpop.f32.mrb[15].mxu0  ;;  %v7426_v18 = vld [vmem:[#allocation2 + $0x78] sm:$0xff]  ;;  %v7428_v19 = vld [vmem:[#allocation2 + $0x80] sm:$0xff]  ;;  %6027 = vmatprep.subr.bf16.mxu1 %v6026_v5 }
 0x1b3   : > { %788 = vst [vmem:[#allocation2 + $0xa9] sm:$0xff] %v7422_v12  ;;  %v601_v23 = vadd.f32 %v7331_v9, %v600_v17  ;;  %5254 = vmatprep.mubr.f32.mxu1 %v7426_v18  ;;  %5023 = vmatprep.mubr.f32.mxu0 %v7422_v12 }
 0x1b4   : > { %v7434_v26 = vmax.f32 %v606_v16, 0.0  ;;  %5255 = vmatmul.mubr.f32.gmra.mrb[8].mxu1 %v7428_v19  ;;  %5024 = vmatmul.mubr.f32.gmra.mrb[46].mxu0 %v7418_v11 }
 0x1b5   : > { %v7438_v27 = vmax.f32 %v601_v23, 0.0  ;;  %v4948_v31 = vpop.f32.mrb[16].mxu0  ;;  %6029 = vmatpush3.bf16.msra.mxu1 %v6026_v5 }
 0x1b6   : > { %791 = vst [vmem:[#allocation2 + $0xc9] sm:$0xff] %v7434_v26  ;;  %v616_v32 = vadd.f32 %v4948_v31, %v7331_v9  ;;  %v610_v33 = vpop.f32.mrb[17].mxu0  ;;  %v7442_v36 = vld [vmem:[#allocation2 + $0x90] sm:$0xff]  ;;  %v7444_v37 = vld [vmem:[#allocation2 + $0x98] sm:$0xff]  ;;  %6031 = vmatprep.subr.bf16.mxu1 %v6030_v22 }
 0x1b7   : > { %790 = vst [vmem:[#allocation2 + $0xc1] sm:$0xff] %v7438_v27  ;;  %v611_v39 = vadd.f32 %v7331_v9, %v610_v33  ;;  %5257 = vmatprep.mubr.f32.mxu1 %v7442_v36  ;;  %5026 = vmatprep.mubr.f32.mxu0 %v7438_v27 }
 0x1b8   : > { %v7450_v44 = vmax.f32 %v616_v32, 0.0  ;;  %5258 = vmatmul.mubr.f32.gmra.mrb[10].mxu1 %v7444_v37  ;;  %5027 = vmatmul.mubr.f32.gmra.mrb[48].mxu0 %v7434_v26 }
 0x1b9   : > { %v7454_v48 = vmax.f32 %v611_v39, 0.0  ;;  %v4951_v49 = vpop.f32.mrb[18].mxu0  ;;  %6033 = vmatpush3.bf16.msra.mxu1 %v6030_v22 }
 0x1ba   : > { %793 = vst [vmem:[#allocation2 + $0xe1] sm:$0xff] %v7450_v44  ;;  %v626_v45 = vadd.f32 %v4951_v49, %v7331_v9  ;;  %v620_v50 = vpop.f32.mrb[19].mxu0  ;;  %v7458_v53 = vld [vmem:[#allocation2 + $0xa8] sm:$0xff]  ;;  %v7460_v54 = vld [vmem:[#allocation2 + $0xb0] sm:$0xff]  ;;  %6035 = vmatprep.subr.bf16.mxu1 %v6034_v38 }
 0x1bb   : > { %792 = vst [vmem:[#allocation2 + $0xd9] sm:$0xff] %v7454_v48  ;;  %v621_v58 = vadd.f32 %v7331_v9, %v620_v50  ;;  %5260 = vmatprep.mubr.f32.mxu1 %v7458_v53  ;;  %5029 = vmatprep.mubr.f32.mxu0 %v7454_v48 }
 0x1bc   : > { %v7466_v61 = vmax.f32 %v626_v45, 0.0  ;;  %5261 = vmatmul.mubr.f32.gmra.mrb[12].mxu1 %v7460_v54  ;;  %5030 = vmatmul.mubr.f32.gmra.mrb[50].mxu0 %v7450_v44 }
 0x1bd   : > { %v7470_v0 = vmax.f32 %v621_v58, 0.0  ;;  %v4954_v1 = vpop.f32.mrb[20].mxu0  ;;  %6037 = vmatpush3.bf16.msra.mxu1 %v6034_v38 }
 0x1be   : > { %795 = vst [vmem:[#allocation2 + $0xf9] sm:$0xff] %v7466_v61  ;;  %v636_v2 = vadd.f32 %v4954_v1, %v7331_v9  ;;  %v630_v5 = vpop.f32.mrb[21].mxu0  ;;  %v7474_v6 = vld [vmem:[#allocation2 + $0xc0] sm:$0xff]  ;;  %v7476_v7 = vld [vmem:[#allocation2 + $0xc8] sm:$0xff]  ;;  %6039 = vmatprep.subr.bf16.mxu1 %v6038_v55 }
 0x1bf   : > { %794 = vst [vmem:[#allocation2 + $0xf1] sm:$0xff] %v7470_v0  ;;  %v631_v13 = vadd.f32 %v7331_v9, %v630_v5  ;;  %5263 = vmatprep.mubr.f32.mxu1 %v7474_v6  ;;  %5032 = vmatprep.mubr.f32.mxu0 %v7470_v0 }
 0x1c0   : > { %v7484_v16 = vmax.f32 %v636_v2, 0.0  ;;  %5264 = vmatmul.mubr.f32.gmra.mrb[14].mxu1 %v7476_v7  ;;  %5033 = vmatmul.mubr.f32.gmra.mrb[52].mxu0 %v7466_v61 }
 0x1c1   : > { %v7488_v17 = vmax.f32 %v631_v13, 0.0  ;;  %v4957_v22 = vpop.f32.mrb[22].mxu0  ;;  %6041 = vmatpush3.bf16.msra.mxu1 %v6038_v55 }
 0x1c2   : > { %797 = vst [vmem:[#allocation2 + $0x111] sm:$0xff] %v7484_v16  ;;  %v646_v23 = vadd.f32 %v4957_v22, %v7331_v9  ;;  %v640_v24 = vpop.f32.mrb[23].mxu0  ;;  %v7492_v25 = vld [vmem:[#allocation2 + $0xd8] sm:$0xff]  ;;  %v7494_v31 = vld [vmem:[#allocation2 + $0xe0] sm:$0xff]  ;;  %6043 = vmatprep.subr.bf16.mxu1 %v7478_v10 }
 0x1c3   : > { %796 = vst [vmem:[#allocation2 + $0x109] sm:$0xff] %v7488_v17  ;;  %v641_v32 = vadd.f32 %v7331_v9, %v640_v24  ;;  %5266 = vmatprep.mubr.f32.mxu1 %v7492_v25  ;;  %5035 = vmatprep.mubr.f32.mxu0 %v7488_v17 }
 0x1c4   : > { %v7501_v33 = vmax.f32 %v646_v23, 0.0  ;;  %5267 = vmatmul.mubr.f32.gmra.mrb[16].mxu1 %v7494_v31  ;;  %5036 = vmatmul.mubr.f32.gmra.mrb[54].mxu0 %v7484_v16 }
 0x1c5   : > { %v7505_v38 = vmax.f32 %v641_v32, 0.0  ;;  %v4960_v39 = vpop.f32.mrb[24].mxu0 }
 0x1c6   : > { %8156 = vst [vmem:[#allocation19_spill] sm:$0xff] %v7501_v33  ;;  %799 = vst [vmem:[#allocation2 + $0x129] sm:$0xff] %v7501_v33  ;;  %v656_v42 = vadd.f32 %v4960_v39, %v7331_v9  ;;  %v650_v43 = vpop.f32.mrb[25].mxu0  ;;  %v7509_v49 = vld [vmem:[#allocation2 + $0xf0] sm:$0xff]  ;;  %v7511_v45 = vld [vmem:[#allocation2 + $0xf8] sm:$0xff] }
 0x1c7   : > { %798 = vst [vmem:[#allocation2 + $0x121] sm:$0xff] %v7505_v38  ;;  %v651_v50 = vadd.f32 %v7331_v9, %v650_v43  ;;  %5269 = vmatprep.mubr.f32.mxu1 %v7509_v49  ;;  %5038 = vmatprep.mubr.f32.mxu0 %v7505_v38 }
 0x1c8   : > { %v7517_v55 = vmax.f32 %v656_v42, 0.0  ;;  %5270 = vmatmul.mubr.f32.gmra.mrb[18].mxu1 %v7511_v45  ;;  %5039 = vmatmul.mubr.f32.gmra.mrb[56].mxu0 %v7501_v33  ;;  %v1393_v33 = vld [vmem:[#allocation8 + $0x128] sm:$0xff] }
 0x1c9   : > { %v7521_v58 = vmax.f32 %v651_v50, 0.0  ;;  %v4963_v59 = vpop.f32.mrb[26].mxu0 }
 0x1ca   : > { %8157 = vst [vmem:[#allocation20_spill] sm:$0xff] %v7517_v55  ;;  %801 = vst [vmem:[#allocation2 + $0x141] sm:$0xff] %v7517_v55  ;;  %v666_v60 = vadd.f32 %v4963_v59, %v7331_v9  ;;  %v660_v1 = vpop.f32.mrb[27].mxu0  ;;  %v7525_v2 = vld [vmem:[#allocation2 + $0x108] sm:$0xff]  ;;  %v7527_v5 = vld [vmem:[#allocation2 + $0x110] sm:$0xff] }
 0x1cb   : > { %8158 = vst [vmem:[#allocation21_spill] sm:$0xff] %v7521_v58  ;;  %800 = vst [vmem:[#allocation2 + $0x139] sm:$0xff] %v7521_v58  ;;  %v661_v13 = vadd.f32 %v7331_v9, %v660_v1  ;;  %5272 = vmatprep.mubr.f32.mxu1 %v7525_v2  ;;  %5041 = vmatprep.mubr.f32.mxu0 %v7521_v58  ;;  %v1392_v58 = vld [vmem:[#allocation8 + $0x120] sm:$0xff] }
 0x1cc   : > { %v7533_v22 = vmax.f32 %v666_v60, 0.0  ;;  %5273 = vmatmul.mubr.f32.gmra.mrb[20].mxu1 %v7527_v5  ;;  %5042 = vmatmul.mubr.f32.gmra.mrb[58].mxu0 %v7517_v55  ;;  %v8164_v55 = vmov 0.0  }
 0x1cd   : > { %v7537_v23 = vmax.f32 %v661_v13, 0.0  ;;  %v4966_v24 = vpop.f32.mrb[28].mxu0 }
 0x1ce   : > { %8159 = vst [vmem:[#allocation22_spill] sm:$0xff] %v7533_v22  ;;  %803 = vst [vmem:[#allocation2 + $0x159] sm:$0xff] %v7533_v22  ;;  %v676_v32 = vadd.f32 %v4966_v24, %v7331_v9  ;;  %v670_v39 = vpop.f32.mrb[29].mxu0  ;;  %v7541_v42 = vld [vmem:[#allocation2 + $0x120] sm:$0xff]  ;;  %v7543_v43 = vld [vmem:[#allocation2 + $0x128] sm:$0xff] }
 0x1cf   : > { %8160 = vst [vmem:[#allocation23_spill] sm:$0xff] %v7537_v23  ;;  %802 = vst [vmem:[#allocation2 + $0x151] sm:$0xff] %v7537_v23  ;;  %v671_v50 = vadd.f32 %v7331_v9, %v670_v39  ;;  %5275 = vmatprep.mubr.f32.mxu1 %v7541_v42  ;;  %5044 = vmatprep.mubr.f32.mxu0 %v7537_v23 }
 0x1d0   : > { %v7549_v59 = vmax.f32 %v676_v32, 0.0  ;;  %5276 = vmatmul.mubr.f32.gmra.mrb[22].mxu1 %v7543_v43  ;;  %5045 = vmatmul.mubr.f32.gmra.mrb[60].mxu0 %v7533_v22  ;;  %v1391_v22 = vld [vmem:[#allocation8 + $0x118] sm:$0xff] }
 0x1d1   : > { %v7553_v60 = vmax.f32 %v671_v50, 0.0  ;;  %v4969_v1 = vpop.f32.mrb[30].mxu0  ;;  %v1390_v50 = vld [vmem:[#allocation8 + $0x110] sm:$0xff] }
 0x1d2   : > { %805 = vst [vmem:[#allocation2 + $0x171] sm:$0xff] %v7549_v59  ;;  %v7557_v13 = vadd.f32 %v4969_v1, %v7331_v9  ;;  %v680_v24 = vpop.f32.mrb[31].mxu0  ;;  %v7559_v39 = vld [vmem:[#allocation2 + $0x138] sm:$0xff]  ;;  %v7561_v28 = vld [vmem:[#allocation2 + $0x140] sm:$0xff] }
 0x1d3   : > { %8161 = vst [vmem:[#allocation24_spill] sm:$0xff] %v7553_v60  ;;  %804 = vst [vmem:[#allocation2 + $0x169] sm:$0xff] %v7553_v60  ;;  %v7565_v32 = vadd.f32 %v7331_v9, %v680_v24  ;;  %5278 = vmatprep.mubr.f32.mxu1 %v7559_v39  ;;  %5047 = vmatprep.mubr.f32.mxu0 %v7553_v60  ;;  %v5950_v60 = vpack.c.bf16 %v1391_v22, %v1390_v50  ;;  %v1394_v50 = vld [vmem:[#allocation8 + $0x130] sm:$0xff] }
 0x1d4   : > { %8162 = vst [vmem:[#allocation25_spill] sm:$0xff] %v7557_v13  ;;  %v8134_v23 = vmax.f32 %v7557_v13, 0.0  ;;  %5279 = vmatmul.mubr.f32.gmra.mrb[24].mxu1 %v7561_v28  ;;  %5048 = vmatmul.mubr.f32.gmra.mrb[62].mxu0 %v7549_v59  ;;  %v5954_v22 = vpack.c.bf16 %v1393_v33, %v1392_v58  ;;  %v2309_v33 = vld [vmem:[#allocation8 + $0x298] sm:$0xff] }
 0x1d5   : > { %8163 = vst [vmem:[#allocation26_spill] sm:$0xff] %v7565_v32  ;;  %v8136_v1 = vmax.f32 %v7565_v32, 0.0  ;;  %5082 = vmatprep.mubr.f32.mxu0 %v8164_v55  ;;  %v1397_v32 = vld [vmem:[#allocation8 + $0x148] sm:$0xff] }
 0x1d6   : > { %807 = vst [vmem:[#allocation2 + $0x189] sm:$0xff] %v8134_v23  ;;  %v7576_v9 = vld [vmem:[#allocation2 + $0x150] sm:$0xff]  ;;  %v7578_v24 = vld [vmem:[#allocation2 + $0x158] sm:$0xff] }
 0x1d7   : > { %806 = vst [vmem:[#allocation2 + $0x181] sm:$0xff] %v8136_v1  ;;  %5281 = vmatprep.mubr.f32.mxu1 %v7576_v9  ;;  %v1395_v1 = vld [vmem:[#allocation8 + $0x138] sm:$0xff] }
 0x1d8   : > { %5282 = vmatmul.mubr.f32.gmra.mrb[26].mxu1 %v7578_v24  ;;  %5083 = vmatmul.mubr.f32.vlgmr.msra.gmra.mrb[32].mxu0 %v8164_v55  ;;  %v2308_v55 = vld [vmem:[#allocation8 + $0x290] sm:$0xff]  ;;  %v5958_v58 = vpack.c.bf16 %v1395_v1, %v1394_v50 }
 0x1d9   : > { %5085 = vmatprep.mubr.f32.mxu0 %v7361_v34  ;;  %5949 = vmatpush3.bf16.msra.mxu0 %v7325_v8  ;;  %v2320_v50 = vld [vmem:[#allocation8 + $0x2f0] sm:$0xff] }
 0x1da   : > { %v7587_v23 = vld [vmem:[#allocation2 + $0x168] sm:$0xff]  ;;  %v7589_v13 = vld [vmem:[#allocation2 + $0x170] sm:$0xff]  ;;  %5951 = vmatprep.subr.bf16.mxu0 %v5950_v60 }
 0x1db   : > { %5284 = vmatprep.mubr.f32.mxu1 %v7587_v23 }
 0x1dc   : > { %5285 = vmatmul.mubr.f32.gmra.mrb[28].mxu1 %v7589_v13  ;;  %5086 = vmatmul.mubr.f32.gmra.mrb[34].mxu0 %v7363_v35  ;;  %v6046_v35 = vpack.c.bf16 %v2309_v33, %v2308_v55  ;;  %v2617_v55 = vld [vmem:[#allocation8 + $0x320] sm:$0xff]  ;;  %v2618_v33 = vld [vmem:[#allocation8 + $0x328] sm:$0xff] }
 0x1dd   : > { %5088 = vmatprep.mubr.f32.mxu0 %v7378_v46  ;;  %5953 = vmatpush3.bf16.msra.mxu0 %v5950_v60  ;;  %v2310_v46 = vld [vmem:[#allocation8 + $0x2a0] sm:$0xff]  ;;  %v2311_v60 = vld [vmem:[#allocation8 + $0x2a8] sm:$0xff] }
 0x1de   : > { %v7595_v34 = vld [vmem:[#allocation2 + $0x180] sm:$0xff]  ;;  %v7597_v8 = vld [vmem:[#allocation2 + $0x188] sm:$0xff]  ;;  %5955 = vmatprep.subr.bf16.mxu0 %v5954_v22 }
 0x1df   : > { %8165 = vst [vmem:[#allocation27_spill] sm:$0xff] %v7595_v34  ;;  %5287 = vmatprep.mubr.f32.mxu1 %v7595_v34  ;;  %v1396_v34 = vld [vmem:[#allocation8 + $0x140] sm:$0xff] }
 0x1e0   : > { %5288 = vmatmul.mubr.f32.gmra.mrb[30].mxu1 %v7597_v8  ;;  %5089 = vmatmul.mubr.f32.gmra.mrb[36].mxu0 %v7380_v47  ;;  %v2312_v47 = vld [vmem:[#allocation8 + $0x2b0] sm:$0xff]  ;;  %v5962_v1 = vpack.c.bf16 %v1397_v32, %v1396_v34  ;;  %v2317_v32 = vld [vmem:[#allocation8 + $0x2d8] sm:$0xff]  ;;  %v7672_v34 = vld [vmem:[#allocation2 + $0x52] sm:$0xff] }
 0x1e1   : > { %5322 = vmatprep.mubr.f32.mxu1 %v7337_v15  ;;  %5091 = vmatprep.mubr.f32.mxu0 %v7394_v56  ;;  %v6050_v15 = vpack.c.bf16 %v2311_v60, %v2310_v46  ;;  %v2313_v56 = vld [vmem:[#allocation8 + $0x2b8] sm:$0xff]  ;;  %v2619_v60 = vld [vmem:[#allocation8 + $0x330] sm:$0xff] }
 0x1e2   : > { %5957 = vmatpush3.bf16.msra.mxu0 %v5954_v22  ;;  %v1403_v22 = vld [vmem:[#allocation8 + $0x178] sm:$0xff] }
 0x1e3   : > { %5959 = vmatprep.subr.bf16.mxu0 %v5958_v58  ;;  %v7679_v46 = vld [vmem:[#allocation2 + $0x6a] sm:$0xff] }
 0x1e4   : > { %5323 = vmatmul.mubr.f32.vlgmr.msra.gmra.mrb[0].mxu1 %v7335_v14  ;;  %5092 = vmatmul.mubr.f32.gmra.mrb[38].mxu0 %v7396_v57  ;;  %v6054_v14 = vpack.c.bf16 %v2313_v56, %v2312_v47  ;;  %v1399_v57 = vld [vmem:[#allocation8 + $0x158] sm:$0xff]  ;;  %v7684_v47 = vld [vmem:[#allocation2 + $0x7a] sm:$0xff] }
 0x1e5   : > { %6045 = vmatpush3.bf16.msra.mxu1 %v7478_v10  ;;  %5325 = vmatprep.mubr.f32.mxu1 %v7347_v21  ;;  %v1398_v21 = vld [vmem:[#allocation8 + $0x150] sm:$0xff]  ;;  %v2315_v10 = vld [vmem:[#allocation8 + $0x2c8] sm:$0xff] }
 0x1e6   : > { %6047 = vmatprep.subr.bf16.mxu1 %v6046_v35  ;;  %5094 = vmatprep.mubr.f32.mxu0 %v7410_v3  ;;  %v2314_v3 = vld [vmem:[#allocation8 + $0x2c0] sm:$0xff] }
 0x1e7   : > { %5961 = vmatpush3.bf16.msra.mxu0 %v5958_v58  ;;  %v7676_v58 = vld [vmem:[#allocation2 + $0x62] sm:$0xff] }
 0x1e8   : > { %5326 = vmatmul.mubr.f32.gmra.mrb[2].mxu1 %v7344_v20  ;;  %5095 = vmatmul.mubr.f32.gmra.mrb[40].mxu0 %v7412_v4  ;;  %v5966_v20 = vpack.c.bf16 %v1399_v57, %v1398_v21  ;;  %v1400_v4 = vld [vmem:[#allocation8 + $0x160] sm:$0xff]  ;;  %v2622_v21 = vld [vmem:[#allocation8 + $0x348] sm:$0xff] }
 0x1e9   : > { %5328 = vmatprep.mubr.f32.mxu1 %v7357_v30  ;;  %6049 = vmatpush3.bf16.msra.mxu1 %v6046_v35  ;;  %v6058_v30 = vpack.c.bf16 %v2315_v10, %v2314_v3  ;;  %v6082_v35 = vpack.c.bf16 %v2618_v33, %v2617_v55  ;;  %v7692_v57 = vld [vmem:[#allocation2 + $0x92] sm:$0xff]  ;;  %v7695_v3 = vld [vmem:[#allocation2 + $0x9a] sm:$0xff] }
 0x1ea   : > { %5097 = vmatprep.mubr.f32.mxu0 %v7426_v18  ;;  %6051 = vmatprep.subr.bf16.mxu1 %v6050_v15  ;;  %v1401_v18 = vld [vmem:[#allocation8 + $0x168] sm:$0xff]  ;;  %v2923_v55 = vld [vmem:[#allocation8 + $0x3a0] sm:$0xff] }
 0x1eb   : > { %5963 = vmatprep.subr.bf16.mxu0 %v5962_v1  ;;  %v2924_v33 = vld [vmem:[#allocation8 + $0x3a8] sm:$0xff] }
 0x1ec   : > { %5329 = vmatmul.mubr.f32.gmra.mrb[4].mxu1 %v7354_v29  ;;  %5098 = vmatmul.mubr.f32.gmra.mrb[42].mxu0 %v7428_v19  ;;  %v2316_v29 = vld [vmem:[#allocation8 + $0x2d0] sm:$0xff] }
 0x1ed   : > { %5331 = vmatprep.mubr.f32.mxu1 %v7373_v41  ;;  %6053 = vmatpush3.bf16.msra.mxu1 %v6050_v15  ;;  %v5970_v41 = vpack.c.bf16 %v1401_v18, %v1400_v4  ;;  %v6062_v19 = vpack.c.bf16 %v2317_v32, %v2316_v29  ;;  %v2620_v15 = vld [vmem:[#allocation8 + $0x338] sm:$0xff]  ;;  %v7703_v18 = vld [vmem:[#allocation2 + $0xb2] sm:$0xff] }
 0x1ee   : > { %5100 = vmatprep.mubr.f32.mxu0 %v7442_v36  ;;  %6055 = vmatprep.subr.bf16.mxu1 %v6054_v14  ;;  %v1402_v36 = vld [vmem:[#allocation8 + $0x170] sm:$0xff]  ;;  %v6086_v56 = vpack.c.bf16 %v2620_v15, %v2619_v60  ;;  %v2624_v4 = vld [vmem:[#allocation8 + $0x358] sm:$0xff]  ;;  %v6114_v60 = vpack.c.bf16 %v2924_v33, %v2923_v55  ;;  %v2583_v15 = vld [vmem:[#allocation2 + $0x50] sm:$0xff] }
 0x1ef   : > { %5965 = vmatpush3.bf16.msra.mxu0 %v5962_v1  ;;  %v7687_v1 = vld [vmem:[#allocation2 + $0x82] sm:$0xff] }
 0x1f0   : > { %5332 = vmatmul.mubr.f32.gmra.mrb[6].mxu1 %v7369_v40  ;;  %5101 = vmatmul.mubr.f32.gmra.mrb[44].mxu0 %v7444_v37  ;;  %v2318_v40 = vld [vmem:[#allocation8 + $0x2e0] sm:$0xff]  ;;  %v2319_v37 = vld [vmem:[#allocation8 + $0x2e8] sm:$0xff]  ;;  %v7707_v32 = vld [vmem:[#allocation2 + $0xc2] sm:$0xff] }
 0x1f1   : > { %5334 = vmatprep.mubr.f32.mxu1 %v7390_v52  ;;  %5103 = vmatprep.mubr.f32.mxu0 %v7458_v53  ;;  %v5974_v52 = vpack.c.bf16 %v1403_v22, %v1402_v36  ;;  %v6066_v53 = vpack.c.bf16 %v2319_v37, %v2318_v40  ;;  %v7711_v36 = vld [vmem:[#allocation2 + $0xca] sm:$0xff]  ;;  %v7715_v40 = vld [vmem:[#allocation2 + $0xda] sm:$0xff] }
 0x1f2   : > { %6057 = vmatpush3.bf16.msra.mxu1 %v6054_v14  ;;  %5967 = vmatprep.subr.bf16.mxu0 %v5966_v20  ;;  %v2621_v14 = vld [vmem:[#allocation8 + $0x340] sm:$0xff]  ;;  %v2627_v37 = vld [vmem:[#allocation8 + $0x370] sm:$0xff]  ;;  %v2934_v55 = vld [vmem:[#allocation8 + $0x3f8] sm:$0xff] }
 0x1f3   : > { %6059 = vmatprep.subr.bf16.mxu1 %v6058_v30  ;;  %5969 = vmatpush3.bf16.msra.mxu0 %v5966_v20  ;;  %v6090_v10 = vpack.c.bf16 %v2622_v21, %v2621_v14  ;;  %v7699_v20 = vld [vmem:[#allocation2 + $0xaa] sm:$0xff]  ;;  %v2584_v21 = vld [vmem:[#allocation2 + $0x60] sm:$0xff] }
 0x1f4   : > { %5335 = vmatmul.mubr.f32.gmra.mrb[8].mxu1 %v7386_v51  ;;  %5104 = vmatmul.mubr.f32.gmra.mrb[46].mxu0 %v7460_v54  ;;  %v2321_v51 = vld [vmem:[#allocation8 + $0x2f8] sm:$0xff]  ;;  %v2613_v54 = vld [vmem:[#allocation8 + $0x300] sm:$0xff]  ;;  %v2592_v33 = vld [vmem:[#allocation2 + $0xc0] sm:$0xff] }
 0x1f5   : > { %5337 = vmatprep.mubr.f32.mxu1 %v7406_v63  ;;  %5106 = vmatprep.mubr.f32.mxu0 %v7474_v6  ;;  %v6070_v63 = vpack.c.bf16 %v2321_v51, %v2320_v50  ;;  %v2614_v6 = vld [vmem:[#allocation8 + $0x308] sm:$0xff]  ;;  %v2926_v14 = vld [vmem:[#allocation8 + $0x3b8] sm:$0xff] }
 0x1f6   : > { %6061 = vmatpush3.bf16.msra.mxu1 %v6058_v30  ;;  %5971 = vmatprep.subr.bf16.mxu0 %v5970_v41  ;;  %v2623_v30 = vld [vmem:[#allocation8 + $0x350] sm:$0xff]  ;;  %v7723_v51 = vld [vmem:[#allocation2 + $0xf2] sm:$0xff] }
 0x1f7   : > { %6063 = vmatprep.subr.bf16.mxu1 %v6062_v19  ;;  %5973 = vmatpush3.bf16.msra.mxu0 %v5970_v41  ;;  %v6094_v29 = vpack.c.bf16 %v2624_v4, %v2623_v30  ;;  %v2625_v41 = vld [vmem:[#allocation8 + $0x360] sm:$0xff]  ;;  %v2585_v30 = vld [vmem:[#allocation2 + $0x68] sm:$0xff] }
 0x1f8   : > { %5338 = vmatmul.mubr.f32.gmra.mrb[10].mxu1 %v7402_v62  ;;  %5107 = vmatmul.mubr.f32.gmra.mrb[48].mxu0 %v7476_v7  ;;  %v6074_v62 = vpack.c.bf16 %v2614_v6, %v2613_v54  ;;  %v8171_v7 = vld [vmem:[#allocation24_spill] sm:$0xff]  ;;  %v2927_v4 = vld [vmem:[#allocation8 + $0x3c0] sm:$0xff] }
 0x1f9   : > { %5340 = vmatprep.mubr.f32.mxu1 %v7422_v12  ;;  %5109 = vmatprep.mubr.f32.mxu0 %v7492_v25  ;;  %v8167_v12 = vld [vmem:[#allocation21_spill] sm:$0xff]  ;;  %v8172_v25 = vld [vmem:[#allocation26_spill] sm:$0xff]  ;;  %v2920_v54 = vld [vmem:[#allocation8 + $0x388] sm:$0xff] }
 0x1fa   : > { %6065 = vmatpush3.bf16.msra.mxu1 %v6062_v19  ;;  %5975 = vmatprep.subr.bf16.mxu0 %v5974_v52  ;;  %v2626_v19 = vld [vmem:[#allocation8 + $0x368] sm:$0xff] }
 0x1fb   : > { %6067 = vmatprep.subr.bf16.mxu1 %v6066_v53  ;;  %5977 = vmatpush3.bf16.msra.mxu0 %v5974_v52  ;;  %v6098_v22 = vpack.c.bf16 %v2626_v19, %v2625_v41  ;;  %v2628_v52 = vld [vmem:[#allocation8 + $0x378] sm:$0xff]  ;;  %v7727_v6 = vld [vmem:[#allocation2 + $0xfa] sm:$0xff] }
 0x1fc   : > { %5341 = vmatmul.mubr.f32.gmra.mrb[12].mxu1 %v7418_v11  ;;  %5110 = vmatmul.mubr.f32.gmra.mrb[50].mxu0 %v7494_v31  ;;  %v8166_v11 = vld [vmem:[#allocation19_spill] sm:$0xff]  ;;  %v8173_v31 = vmax.f32 %v8172_v25, 0.0  ;;  %v6102_v50 = vpack.c.bf16 %v2628_v52, %v2627_v37  ;;  %v7775_v25 = vld [vmem:[#allocation2 + $0x182] sm:$0xff]  ;;  %v2586_v41 = vld [vmem:[#allocation2 + $0x78] sm:$0xff] }
 0x1fd   : > { %5343 = vmatprep.mubr.f32.mxu1 %v7438_v27  ;;  %5112 = vmatprep.mubr.f32.mxu0 %v7509_v49  ;;  %v8168_v27 = vld [vmem:[#allocation20_spill] sm:$0xff]  ;;  %v2615_v49 = vld [vmem:[#allocation8 + $0x310] sm:$0xff]  ;;  %v2930_v52 = vld [vmem:[#allocation8 + $0x3d8] sm:$0xff] }
 0x1fe   : > { %6069 = vmatpush3.bf16.msra.mxu1 %v6066_v53  ;;  %v7719_v53 = vld [vmem:[#allocation2 + $0xe2] sm:$0xff] }
 0x1ff   : > { %6071 = vmatprep.subr.bf16.mxu1 %v6070_v63  ;;  %v2929_v37 = vld [vmem:[#allocation8 + $0x3d0] sm:$0xff] }
 0x200   : > { %5344 = vmatmul.mubr.f32.gmra.mrb[14].mxu1 %v7434_v26  ;;  %5113 = vmatmul.mubr.f32.gmra.mrb[52].mxu0 %v7511_v45  ;;  %v1355_v26 = vld [vmem:[#allocation2 + $0x2] sm:$0xff] }
 0x201   : > { %5346 = vmatprep.mubr.f32.mxu1 %v7454_v48  ;;  %5115 = vmatprep.mubr.f32.mxu0 %v7525_v2  ;;  %v1356_v48 = vld [vmem:[#allocation2 + $0xa] sm:$0xff]  ;;  %v8174_v2 = vld [vmem:[#allocation25_spill] sm:$0xff] }
 0x202   : > { %6073 = vmatpush3.bf16.msra.mxu1 %v6070_v63  ;;  %v2616_v45 = vld [vmem:[#allocation8 + $0x318] sm:$0xff]  ;;  %v2919_v63 = vld [vmem:[#allocation8 + $0x380] sm:$0xff] }
 0x203   : > { %6075 = vmatprep.subr.bf16.mxu1 %v6074_v62 }
 0x204   : > { %5347 = vmatmul.mubr.f32.gmra.mrb[16].mxu1 %v7450_v44  ;;  %5116 = vmatmul.mubr.f32.gmra.mrb[54].mxu0 %v7527_v5  ;;  %v8169_v44 = vld [vmem:[#allocation23_spill] sm:$0xff]  ;;  %v8175_v5 = vmax.f32 %v8174_v2, 0.0 }
 0x205   : > { %5349 = vmatprep.mubr.f32.mxu1 %v7470_v0  ;;  %5118 = vmatprep.mubr.f32.mxu0 %v7541_v42  ;;  %v1357_v0 = vld [vmem:[#allocation2 + $0x1a] sm:$0xff]  ;;  %v7669_v42 = vld [vmem:[#allocation2 + $0x4a] sm:$0xff] }
 0x206   : > { %v2580_v2 = vld [vmem:[#allocation2 + $0x30] sm:$0xff] }
 0x208   : > { %5350 = vmatmul.mubr.f32.gmra.mrb[18].mxu1 %v7466_v61  ;;  %5119 = vmatmul.mubr.f32.gmra.mrb[56].mxu0 %v7543_v43  ;;  %v8170_v61 = vld [vmem:[#allocation22_spill] sm:$0xff] }
 0x209   : > { %5352 = vmatprep.mubr.f32.mxu1 %v7488_v17  ;;  %5121 = vmatprep.mubr.f32.mxu0 %v7559_v39  ;;  %v7659_v17 = vld [vmem:[#allocation2 + $0x32] sm:$0xff] }
 0x20c   : > { %5353 = vmatmul.mubr.f32.gmra.mrb[20].mxu1 %v7484_v16  ;;  %5122 = vmatmul.mubr.f32.gmra.mrb[58].mxu0 %v7561_v28  ;;  %v1358_v16 = vld [vmem:[#allocation2 + $0x22] sm:$0xff] }
 0x20d   : > { %5355 = vmatprep.mubr.f32.mxu1 %v7505_v38  ;;  %5124 = vmatprep.mubr.f32.mxu0 %v7576_v9  ;;  %v7664_v38 = vld [vmem:[#allocation2 + $0x3a] sm:$0xff] }
 0x210   : > { %5356 = vmatmul.mubr.f32.gmra.mrb[22].mxu1 %v8166_v11  ;;  %5125 = vmatmul.mubr.f32.gmra.mrb[60].mxu0 %v7578_v24  ;;  %v7731_v11 = vld [vmem:[#allocation2 + $0x10a] sm:$0xff] }
 0x211   : > { %5358 = vmatprep.mubr.f32.mxu1 %v8167_v12  ;;  %5127 = vmatprep.mubr.f32.mxu0 %v7587_v23  ;;  %v7735_v12 = vld [vmem:[#allocation2 + $0x112] sm:$0xff] }
 0x214   : > { %5359 = vmatmul.mubr.f32.gmra.mrb[24].mxu1 %v8168_v27  ;;  %5128 = vmatmul.mubr.f32.gmra.mrb[62].mxu0 %v7589_v13  ;;  %v7743_v27 = vld [vmem:[#allocation2 + $0x12a] sm:$0xff] }
 0x215   : > { %5361 = vmatprep.mubr.f32.mxu1 %v8169_v44  ;;  %5162 = vmatprep.mubr.f32.mxu0 %v1355_v26  ;;  %v7739_v26 = vld [vmem:[#allocation2 + $0x122] sm:$0xff]  ;;  %v7747_v44 = vld [vmem:[#allocation2 + $0x13a] sm:$0xff] }
 0x218   : > { %5362 = vmatmul.mubr.f32.gmra.mrb[26].mxu1 %v8170_v61  ;;  %5163 = vmatmul.mubr.f32.vlgmr.msra.gmra.mrb[32].mxu0 %v1356_v48  ;;  %v7751_v48 = vld [vmem:[#allocation2 + $0x142] sm:$0xff]  ;;  %v7755_v61 = vld [vmem:[#allocation2 + $0x152] sm:$0xff] }
 0x219   : > { %5364 = vmatprep.mubr.f32.mxu1 %v8171_v7  ;;  %5165 = vmatprep.mubr.f32.mxu0 %v1357_v0  ;;  %v7763_v7 = vld [vmem:[#allocation2 + $0x16a] sm:$0xff] }
 0x21c   : > { %5365 = vmatmul.mubr.f32.gmra.mrb[28].mxu1 %v7549_v59  ;;  %5166 = vmatmul.mubr.f32.gmra.mrb[34].mxu0 %v1358_v16  ;;  %v6078_v59 = vpack.c.bf16 %v2616_v45, %v2615_v49  ;;  %v2921_v49 = vld [vmem:[#allocation8 + $0x390] sm:$0xff]  ;;  %v2922_v45 = vld [vmem:[#allocation8 + $0x398] sm:$0xff] }
 0x21d   : > { %5367 = vmatprep.mubr.f32.mxu1 %v8173_v31  ;;  %5168 = vmatprep.mubr.f32.mxu0 %v7659_v17  ;;  %v7778_v31 = vld [vmem:[#allocation2 + $0x18a] sm:$0xff] }
 0x220   : > { %5368 = vmatmul.mubr.f32.gmra.mrb[30].mxu1 %v8175_v5  ;;  %5169 = vmatmul.mubr.f32.gmra.mrb[36].mxu0 %v7664_v38  ;;  %v6110_v5 = vpack.c.bf16 %v2922_v45, %v2921_v49  ;;  %v2932_v49 = vld [vmem:[#allocation8 + $0x3e8] sm:$0xff]  ;;  %v2590_v45 = vld [vmem:[#allocation2 + $0xa8] sm:$0xff] }
 0x221   : > { %5402 = vmatprep.mubr.f32.mxu1 %v1357_v0  ;;  %5171 = vmatprep.mubr.f32.mxu0 %v7669_v42  ;;  %v7759_v0 = vld [vmem:[#allocation2 + $0x15a] sm:$0xff] }
 0x224   : > { %5403 = vmatmul.mubr.f32.vlgmr.msra.gmra.mrb[0].mxu1 %v1358_v16  ;;  %5172 = vmatmul.mubr.f32.gmra.mrb[38].mxu0 %v7672_v34  ;;  %v7767_v16 = vld [vmem:[#allocation2 + $0x172] sm:$0xff] }
 0x225   : > { %6077 = vmatpush3.bf16.msra.mxu1 %v6074_v62  ;;  %5405 = vmatprep.mubr.f32.mxu1 %v7659_v17  ;;  %v6106_v62 = vpack.c.bf16 %v2920_v54, %v2919_v63  ;;  %v6126_v63 = vpack.c.bf16 %v2930_v52, %v2929_v37  ;;  %v2589_v54 = vld [vmem:[#allocation2 + $0x98] sm:$0xff]  ;;  %v6678_v37 = vld [vmem:[#allocation2] sm:$0xff] }
 0x226   : > { %6079 = vmatprep.subr.bf16.mxu1 %v6078_v59  ;;  %5174 = vmatprep.mubr.f32.mxu0 %v7676_v58  ;;  %v3227_v52 = vld [vmem:[#allocation8 + $0x410] sm:$0xff] }
 0x228   : > { %5406 = vmatmul.mubr.f32.gmra.mrb[2].mxu1 %v7664_v38  ;;  %5175 = vmatmul.mubr.f32.gmra.mrb[40].mxu0 %v7679_v46 }
 0x229   : > { %5408 = vmatprep.mubr.f32.mxu1 %v7669_v42  ;;  %6081 = vmatpush3.bf16.msra.mxu1 %v6078_v59  ;;  %v2581_v59 = vld [vmem:[#allocation2 + $0x38] sm:$0xff] }
 0x22a   : > { %5177 = vmatprep.mubr.f32.mxu0 %v7684_v47  ;;  %6083 = vmatprep.subr.bf16.mxu1 %v6082_v35 }
 0x22c   : > { %5409 = vmatmul.mubr.f32.gmra.mrb[4].mxu1 %v7672_v34  ;;  %5178 = vmatmul.mubr.f32.gmra.mrb[42].mxu0 %v7687_v1 }
 0x22d   : > { %5411 = vmatprep.mubr.f32.mxu1 %v7676_v58  ;;  %6085 = vmatpush3.bf16.msra.mxu1 %v6082_v35  ;;  %v2582_v35 = vld [vmem:[#allocation2 + $0x48] sm:$0xff] }
 0x22e   : > { %5180 = vmatprep.mubr.f32.mxu0 %v7692_v57  ;;  %6087 = vmatprep.subr.bf16.mxu1 %v6086_v56 }
 0x230   : > { %5412 = vmatmul.mubr.f32.gmra.mrb[6].mxu1 %v7679_v46  ;;  %5181 = vmatmul.mubr.f32.gmra.mrb[44].mxu0 %v7695_v3 }
 0x231   : > { %5414 = vmatprep.mubr.f32.mxu1 %v7684_v47  ;;  %5183 = vmatprep.mubr.f32.mxu0 %v7699_v20 }
 0x232   : > { %6089 = vmatpush3.bf16.msra.mxu1 %v6086_v56  ;;  %v2925_v56 = vld [vmem:[#allocation8 + $0x3b0] sm:$0xff] }
 0x233   : > { %6091 = vmatprep.subr.bf16.mxu1 %v6090_v10 }
 0x234   : > { %5415 = vmatmul.mubr.f32.gmra.mrb[8].mxu1 %v7687_v1  ;;  %5184 = vmatmul.mubr.f32.gmra.mrb[46].mxu0 %v7703_v18 }
 0x235   : > { %5417 = vmatprep.mubr.f32.mxu1 %v7692_v57  ;;  %5186 = vmatprep.mubr.f32.mxu0 %v7707_v32 }
 0x236   : > { %6093 = vmatpush3.bf16.msra.mxu1 %v6090_v10  ;;  %v6118_v10 = vpack.c.bf16 %v2926_v14, %v2925_v56  ;;  %v3226_v56 = vld [vmem:[#allocation8 + $0x408] sm:$0xff] }
 0x237   : > { %6095 = vmatprep.subr.bf16.mxu1 %v6094_v29  ;;  %v2594_v14 = vld [vmem:[#allocation2 + $0xd8] sm:$0xff] }
 0x238   : > { %5418 = vmatmul.mubr.f32.gmra.mrb[10].mxu1 %v7695_v3  ;;  %5187 = vmatmul.mubr.f32.gmra.mrb[48].mxu0 %v7711_v36 }
 0x239   : > { %5420 = vmatprep.mubr.f32.mxu1 %v7699_v20  ;;  %5189 = vmatprep.mubr.f32.mxu0 %v7715_v40 }
 0x23a   : > { %6097 = vmatpush3.bf16.msra.mxu1 %v6094_v29  ;;  %v2928_v29 = vld [vmem:[#allocation8 + $0x3c8] sm:$0xff] }
 0x23b   : > { %6099 = vmatprep.subr.bf16.mxu1 %v6098_v22  ;;  %v6122_v19 = vpack.c.bf16 %v2928_v29, %v2927_v4  ;;  %v2597_v4 = vld [vmem:[#allocation2 + $0xf8] sm:$0xff]  ;;  %v2598_v29 = vld [vmem:[#allocation2 + $0x108] sm:$0xff] }
 0x23c   : > { %5421 = vmatmul.mubr.f32.gmra.mrb[12].mxu1 %v7703_v18  ;;  %5190 = vmatmul.mubr.f32.gmra.mrb[50].mxu0 %v7719_v53 }
 0x23d   : > { %5423 = vmatprep.mubr.f32.mxu1 %v7707_v32  ;;  %5192 = vmatprep.mubr.f32.mxu0 %v7723_v51 }
 0x23e   : > { %6101 = vmatpush3.bf16.msra.mxu1 %v6098_v22  ;;  %v2587_v22 = vld [vmem:[#allocation2 + $0x80] sm:$0xff] }
 0x23f   : > { %6103 = vmatprep.subr.bf16.mxu1 %v6102_v50 }
 0x240   : > { %5424 = vmatmul.mubr.f32.gmra.mrb[14].mxu1 %v7711_v36  ;;  %5193 = vmatmul.mubr.f32.gmra.mrb[52].mxu0 %v7727_v6 }
 0x241   : > { %5426 = vmatprep.mubr.f32.mxu1 %v7715_v40  ;;  %5195 = vmatprep.mubr.f32.mxu0 %v7731_v11 }
 0x242   : > { %6105 = vmatpush3.bf16.msra.mxu1 %v6102_v50  ;;  %v2588_v50 = vld [vmem:[#allocation2 + $0x90] sm:$0xff] }
 0x243   : > { %6107 = vmatprep.subr.bf16.mxu1 %v6106_v62 }
 0x244   : > { %5427 = vmatmul.mubr.f32.gmra.mrb[16].mxu1 %v7719_v53  ;;  %5196 = vmatmul.mubr.f32.gmra.mrb[54].mxu0 %v7735_v12 }
 0x245   : > { %5429 = vmatprep.mubr.f32.mxu1 %v7723_v51  ;;  %5198 = vmatprep.mubr.f32.mxu0 %v7739_v26 }
 0x248   : > { %5430 = vmatmul.mubr.f32.gmra.mrb[18].mxu1 %v7727_v6  ;;  %5199 = vmatmul.mubr.f32.gmra.mrb[56].mxu0 %v7743_v27 }
 0x249   : > { %5432 = vmatprep.mubr.f32.mxu1 %v7731_v11  ;;  %5201 = vmatprep.mubr.f32.mxu0 %v7747_v44 }
 0x24c   : > { %5433 = vmatmul.mubr.f32.gmra.mrb[20].mxu1 %v7735_v12  ;;  %5202 = vmatmul.mubr.f32.gmra.mrb[58].mxu0 %v7751_v48 }
 0x24d   : > { %5435 = vmatprep.mubr.f32.mxu1 %v7739_v26  ;;  %5204 = vmatprep.mubr.f32.mxu0 %v7755_v61 }
 0x250   : > { %5436 = vmatmul.mubr.f32.gmra.mrb[22].mxu1 %v7743_v27  ;;  %5205 = vmatmul.mubr.f32.gmra.mrb[60].mxu0 %v7759_v0 }
 0x251   : > { %5438 = vmatprep.mubr.f32.mxu1 %v7747_v44  ;;  %5207 = vmatprep.mubr.f32.mxu0 %v7763_v7 }
 0x254   : > { %5439 = vmatmul.mubr.f32.gmra.mrb[24].mxu1 %v7751_v48  ;;  %5208 = vmatmul.mubr.f32.gmra.mrb[62].mxu0 %v7767_v16 }
 0x255   : > { %5441 = vmatprep.mubr.f32.mxu1 %v7755_v61 }
 0x258   : > { %5442 = vmatmul.mubr.f32.gmra.mrb[26].mxu1 %v7759_v0 }
 0x259   : > { %5444 = vmatprep.mubr.f32.mxu1 %v7763_v7 }
 0x25c   : > { %5445 = vmatmul.mubr.f32.gmra.mrb[28].mxu1 %v7767_v16 }
 0x25d   : > { %5447 = vmatprep.mubr.f32.mxu1 %v7775_v25 }
 0x260   : > { %5448 = vmatmul.mubr.f32.gmra.mrb[30].mxu1 %v7778_v31 }
 0x261   : > { %5482 = vmatprep.mubr.f32.mxu1 %v2580_v2 }
 0x264   : > { %5483 = vmatmul.mubr.f32.vlgmr.msra.gmra.mrb[0].mxu1 %v2581_v59  ;;  %v2933_v59 = vld [vmem:[#allocation8 + $0x3f0] sm:$0xff] }
 0x265   : > { %6109 = vmatpush3.bf16.msra.mxu1 %v6106_v62  ;;  %5485 = vmatprep.mubr.f32.mxu1 %v2582_v35  ;;  %v2931_v62 = vld [vmem:[#allocation8 + $0x3e0] sm:$0xff]  ;;  %v6134_v35 = vpack.c.bf16 %v2934_v55, %v2933_v59  ;;  %v3572_v59 = vld [vmem:[#allocation9 + $0x18] sm:$0xff] }
 0x266   : > { %6111 = vmatprep.subr.bf16.mxu1 %v6110_v5  ;;  %v6130_v2 = vpack.c.bf16 %v2932_v49, %v2931_v62  ;;  %v3232_v62 = vld [vmem:[#allocation8 + $0x438] sm:$0xff]  ;;  %v3569_v49 = vld [vmem:[#allocation9] sm:$0xff] }
 0x267   : > { %v2891_v55 = vld [vmem:[#allocation2 + $0x69] sm:$0xff] }
 0x268   : > { %5486 = vmatmul.mubr.f32.gmra.mrb[2].mxu1 %v2583_v15  ;;  %v3225_v15 = vld [vmem:[#allocation8 + $0x400] sm:$0xff] }
 0x269   : > { %5488 = vmatprep.mubr.f32.mxu1 %v2584_v21  ;;  %6113 = vmatpush3.bf16.msra.mxu1 %v6110_v5  ;;  %v2591_v5 = vld [vmem:[#allocation2 + $0xb0] sm:$0xff]  ;;  %v6138_v21 = vpack.c.bf16 %v3226_v56, %v3225_v15  ;;  %v3234_v15 = vld [vmem:[#allocation8 + $0x448] sm:$0xff] }
 0x26a   : > { %6115 = vmatprep.subr.bf16.mxu1 %v6114_v60  ;;  %v3573_v56 = vld [vmem:[#allocation9 + $0x20] sm:$0xff] }
 0x26c   : > { %5489 = vmatmul.mubr.f32.gmra.mrb[4].mxu1 %v2585_v30  ;;  %v2596_v30 = vld [vmem:[#allocation2 + $0xf0] sm:$0xff] }
 0x26d   : > { %5491 = vmatprep.mubr.f32.mxu1 %v2586_v41  ;;  %6117 = vmatpush3.bf16.msra.mxu1 %v6114_v60  ;;  %v2593_v60 = vld [vmem:[#allocation2 + $0xc8] sm:$0xff]  ;;  %v2599_v41 = vld [vmem:[#allocation2 + $0x110] sm:$0xff] }
 0x26e   : > { %6119 = vmatprep.subr.bf16.mxu1 %v6118_v10 }
 0x270   : > { %5492 = vmatmul.mubr.f32.gmra.mrb[6].mxu1 %v2587_v22  ;;  %v8176_v22 = vld [vmem:[#allocation27_spill] sm:$0xff] }
 0x271   : > { %5494 = vmatprep.mubr.f32.mxu1 %v2588_v50  ;;  %6121 = vmatpush3.bf16.msra.mxu1 %v6118_v10  ;;  %v2595_v10 = vld [vmem:[#allocation2 + $0xe0] sm:$0xff] }
 0x272   : > { %6123 = vmatprep.subr.bf16.mxu1 %v6122_v19  ;;  %v2887_v50 = vld [vmem:[#allocation2 + $0x39] sm:$0xff] }
 0x274   : > { %5495 = vmatmul.mubr.f32.gmra.mrb[8].mxu1 %v2589_v54  ;;  %v2890_v54 = vld [vmem:[#allocation2 + $0x61] sm:$0xff] }
 0x275   : > { %5497 = vmatprep.mubr.f32.mxu1 %v2590_v45  ;;  %6125 = vmatpush3.bf16.msra.mxu1 %v6122_v19  ;;  %v2600_v19 = vld [vmem:[#allocation2 + $0x120] sm:$0xff]  ;;  %v3570_v45 = vld [vmem:[#allocation9 + $0x8] sm:$0xff] }
 0x276   : > { %6127 = vmatprep.subr.bf16.mxu1 %v6126_v63 }
 0x278   : > { %5498 = vmatmul.mubr.f32.gmra.mrb[10].mxu1 %v2591_v5  ;;  %v6170_v5 = vpack.c.bf16 %v3570_v45, %v3569_v49  ;;  %v3579_v49 = vld [vmem:[#allocation9 + $0x50] sm:$0xff]  ;;  %v3580_v45 = vld [vmem:[#allocation9 + $0x58] sm:$0xff] }
 0x279   : > { %5500 = vmatprep.mubr.f32.mxu1 %v2592_v33  ;;  %6129 = vmatpush3.bf16.msra.mxu1 %v6126_v63  ;;  %v3230_v63 = vld [vmem:[#allocation8 + $0x428] sm:$0xff] }
 0x27a   : > { %6131 = vmatprep.subr.bf16.mxu1 %v6130_v2  ;;  %6171 = vmatprep.subr.bf16.mxu0 %v6170_v5 }
 0x27b   : > { %6173 = vmatpush3.bf16.msra.mxu0 %v6170_v5 }
 0x27c   : > { %5501 = vmatmul.mubr.f32.gmra.mrb[12].mxu1 %v2593_v60 }
 0x27d   : > { %5503 = vmatprep.mubr.f32.mxu1 %v2594_v14  ;;  %6133 = vmatpush3.bf16.msra.mxu1 %v6130_v2  ;;  %v3571_v2 = vld [vmem:[#allocation9 + $0x10] sm:$0xff]  ;;  %v3574_v14 = vld [vmem:[#allocation9 + $0x28] sm:$0xff] }
 0x27e   : > { %6135 = vmatprep.subr.bf16.mxu1 %v6134_v35  ;;  %v6174_v60 = vpack.c.bf16 %v3572_v59, %v3571_v2  ;;  %v2898_v2 = vld [vmem:[#allocation2 + $0xc1] sm:$0xff]  ;;  %v6190_v59 = vpack.c.bf16 %v3580_v45, %v3579_v49  ;;  %v3817_v49 = vld [vmem:[#allocation11] sm:$0xff]  ;;  %v3818_v45 = vld [vmem:[#allocation11 + $0x8] sm:$0xff] }
 0x280   : > { %5504 = vmatmul.mubr.f32.gmra.mrb[14].mxu1 %v2595_v10  ;;  %v2893_v10 = vld [vmem:[#allocation2 + $0x81] sm:$0xff]  ;;  %6175 = vmatprep.subr.bf16.mxu0 %v6174_v60 }
 0x281   : > { %5506 = vmatprep.mubr.f32.mxu1 %v2596_v30  ;;  %6137 = vmatpush3.bf16.msra.mxu1 %v6134_v35  ;;  %v3233_v35 = vld [vmem:[#allocation8 + $0x440] sm:$0xff] }
 0x282   : > { %6139 = vmatprep.subr.bf16.mxu1 %v6138_v21  ;;  %v6154_v30 = vpack.c.bf16 %v3234_v15, %v3233_v35  ;;  %6177 = vmatpush3.bf16.msra.mxu0 %v6174_v60  ;;  %v3582_v35 = vld [vmem:[#allocation9 + $0x68] sm:$0xff] }
 0x283   : > { %v2900_v60 = vld [vmem:[#allocation2 + $0xd9] sm:$0xff] }
 0x284   : > { %5507 = vmatmul.mubr.f32.gmra.mrb[16].mxu1 %v2597_v4  ;;  %v3235_v4 = vld [vmem:[#allocation8 + $0x450] sm:$0xff] }
 0x285   : > { %5509 = vmatprep.mubr.f32.mxu1 %v2598_v29  ;;  %v6178_v29 = vpack.c.bf16 %v3574_v14, %v3573_v56  ;;  %v2901_v56 = vld [vmem:[#allocation2 + $0xe1] sm:$0xff]  ;;  %v2902_v14 = vld [vmem:[#allocation2 + $0xf1] sm:$0xff] }
 0x287   : > { %6179 = vmatprep.subr.bf16.mxu0 %v6178_v29 }
 0x288   : > { %5510 = vmatmul.mubr.f32.gmra.mrb[18].mxu1 %v2599_v41  ;;  %v3236_v41 = vld [vmem:[#allocation8 + $0x458] sm:$0xff]  ;;  %6181 = vmatpush3.bf16.msra.mxu0 %v6178_v29 }
 0x289   : > { %5512 = vmatprep.mubr.f32.mxu1 %v2600_v19  ;;  %v3575_v19 = vld [vmem:[#allocation9 + $0x30] sm:$0xff]  ;;  %v2907_v29 = vld [vmem:[#allocation2 + $0x129] sm:$0xff] }
 0x28c   : > { %5513 = vmatmul.mubr.f32.gmra.mrb[20].mxu1 %v7543_v43  ;;  %v3228_v43 = vld [vmem:[#allocation8 + $0x418] sm:$0xff] }
 0x28d   : > { %5515 = vmatprep.mubr.f32.mxu1 %v7559_v39  ;;  %v2886_v39 = vld [vmem:[#allocation2 + $0x31] sm:$0xff] }
 0x290   : > { %5516 = vmatmul.mubr.f32.gmra.mrb[22].mxu1 %v7561_v28  ;;  %v6142_v28 = vpack.c.bf16 %v3228_v43, %v3227_v52  ;;  %v2895_v52 = vld [vmem:[#allocation2 + $0x99] sm:$0xff]  ;;  %v6158_v43 = vpack.c.bf16 %v3236_v41, %v3235_v4  ;;  %v2906_v4 = vld [vmem:[#allocation2 + $0x121] sm:$0xff] }
 0x291   : > { %5518 = vmatprep.mubr.f32.mxu1 %v7576_v9  ;;  %v3229_v9 = vld [vmem:[#allocation8 + $0x420] sm:$0xff]  ;;  %v2908_v41 = vld [vmem:[#allocation2 + $0x139] sm:$0xff] }
 0x294   : > { %5519 = vmatmul.mubr.f32.gmra.mrb[24].mxu1 %v7578_v24  ;;  %v2888_v24 = vld [vmem:[#allocation2 + $0x49] sm:$0xff] }
 0x295   : > { %5521 = vmatprep.mubr.f32.mxu1 %v7587_v23  ;;  %v2889_v23 = vld [vmem:[#allocation2 + $0x51] sm:$0xff] }
 0x298   : > { %5522 = vmatmul.mubr.f32.gmra.mrb[26].mxu1 %v7589_v13  ;;  %v6146_v13 = vpack.c.bf16 %v3230_v63, %v3229_v9  ;;  %v3577_v9 = vld [vmem:[#allocation9 + $0x40] sm:$0xff]  ;;  %v3578_v63 = vld [vmem:[#allocation9 + $0x48] sm:$0xff] }
 0x299   : > { %5524 = vmatprep.mubr.f32.mxu1 %v8176_v22  ;;  %v3576_v22 = vld [vmem:[#allocation9 + $0x38] sm:$0xff] }
 0x29c   : > { %5525 = vmatmul.mubr.f32.gmra.mrb[28].mxu1 %v7597_v8  ;;  %v3231_v8 = vld [vmem:[#allocation8 + $0x430] sm:$0xff] }
 0x29d   : > { %5527 = vmatprep.mubr.f32.mxu1 %v6678_v37  ;;  %v6150_v33 = vpack.c.bf16 %v3232_v62, %v3231_v8  ;;  %v6186_v8 = vpack.c.bf16 %v3578_v63, %v3577_v9  ;;  %v3240_v62 = vld [vmem:[#allocation8 + $0x478] sm:$0xff] }
 0x29e   : > { %v2917_v9 = vld [vmem:[#allocation2 + $0x1a1] sm:$0xff] }
 0x2a0   : > { %5528 = vmatmul.mubr.f32.gmra.mrb[30].mxu1 %v6678_v37  ;;  %v2894_v37 = vld [vmem:[#allocation2 + $0x91] sm:$0xff] }
 0x2a1   : > { %5562 = vmatprep.mubr.f32.mxu1 %v2886_v39  ;;  %v3237_v39 = vld [vmem:[#allocation8 + $0x460] sm:$0xff] }
 0x2a4   : > { %5563 = vmatmul.mubr.f32.vlgmr.msra.gmra.mrb[0].mxu1 %v2887_v50  ;;  %v3238_v50 = vld [vmem:[#allocation8 + $0x468] sm:$0xff] }
 0x2a5   : > { %6141 = vmatpush3.bf16.msra.mxu1 %v6138_v21  ;;  %5565 = vmatprep.mubr.f32.mxu1 %v2888_v24  ;;  %v2892_v21 = vld [vmem:[#allocation2 + $0x79] sm:$0xff]  ;;  %v2896_v24 = vld [vmem:[#allocation2 + $0xa9] sm:$0xff] }
 0x2a6   : > { %6143 = vmatprep.subr.bf16.mxu1 %v6142_v28 }
 0x2a8   : > { %5566 = vmatmul.mubr.f32.gmra.mrb[2].mxu1 %v2889_v23  ;;  %v2897_v23 = vld [vmem:[#allocation2 + $0xb1] sm:$0xff] }
 0x2a9   : > { %5568 = vmatprep.mubr.f32.mxu1 %v2890_v54  ;;  %6145 = vmatpush3.bf16.msra.mxu1 %v6142_v28  ;;  %v6182_v28 = vpack.c.bf16 %v3576_v22, %v3575_v19  ;;  %v3239_v54 = vld [vmem:[#allocation8 + $0x470] sm:$0xff]  ;;  %v2910_v22 = vld [vmem:[#allocation2 + $0x151] sm:$0xff] }
 0x2aa   : > { %6147 = vmatprep.subr.bf16.mxu1 %v6146_v13  ;;  %v6166_v5 = vpack.c.bf16 %v3240_v62, %v3239_v54  ;;  %v2909_v19 = vld [vmem:[#allocation2 + $0x141] sm:$0xff] }
 0x2ab   : > { %6183 = vmatprep.subr.bf16.mxu0 %v6182_v28  ;;  %v3584_v62 = vld [vmem:[#allocation9 + $0x78] sm:$0xff] }
 0x2ac   : > { %5569 = vmatmul.mubr.f32.gmra.mrb[4].mxu1 %v2891_v55  ;;  %6185 = vmatpush3.bf16.msra.mxu0 %v6182_v28  ;;  %v2899_v55 = vld [vmem:[#allocation2 + $0xc9] sm:$0xff]  ;;  %v2916_v28 = vld [vmem:[#allocation2 + $0x199] sm:$0xff] }
 0x2ad   : > { %5571 = vmatprep.mubr.f32.mxu1 %v2892_v21  ;;  %6149 = vmatpush3.bf16.msra.mxu1 %v6146_v13  ;;  %v6162_v13 = vpack.c.bf16 %v3238_v50, %v3237_v39  ;;  %v2903_v21 = vld [vmem:[#allocation2 + $0xf9] sm:$0xff]  ;;  %v2914_v39 = vld [vmem:[#allocation2 + $0x181] sm:$0xff]  ;;  %v2915_v50 = vld [vmem:[#allocation2 + $0x189] sm:$0xff] }
 0x2ae   : > { %6151 = vmatprep.subr.bf16.mxu1 %v6150_v33  ;;  %6187 = vmatprep.subr.bf16.mxu0 %v6186_v8 }
 0x2b0   : > { %5572 = vmatmul.mubr.f32.gmra.mrb[6].mxu1 %v2893_v10  ;;  %6189 = vmatpush3.bf16.msra.mxu0 %v6186_v8  ;;  %v2904_v10 = vld [vmem:[#allocation2 + $0x109] sm:$0xff]  ;;  %v3583_v8 = vld [vmem:[#allocation9 + $0x70] sm:$0xff] }
 0x2b1   : > { %5574 = vmatprep.mubr.f32.mxu1 %v2894_v37  ;;  %6153 = vmatpush3.bf16.msra.mxu1 %v6150_v33  ;;  %v3581_v33 = vld [vmem:[#allocation9 + $0x60] sm:$0xff]  ;;  %v2911_v37 = vld [vmem:[#allocation2 + $0x159] sm:$0xff] }
 0x2b2   : > { %6155 = vmatprep.subr.bf16.mxu1 %v6154_v30  ;;  %6191 = vmatprep.subr.bf16.mxu0 %v6190_v59  ;;  %v6194_v15 = vpack.c.bf16 %v3582_v35, %v3581_v33 }
 0x2b4   : > { %5575 = vmatmul.mubr.f32.gmra.mrb[8].mxu1 %v2895_v52  ;;  %6193 = vmatpush3.bf16.msra.mxu0 %v6190_v59  ;;  %v2912_v52 = vld [vmem:[#allocation2 + $0x169] sm:$0xff]  ;;  %v7887_v59 = vld [vmem:[%s8114_s4] ss:$0 sm:$0xff] }
 0x2b5   : > { %5577 = vmatprep.mubr.f32.mxu1 %v2896_v24  ;;  %6157 = vmatpush3.bf16.msra.mxu1 %v6154_v30  ;;  %v2905_v30 = vld [vmem:[#allocation2 + $0x111] sm:$0xff] }
 0x2b6   : > { %6159 = vmatprep.subr.bf16.mxu1 %v6158_v43  ;;  %6195 = vmatprep.subr.bf16.mxu0 %v6194_v15 }
 0x2b8   : > { %5578 = vmatmul.mubr.f32.gmra.mrb[10].mxu1 %v2897_v23  ;;  %6197 = vmatpush3.bf16.msra.mxu0 %v6194_v15 }
 0x2b9   : > { %5580 = vmatprep.mubr.f32.mxu1 %v2898_v2  ;;  %6161 = vmatpush3.bf16.msra.mxu1 %v6158_v43  ;;  %v2913_v43 = vld [vmem:[#allocation2 + $0x171] sm:$0xff]  ;;  %v6202_v2 = vpack.c.bf16 %v3818_v45, %v3817_v49 }
 0x2ba   : > { %6163 = vmatprep.subr.bf16.mxu1 %v6162_v13 }
 0x2bc   : > { %5581 = vmatmul.mubr.f32.gmra.mrb[12].mxu1 %v2899_v55 }
 0x2bd   : > { %5583 = vmatprep.mubr.f32.mxu1 %v2900_v60  ;;  %6165 = vmatpush3.bf16.msra.mxu1 %v6162_v13 }
 0x2be   : > { %6167 = vmatprep.subr.bf16.mxu1 %v6166_v5 }
 0x2c0   : > { %5584 = vmatmul.mubr.f32.gmra.mrb[14].mxu1 %v2901_v56 }
 0x2c1   : > { %5586 = vmatprep.mubr.f32.mxu1 %v2902_v14  ;;  %6169 = vmatpush3.bf16.msra.mxu1 %v6166_v5  ;;  %v3819_v14 = vld [vmem:[#allocation11 + $0x10] sm:$0xff] }
 0x2c4   : > { %5587 = vmatmul.mubr.f32.gmra.mrb[16].mxu1 %v2903_v21  ;;  %v3820_v21 = vld [vmem:[#allocation11 + $0x18] sm:$0xff] }
 0x2c5   : > { %5589 = vmatprep.mubr.f32.mxu1 %v2904_v10 }
 0x2c8   : > { %5590 = vmatmul.mubr.f32.gmra.mrb[18].mxu1 %v2905_v30 }
 0x2c9   : > { %5592 = vmatprep.mubr.f32.mxu1 %v2906_v4 }
 0x2cc   : > { %5593 = vmatmul.mubr.f32.gmra.mrb[20].mxu1 %v2907_v29 }
 0x2cd   : > { %5595 = vmatprep.mubr.f32.mxu1 %v2908_v41 }
 0x2d0   : > { %5596 = vmatmul.mubr.f32.gmra.mrb[22].mxu1 %v2909_v19 }
 0x2d1   : > { %5598 = vmatprep.mubr.f32.mxu1 %v2910_v22  ;;  %v6206_v22 = vpack.c.bf16 %v3820_v21, %v3819_v14 }
 0x2d4   : > { %5599 = vmatmul.mubr.f32.gmra.mrb[24].mxu1 %v2911_v37 }
 0x2d5   : > { %5601 = vmatprep.mubr.f32.mxu1 %v2912_v52 }
 0x2d8   : > { %5602 = vmatmul.mubr.f32.gmra.mrb[26].mxu1 %v2913_v43  ;;  %v3821_v43 = vld [vmem:[#allocation11 + $0x20] sm:$0xff] }
 0x2d9   : > { %5604 = vmatprep.mubr.f32.mxu1 %v2914_v39  ;;  %v3822_v39 = vld [vmem:[#allocation11 + $0x28] sm:$0xff] }
 0x2dc   : > { %5605 = vmatmul.mubr.f32.gmra.mrb[28].mxu1 %v2915_v50 }
 0x2dd   : > { %5607 = vmatprep.mubr.f32.mxu1 %v2916_v28 }
 0x2e0   : > { %5608 = vmatmul.mubr.f32.gmra.mrb[30].mxu1 %v2917_v9 }
 0x2e1   : > { %5642 = vmatprep.mubr.f32.mxu1 %v7659_v17 }
 0x2e4   : > { %5643 = vmatmul.mubr.f32.vlgmr.msra.gmra.mrb[0].mxu1 %v7664_v38 }
 0x2e5   : > { %5645 = vmatprep.mubr.f32.mxu1 %v7669_v42 }
 0x2e8   : > { %5646 = vmatmul.mubr.f32.gmra.mrb[2].mxu1 %v7672_v34 }
 0x2e9   : > { %5648 = vmatprep.mubr.f32.mxu1 %v7676_v58 }
 0x2eb   : > { %v7795_v63 = vpop.f32.mrb[32].mxu0 }
 0x2ec   : > { %5649 = vmatmul.mubr.f32.gmra.mrb[4].mxu1 %v7679_v46  ;;  %v7798_v24 = vpop.f32.mrb[33].mxu0 }
 0x2ed   : > { %5651 = vmatprep.mubr.f32.mxu1 %v7684_v47 }
 0x2ef   : > { %v7801_v23 = vpop.f32.mrb[34].mxu0 }
 0x2f0   : > { %5652 = vmatmul.mubr.f32.gmra.mrb[6].mxu1 %v7687_v1  ;;  %v7804_v17 = vpop.f32.mrb[35].mxu0 }
 0x2f1   : > { %5654 = vmatprep.mubr.f32.mxu1 %v7692_v57 }
 0x2f3   : > { %v7807_v38 = vpop.f32.mrb[36].mxu0 }
 0x2f4   : > { %5655 = vmatmul.mubr.f32.gmra.mrb[8].mxu1 %v7695_v3  ;;  %v7810_v42 = vpop.f32.mrb[37].mxu0 }
 0x2f5   : > { %5657 = vmatprep.mubr.f32.mxu1 %v7699_v20 }
 0x2f7   : > { %v7813_v34 = vpop.f32.mrb[38].mxu0 }
 0x2f8   : > { %5658 = vmatmul.mubr.f32.gmra.mrb[10].mxu1 %v7703_v18  ;;  %v7816_v58 = vpop.f32.mrb[39].mxu0 }
 0x2f9   : > { %5660 = vmatprep.mubr.f32.mxu1 %v7707_v32 }
 0x2fb   : > { %v7819_v46 = vpop.f32.mrb[40].mxu0 }
 0x2fc   : > { %5661 = vmatmul.mubr.f32.gmra.mrb[12].mxu1 %v7711_v36  ;;  %v7822_v47 = vpop.f32.mrb[41].mxu0 }
 0x2fd   : > { %5663 = vmatprep.mubr.f32.mxu1 %v7715_v40 }
 0x2ff   : > { %v7825_v1 = vpop.f32.mrb[42].mxu0 }
 0x300   : > { %5664 = vmatmul.mubr.f32.gmra.mrb[14].mxu1 %v7719_v53  ;;  %v7828_v57 = vpop.f32.mrb[43].mxu0 }
 0x301   : > { %5666 = vmatprep.mubr.f32.mxu1 %v7723_v51 }
 0x303   : > { %v7831_v3 = vpop.f32.mrb[44].mxu0 }
 0x304   : > { %5667 = vmatmul.mubr.f32.gmra.mrb[16].mxu1 %v7727_v6  ;;  %v7834_v20 = vpop.f32.mrb[45].mxu0 }
 0x305   : > { %5669 = vmatprep.mubr.f32.mxu1 %v7731_v11 }
 0x307   : > { %v7837_v18 = vpop.f32.mrb[46].mxu0 }
 0x308   : > { %5670 = vmatmul.mubr.f32.gmra.mrb[18].mxu1 %v7735_v12  ;;  %v7840_v32 = vpop.f32.mrb[47].mxu0 }
 0x309   : > { %5672 = vmatprep.mubr.f32.mxu1 %v7739_v26 }
 0x30b   : > { %v7843_v36 = vpop.f32.mrb[48].mxu0 }
 0x30c   : > { %5673 = vmatmul.mubr.f32.gmra.mrb[20].mxu1 %v7743_v27  ;;  %v7846_v40 = vpop.f32.mrb[49].mxu0  ;;  %v3222_v27 = vld [vmem:[#allocation2 + $0x19a] sm:$0xff] }
 0x30d   : > { %5675 = vmatprep.mubr.f32.mxu1 %v7747_v44 }
 0x30f   : > { %v7849_v53 = vpop.f32.mrb[50].mxu0 }
 0x310   : > { %5676 = vmatmul.mubr.f32.gmra.mrb[22].mxu1 %v7751_v48  ;;  %v7852_v51 = vpop.f32.mrb[51].mxu0 }
 0x311   : > { %5678 = vmatprep.mubr.f32.mxu1 %v7755_v61  ;;  %v3223_v61 = vld [vmem:[#allocation2 + $0x1a2] sm:$0xff] }
 0x313   : > { %v7855_v6 = vpop.f32.mrb[52].mxu0 }
 0x314   : > { %5679 = vmatmul.mubr.f32.gmra.mrb[24].mxu1 %v7759_v0  ;;  %v7858_v11 = vpop.f32.mrb[53].mxu0 }
 0x315   : > { %5681 = vmatprep.mubr.f32.mxu1 %v7763_v7 }
 0x317   : > { %v7861_v12 = vpop.f32.mrb[54].mxu0 }
 0x318   : > { %5682 = vmatmul.mubr.f32.gmra.mrb[26].mxu1 %v7767_v16  ;;  %v7864_v26 = vpop.f32.mrb[55].mxu0 }
 0x319   : > { %5684 = vmatprep.mubr.f32.mxu1 %v7775_v25 }
 0x31b   : > { %v7867_v44 = vpop.f32.mrb[56].mxu0 }
 0x31c   : > { %5685 = vmatmul.mubr.f32.gmra.mrb[28].mxu1 %v7778_v31  ;;  %v7870_v48 = vpop.f32.mrb[57].mxu0  ;;  %v6198_v31 = vpack.c.bf16 %v3584_v62, %v3583_v8  ;;  %v3823_v8 = vld [vmem:[#allocation11 + $0x30] sm:$0xff]  ;;  %v3824_v62 = vld [vmem:[#allocation11 + $0x38] sm:$0xff] }
 0x31d   : > { %5687 = vmatprep.mubr.f32.mxu1 %v3222_v27 }
 0x31e   : > { %6199 = vmatprep.subr.bf16.mxu0 %v6198_v31 }
 0x31f   : > { %v7872_v0 = vpop.f32.mrb[58].mxu0  ;;  %6201 = vmatpush3.bf16.msra.mxu0 %v6198_v31 }
 0x320   : > { %5688 = vmatmul.mubr.f32.gmra.mrb[30].mxu1 %v3223_v61  ;;  %v7874_v7 = vpop.f32.mrb[59].mxu0  ;;  %6203 = vmatprep.subr.bf16.mxu0 %v6202_v2 }
 0x323   : > { %v7876_v13 = vpop.f32.mrb[60].mxu0 }
 0x324   : > { %v7878_v16 = vpop.f32.mrb[61].mxu0 }
 0x327   : > { %v7880_v54 = vpop.f32.mrb[62].mxu0 }
 0x328   : > { %v7882_v25 = vpop.f32.mrb[63].mxu0 }
 0x3b7   : > { %v5644_v5 = vpop.f32.mrb[0].mxu1 }
 0x3b8   : > { %v6234_v55 = vadd.f32 %v5644_v5, %v7795_v63  ;;  %v3307_v33 = vpop.f32.mrb[1].mxu1  ;;  %v6214_v5 = vpack.c.bf16 %v3824_v62, %v3823_v8  ;;  %v3831_v62 = vld [vmem:[#allocation11 + $0x70] sm:$0xff] }
 0x3b9   : > { %v6235_v35 = vadd.f32 %v3307_v33, %v7798_v24 }
 0x3ba   : > { %v3506_v60 = vadd.f32 %v6234_v55, %v7887_v59 }
 0x3bb   : > { %v3505_v15 = vadd.f32 %v6235_v35, %v7887_v59  ;;  %v5647_v56 = vpop.f32.mrb[2].mxu1  ;;  %v3825_v35 = vld [vmem:[#allocation11 + $0x40] sm:$0xff] }
 0x3bc   : > { %v6236_v10 = vadd.f32 %v5647_v56, %v7801_v23  ;;  %v3317_v30 = vpop.f32.mrb[3].mxu1  ;;  %v3538_v41 = vmax.f32 %v3506_v60, 0.0  ;;  %v3826_v60 = vld [vmem:[#allocation11 + $0x48] sm:$0xff] }
 0x3bd   : > { %v3537_v4 = vmax.f32 %v3505_v15, 0.0  ;;  %v6237_v29 = vadd.f32 %v3317_v30, %v7804_v17  ;;  %v6210_v17 = vpack.c.bf16 %v3822_v39, %v3821_v43 }
 0x3be   : > { %v3508_v19 = vadd.f32 %v6236_v10, %v7887_v59  ;;  %v6218_v10 = vpack.c.bf16 %v3826_v60, %v3825_v35 }
 0x3bf   : > { %v3507_v37 = vadd.f32 %v6237_v29, %v7887_v59  ;;  %v5650_v52 = vpop.f32.mrb[4].mxu1  ;;  %5722 = vmatprep.mubr.f32.mxu0 %v3537_v4  ;;  %v3827_v29 = vld [vmem:[#allocation11 + $0x50] sm:$0xff] }
 0x3c0   : > { %v6238_v28 = vadd.f32 %v5650_v52, %v7807_v38  ;;  %v3327_v50 = vpop.f32.mrb[5].mxu1  ;;  %5723 = vmatmul.mubr.f32.vlgmr.msra.gmra.mrb[64].mxu0 %v3538_v41  ;;  %v3540_v24 = vmax.f32 %v3508_v19, 0.0  ;;  %v3828_v41 = vld [vmem:[#allocation11 + $0x58] sm:$0xff] }
 0x3c1   : > { %v3539_v9 = vmax.f32 %v3507_v37, 0.0  ;;  %v6239_v63 = vadd.f32 %v3327_v50, %v7810_v42  ;;  %6205 = vmatpush3.bf16.msra.mxu0 %v6202_v2  ;;  %v6222_v43 = vpack.c.bf16 %v3828_v41, %v3827_v29  ;;  %v3829_v50 = vld [vmem:[#allocation11 + $0x60] sm:$0xff] }
 0x3c2   : > { %v3510_v23 = vadd.f32 %v6238_v28, %v7887_v59  ;;  %6207 = vmatprep.subr.bf16.mxu0 %v6206_v22 }
 0x3c3   : > { %v3509_v27 = vadd.f32 %v6239_v63, %v7887_v59  ;;  %v5653_v61 = vpop.f32.mrb[6].mxu1  ;;  %5725 = vmatprep.mubr.f32.mxu0 %v3539_v9  ;;  %v3830_v9 = vld [vmem:[#allocation11 + $0x68] sm:$0xff] }
 0x3c4   : > { %v6240_v31 = vadd.f32 %v5653_v61, %v7813_v34  ;;  %v3337_v38 = vpop.f32.mrb[7].mxu1  ;;  %5726 = vmatmul.mubr.f32.gmra.mrb[66].mxu0 %v3540_v24  ;;  %v3542_v42 = vmax.f32 %v3510_v23, 0.0 }
 0x3c5   : > { %v3541_v49 = vmax.f32 %v3509_v27, 0.0  ;;  %v6241_v45 = vadd.f32 %v3337_v38, %v7816_v58  ;;  %6209 = vmatpush3.bf16.msra.mxu0 %v6206_v22  ;;  %v6226_v27 = vpack.c.bf16 %v3830_v9, %v3829_v50 }
 0x3c6   : > { %v3512_v2 = vadd.f32 %v6240_v31, %v7887_v59  ;;  %6211 = vmatprep.subr.bf16.mxu0 %v6210_v17  ;;  %v3832_v31 = vld [vmem:[#allocation11 + $0x78] sm:$0xff] }
 0x3c7   : > { %v3511_v55 = vadd.f32 %v6241_v45, %v7887_v59  ;;  %v5656_v33 = vpop.f32.mrb[8].mxu1  ;;  %5728 = vmatprep.mubr.f32.mxu0 %v3541_v49 }
 0x3c8   : > { %v6242_v15 = vadd.f32 %v5656_v33, %v7819_v46  ;;  %v3347_v34 = vpop.f32.mrb[9].mxu1  ;;  %5729 = vmatmul.mubr.f32.gmra.mrb[68].mxu0 %v3542_v42  ;;  %v3544_v58 = vmax.f32 %v3512_v2, 0.0  ;;  %v6230_v2 = vpack.c.bf16 %v3832_v31, %v3831_v62 }
 0x3c9   : > { %v3543_v56 = vmax.f32 %v3511_v55, 0.0  ;;  %v6243_v14 = vadd.f32 %v3347_v34, %v7822_v47  ;;  %6213 = vmatpush3.bf16.msra.mxu0 %v6210_v17 }
 0x3ca   : > { %v3514_v21 = vadd.f32 %v6242_v15, %v7887_v59  ;;  %6215 = vmatprep.subr.bf16.mxu0 %v6214_v5 }
 0x3cb   : > { %v3513_v30 = vadd.f32 %v6243_v14, %v7887_v59  ;;  %v5659_v4 = vpop.f32.mrb[10].mxu1  ;;  %5731 = vmatprep.mubr.f32.mxu0 %v3543_v56 }
 0x3cc   : > { %v6244_v19 = vadd.f32 %v5659_v4, %v7825_v1  ;;  %v3357_v46 = vpop.f32.mrb[11].mxu1  ;;  %5732 = vmatmul.mubr.f32.gmra.mrb[70].mxu0 %v3544_v58  ;;  %v3546_v47 = vmax.f32 %v3514_v21, 0.0 }
 0x3cd   : > { %v3545_v22 = vmax.f32 %v3513_v30, 0.0  ;;  %v6245_v37 = vadd.f32 %v3357_v46, %v7828_v57  ;;  %6217 = vmatpush3.bf16.msra.mxu0 %v6214_v5 }
 0x3ce   : > { %v3516_v52 = vadd.f32 %v6244_v19, %v7887_v59  ;;  %6219 = vmatprep.subr.bf16.mxu0 %v6218_v10 }
 0x3cf   : > { %v3515_v39 = vadd.f32 %v6245_v37, %v7887_v59  ;;  %v5662_v28 = vpop.f32.mrb[12].mxu1  ;;  %5734 = vmatprep.mubr.f32.mxu0 %v3545_v22 }
 0x3d0   : > { %v6246_v63 = vadd.f32 %v5662_v28, %v7831_v3  ;;  %v3367_v1 = vpop.f32.mrb[13].mxu1  ;;  %5735 = vmatmul.mubr.f32.gmra.mrb[72].mxu0 %v3546_v47  ;;  %v3548_v57 = vmax.f32 %v3516_v52, 0.0 }
 0x3d1   : > { %v3547_v24 = vmax.f32 %v3515_v39, 0.0  ;;  %v6247_v23 = vadd.f32 %v3367_v1, %v7834_v20  ;;  %6221 = vmatpush3.bf16.msra.mxu0 %v6218_v10 }
 0x3d2   : > { %v3518_v17 = vadd.f32 %v6246_v63, %v7887_v59  ;;  %6223 = vmatprep.subr.bf16.mxu0 %v6222_v43 }
 0x3d3   : > { %v3517_v61 = vadd.f32 %v6247_v23, %v7887_v59  ;;  %v5665_v8 = vpop.f32.mrb[14].mxu1  ;;  %5737 = vmatprep.mubr.f32.mxu0 %v3547_v24 }
 0x3d4   : > { %v6248_v38 = vadd.f32 %v5665_v8, %v7837_v18  ;;  %v3377_v3 = vpop.f32.mrb[15].mxu1  ;;  %5738 = vmatmul.mubr.f32.gmra.mrb[74].mxu0 %v3548_v57  ;;  %v3550_v20 = vmax.f32 %v3518_v17, 0.0 }
 0x3d5   : > { %v3549_v49 = vmax.f32 %v3517_v61, 0.0  ;;  %v6249_v45 = vadd.f32 %v3377_v3, %v7840_v32  ;;  %6225 = vmatpush3.bf16.msra.mxu0 %v6222_v43 }
 0x3d6   : > { %v3520_v42 = vadd.f32 %v6248_v38, %v7887_v59  ;;  %6227 = vmatprep.subr.bf16.mxu0 %v6226_v27 }
 0x3d7   : > { %v3519_v5 = vadd.f32 %v6249_v45, %v7887_v59  ;;  %v5668_v55 = vpop.f32.mrb[16].mxu1  ;;  %5740 = vmatprep.mubr.f32.mxu0 %v3549_v49 }
 0x3d8   : > { %v6250_v33 = vadd.f32 %v5668_v55, %v7843_v36  ;;  %v3387_v35 = vpop.f32.mrb[17].mxu1  ;;  %5741 = vmatmul.mubr.f32.gmra.mrb[76].mxu0 %v3550_v20  ;;  %v3552_v15 = vmax.f32 %v3520_v42, 0.0 }
 0x3d9   : > { %v3551_v18 = vmax.f32 %v3519_v5, 0.0  ;;  %v6251_v60 = vadd.f32 %v3387_v35, %v7846_v40  ;;  %6229 = vmatpush3.bf16.msra.mxu0 %v6226_v27 }
 0x3da   : > { %v3522_v32 = vadd.f32 %v6250_v33, %v7887_v59  ;;  %6231 = vmatprep.subr.bf16.mxu0 %v6230_v2 }
 0x3db   : > { %v3521_v34 = vadd.f32 %v6251_v60, %v7887_v59  ;;  %v5671_v56 = vpop.f32.mrb[18].mxu1  ;;  %5743 = vmatprep.mubr.f32.mxu0 %v3551_v18  ;;  %v6679_v60 = vld [vmem:[%s7222_s9] sm:$0xff] }
 0x3dc   : > { %v6252_v14 = vadd.f32 %v5671_v56, %v7849_v53  ;;  %v3397_v58 = vpop.f32.mrb[19].mxu1  ;;  %5744 = vmatmul.mubr.f32.gmra.mrb[78].mxu0 %v3552_v15  ;;  %v3554_v10 = vmax.f32 %v3522_v32, 0.0  ;;  %v6681_v15 = vld [vmem:[%s7222_s9 + $0x10] sm:$0xff]  ;;  %v6682_v32 = vld [vmem:[%s7222_s9 + $0x18] sm:$0xff] }
 0x3dd   : > { %v3553_v21 = vmax.f32 %v3521_v34, 0.0  ;;  %v6253_v36 = vadd.f32 %v3397_v58, %v7852_v51  ;;  %6233 = vmatpush3.bf16.msra.mxu0 %v6230_v2  ;;  %v6684_v34 = vld [vmem:[%s7222_s9 + $0x28] sm:$0xff]  ;;  %v6685_v56 = vld [vmem:[%s7222_s9 + $0x30] sm:$0xff]  ;;  %v6687_v58 = vld [vmem:[%s7222_s9 + $0x40] sm:$0xff] }
 0x3de   : > { %v3524_v40 = vadd.f32 %v6252_v14, %v7887_v59  ;;  %v6686_v14 = vld [vmem:[%s7222_s9 + $0x38] sm:$0xff] }
 0x3df   : > { %v3523_v30 = vadd.f32 %v6253_v36, %v7887_v59  ;;  %v5674_v4 = vpop.f32.mrb[20].mxu1  ;;  %5746 = vmatprep.mubr.f32.mxu0 %v3553_v21  ;;  %v6688_v21 = vld [vmem:[%s7222_s9 + $0x48] sm:$0xff]  ;;  %v6689_v36 = vld [vmem:[%s7222_s9 + $0x50] sm:$0xff] }
 0x3e0   : > { %v6254_v29 = vadd.f32 %v5674_v4, %v7855_v6  ;;  %v3407_v41 = vpop.f32.mrb[21].mxu1  ;;  %5747 = vmatmul.mubr.f32.gmra.mrb[80].mxu0 %v3554_v10  ;;  %v3556_v46 = vmax.f32 %v3524_v40, 0.0  ;;  %v6690_v10 = vld [vmem:[%s7222_s9 + $0x58] sm:$0xff]  ;;  %v6691_v40 = vld [vmem:[%s7222_s9 + $0x60] sm:$0xff]  ;;  %v6693_v4 = vld [vmem:[%s7222_s9 + $0x70] sm:$0xff] }
 0x3e1   : > { %v3555_v19 = vmax.f32 %v3523_v30, 0.0  ;;  %v6255_v53 = vadd.f32 %v3407_v41, %v7858_v11  ;;  %v6692_v30 = vld [vmem:[%s7222_s9 + $0x68] sm:$0xff]  ;;  %v6695_v41 = vld [vmem:[%s7222_s9 + $0x80] sm:$0xff] }
 0x3e2   : > { %v3526_v22 = vadd.f32 %v6254_v29, %v7887_v59  ;;  %v6694_v29 = vld [vmem:[%s7222_s9 + $0x78] sm:$0xff] }
 0x3e3   : > { %v3525_v51 = vadd.f32 %v6255_v53, %v7887_v59  ;;  %v5677_v37 = vpop.f32.mrb[22].mxu1  ;;  %5749 = vmatprep.mubr.f32.mxu0 %v3555_v19  ;;  %v6696_v19 = vld [vmem:[%s7222_s9 + $0x88] sm:$0xff]  ;;  %v6697_v53 = vld [vmem:[%s7222_s9 + $0x90] sm:$0xff] }
 0x3e4   : > { %v6256_v47 = vadd.f32 %v5677_v37, %v7861_v12  ;;  %v3417_v52 = vpop.f32.mrb[23].mxu1  ;;  %5750 = vmatmul.mubr.f32.gmra.mrb[82].mxu0 %v3556_v46  ;;  %v3558_v6 = vmax.f32 %v3526_v22, 0.0  ;;  %v6698_v46 = vld [vmem:[%s7222_s9 + $0x98] sm:$0xff]  ;;  %v6699_v22 = vld [vmem:[%s7222_s9 + $0xa0] sm:$0xff]  ;;  %v6701_v37 = vld [vmem:[%s7222_s9 + $0xb0] sm:$0xff] }
 0x3e5   : > { %v3557_v43 = vmax.f32 %v3525_v51, 0.0  ;;  %v6257_v39 = vadd.f32 %v3417_v52, %v7864_v26  ;;  %v6700_v51 = vld [vmem:[%s7222_s9 + $0xa8] sm:$0xff]  ;;  %v6703_v52 = vld [vmem:[%s7222_s9 + $0xc0] sm:$0xff] }
 0x3e6   : > { %v3528_v28 = vadd.f32 %v6256_v47, %v7887_v59  ;;  %v6702_v47 = vld [vmem:[%s7222_s9 + $0xb8] sm:$0xff] }
 0x3e7   : > { %v3527_v50 = vadd.f32 %v6257_v39, %v7887_v59  ;;  %v5680_v11 = vpop.f32.mrb[24].mxu1  ;;  %5752 = vmatprep.mubr.f32.mxu0 %v3557_v43  ;;  %v6704_v43 = vld [vmem:[%s7222_s9 + $0xc8] sm:$0xff]  ;;  %v6705_v39 = vld [vmem:[%s7222_s9 + $0xd0] sm:$0xff] }
 0x3e8   : > { %v6258_v9 = vadd.f32 %v5680_v11, %v7867_v44  ;;  %v3427_v63 = vpop.f32.mrb[25].mxu1  ;;  %5753 = vmatmul.mubr.f32.gmra.mrb[84].mxu0 %v3558_v6  ;;  %v3560_v12 = vmax.f32 %v3528_v28, 0.0  ;;  %v6706_v6 = vld [vmem:[%s7222_s9 + $0xd8] sm:$0xff]  ;;  %v6707_v28 = vld [vmem:[%s7222_s9 + $0xe0] sm:$0xff]  ;;  %v6709_v11 = vld [vmem:[%s7222_s9 + $0xf0] sm:$0xff] }
 0x3e9   : > { %v3559_v1 = vmax.f32 %v3527_v50, 0.0  ;;  %v6259_v24 = vadd.f32 %v3427_v63, %v7870_v48  ;;  %v6708_v50 = vld [vmem:[%s7222_s9 + $0xe8] sm:$0xff]  ;;  %v4305_v63 = vld [vmem:[%s8116_s6] ss:$0 sm:$0xff] }
 0x3ea   : > { %v3530_v23 = vadd.f32 %v6258_v9, %v7887_v59  ;;  %v6710_v9 = vld [vmem:[%s7222_s9 + $0xf8] sm:$0xff] }
 0x3eb   : > { %v3529_v57 = vadd.f32 %v6259_v24, %v7887_v59  ;;  %v5683_v26 = vpop.f32.mrb[26].mxu1  ;;  %5755 = vmatprep.mubr.f32.mxu0 %v3559_v1  ;;  %v4306_v1 = vld [vmem:[%s8118_s8] ss:$0 sm:$0xff] }
 0x3ec   : > { %v6260_v17 = vadd.f32 %v5683_v26, %v7872_v0  ;;  %v3437_v27 = vpop.f32.mrb[27].mxu1  ;;  %5756 = vmatmul.mubr.f32.gmra.mrb[86].mxu0 %v3560_v12  ;;  %v3562_v44 = vmax.f32 %v3530_v23, 0.0  ;;  %v7991_v23 = vadd.f32 %v4306_v1, %v4305_v63 }
 0x3ed   : > { %v3561_v61 = vmax.f32 %v3529_v57, 0.0  ;;  %v6261_v8 = vadd.f32 %v3437_v27, %v7874_v7 }
 0x3ee   : > { %v3532_v62 = vadd.f32 %v6260_v17, %v7887_v59 }
 0x3ef   : > { %v3531_v31 = vadd.f32 %v6261_v8, %v7887_v59  ;;  %v5686_v48 = vpop.f32.mrb[28].mxu1  ;;  %5758 = vmatprep.mubr.f32.mxu0 %v3561_v61 }
 0x3f0   : > { %v6262_v38 = vadd.f32 %v5686_v48, %v7876_v13  ;;  %v3447_v3 = vpop.f32.mrb[29].mxu1  ;;  %5759 = vmatmul.mubr.f32.gmra.mrb[88].mxu0 %v3562_v44  ;;  %v3564_v0 = vmax.f32 %v3532_v62, 0.0 }
 0x3f1   : > { %v3563_v49 = vmax.f32 %v3531_v31, 0.0  ;;  %v6263_v45 = vadd.f32 %v3447_v3, %v7878_v16 }
 0x3f2   : > { %v3534_v20 = vadd.f32 %v6262_v38, %v7887_v59 }
 0x3f3   : > { %v3533_v42 = vadd.f32 %v6263_v45, %v7887_v59  ;;  %v5689_v7 = vpop.f32.mrb[30].mxu1  ;;  %5761 = vmatprep.mubr.f32.mxu0 %v3563_v49 }
 0x3f4   : > { %v6264_v2 = vadd.f32 %v5689_v7, %v7880_v54  ;;  %v3457_v5 = vpop.f32.mrb[31].mxu1  ;;  %5762 = vmatmul.mubr.f32.gmra.mrb[90].mxu0 %v3564_v0  ;;  %v3566_v33 = vmax.f32 %v3534_v20, 0.0 }
 0x3f5   : > { %v3565_v13 = vmax.f32 %v3533_v42, 0.0  ;;  %v6265_v55 = vadd.f32 %v3457_v5, %v7882_v25  ;;  %v6680_v25 = vld [vmem:[%s7222_s9 + $0x8] sm:$0xff] }
 0x3f6   : > { %v3536_v16 = vadd.f32 %v6264_v2, %v7887_v59 }
 0x3f7   : > { %v3535_v35 = vadd.f32 %v6265_v55, %v7887_v59  ;;  %5764 = vmatprep.mubr.f32.mxu0 %v3565_v13  ;;  %v6683_v59 = vld [vmem:[%s7222_s9 + $0x20] sm:$0xff]  ;;  %s8177_s9 = sld [smem:[#allocation28_spill]] }
 0x3f8   : > { %5765 = vmatmul.mubr.f32.gmra.mrb[92].mxu0 %v3566_v33  ;;  %v3568_v54 = vmax.f32 %v3536_v16, 0.0 }
 0x3f9   : > { %v3567_v18 = vmax.f32 %v3535_v35, 0.0 }
 0x3fb   : > { %5767 = vmatprep.mubr.f32.mxu0 %v3567_v18 }
 0x3fc   : > { %5768 = vmatmul.mubr.f32.gmra.mrb[94].mxu0 %v3568_v54 }
 0x3fd   : > { %5802 = vmatprep.mubr.f32.mxu0 %v6679_v60  ;;  %s8062_s15 = scalar_lea.hbm %s8177_s9, %s4313_s16 }
 0x400   : > { %5803 = vmatmul.mubr.f32.vlgmr.msra.gmra.mrb[64].mxu0 %v6680_v25 }
 0x401   : > { %5805 = vmatprep.mubr.f32.mxu0 %v6681_v15 }
 0x404   : > { %5806 = vmatmul.mubr.f32.gmra.mrb[66].mxu0 %v6682_v32 }
 0x405   : > { %5808 = vmatprep.mubr.f32.mxu0 %v6683_v59 }
 0x408   : > { %5809 = vmatmul.mubr.f32.gmra.mrb[68].mxu0 %v6684_v34 }
 0x409   : > { %5811 = vmatprep.mubr.f32.mxu0 %v6685_v56 }
 0x40c   : > { %5812 = vmatmul.mubr.f32.gmra.mrb[70].mxu0 %v6686_v14 }
 0x40d   : > { %5814 = vmatprep.mubr.f32.mxu0 %v6687_v58 }
 0x410   : > { %5815 = vmatmul.mubr.f32.gmra.mrb[72].mxu0 %v6688_v21 }
 0x411   : > { %5817 = vmatprep.mubr.f32.mxu0 %v6689_v36 }
 0x414   : > { %5818 = vmatmul.mubr.f32.gmra.mrb[74].mxu0 %v6690_v10 }
 0x415   : > { %5820 = vmatprep.mubr.f32.mxu0 %v6691_v40 }
 0x418   : > { %5821 = vmatmul.mubr.f32.gmra.mrb[76].mxu0 %v6692_v30 }
 0x419   : > { %5823 = vmatprep.mubr.f32.mxu0 %v6693_v4 }
 0x41c   : > { %5824 = vmatmul.mubr.f32.gmra.mrb[78].mxu0 %v6694_v29 }
 0x41d   : > { %5826 = vmatprep.mubr.f32.mxu0 %v6695_v41 }
 0x420   : > { %5827 = vmatmul.mubr.f32.gmra.mrb[80].mxu0 %v6696_v19 }
 0x421   : > { %5829 = vmatprep.mubr.f32.mxu0 %v6697_v53 }
 0x424   : > { %5830 = vmatmul.mubr.f32.gmra.mrb[82].mxu0 %v6698_v46 }
 0x425   : > { %5832 = vmatprep.mubr.f32.mxu0 %v6699_v22 }
 0x428   : > { %5833 = vmatmul.mubr.f32.gmra.mrb[84].mxu0 %v6700_v51 }
 0x429   : > { %5835 = vmatprep.mubr.f32.mxu0 %v6701_v37 }
 0x42c   : > { %5836 = vmatmul.mubr.f32.gmra.mrb[86].mxu0 %v6702_v47 }
 0x42d   : > { %5838 = vmatprep.mubr.f32.mxu0 %v6703_v52 }
 0x430   : > { %5839 = vmatmul.mubr.f32.gmra.mrb[88].mxu0 %v6704_v43 }
 0x431   : > { %5841 = vmatprep.mubr.f32.mxu0 %v6705_v39 }
 0x434   : > { %5842 = vmatmul.mubr.f32.gmra.mrb[90].mxu0 %v6706_v6 }
 0x435   : > { %5844 = vmatprep.mubr.f32.mxu0 %v6707_v28 }
 0x438   : > { %5845 = vmatmul.mubr.f32.gmra.mrb[92].mxu0 %v6708_v50 }
 0x439   : > { %5847 = vmatprep.mubr.f32.mxu0 %v6709_v11 }
 0x43c   : > { %5848 = vmatmul.mubr.f32.gmra.mrb[94].mxu0 %v6710_v9 }
 0x4d3   : > { %v5804_v24 = vpop.f32.mrb[64].mxu0 }
 0x4d4   : > { %v6266_v12 = vadd.f32 %v5804_v24, %v4305_v63  ;;  %v3906_v57 = vpop.f32.mrb[65].mxu0 }
 0x4d5   : > { %v6268_v26 = vadd.f32 %v4305_v63, %v3906_v57 }
 0x4d6   : > { %v6267_v17 = vadd.f32 %v6266_v12, %v4306_v1 }
 0x4d7   : > { %v6269_v27 = vadd.f32 %v6268_v26, %v4306_v1  ;;  %v5807_v61 = vpop.f32.mrb[66].mxu0 }
 0x4d8   : > { %v4098_v8 = vmax.f32 %v6267_v17, 0.0  ;;  %v6271_v44 = vadd.f32 %v7991_v23, %v5807_v61  ;;  %v3916_v62 = vpop.f32.mrb[67].mxu0 }
 0x4d9   : > { %v4097_v31 = vmax.f32 %v6269_v27, 0.0  ;;  %v6273_v48 = vadd.f32 %v7991_v23, %v3916_v62 }
 0x4da   : > { %4130 = vst [vmem:[%s7997_s18 + $0x8] sm:$0xff] %v4098_v8  ;;  %v4100_v38 = vmax.f32 %v6271_v44, 0.0 }
 0x4db   : > { %4129 = vst [vmem:[%s7997_s18] sm:$0xff] %v4097_v31  ;;  %v4099_v3 = vmax.f32 %v6273_v48, 0.0  ;;  %v5810_v49 = vpop.f32.mrb[68].mxu0 }
 0x4dc   : > { %4132 = vst [vmem:[%s7997_s18 + $0x18] sm:$0xff] %v4100_v38  ;;  %v6275_v45 = vadd.f32 %v7991_v23, %v5810_v49  ;;  %v3926_v0 = vpop.f32.mrb[69].mxu0 }
 0x4dd   : > { %4131 = vst [vmem:[%s7997_s18 + $0x10] sm:$0xff] %v4099_v3  ;;  %v6277_v20 = vadd.f32 %v7991_v23, %v3926_v0 }
 0x4de   : > { %v4102_v42 = vmax.f32 %v6275_v45, 0.0 }
 0x4df   : > { %v4101_v7 = vmax.f32 %v6277_v20, 0.0  ;;  %v5813_v2 = vpop.f32.mrb[70].mxu0 }
 0x4e0   : > { %4134 = vst [vmem:[%s7997_s18 + $0x28] sm:$0xff] %v4102_v42  ;;  %v6279_v5 = vadd.f32 %v7991_v23, %v5813_v2  ;;  %v3936_v13 = vpop.f32.mrb[71].mxu0 }
 0x4e1   : > { %4133 = vst [vmem:[%s7997_s18 + $0x20] sm:$0xff] %v4101_v7  ;;  %v6281_v55 = vadd.f32 %v7991_v23, %v3936_v13 }
 0x4e2   : > { %v4104_v33 = vmax.f32 %v6279_v5, 0.0 }
 0x4e3   : > { %v4103_v16 = vmax.f32 %v6281_v55, 0.0  ;;  %v5816_v35 = vpop.f32.mrb[72].mxu0 }
 0x4e4   : > { %4136 = vst [vmem:[%s7997_s18 + $0x38] sm:$0xff] %v4104_v33  ;;  %v6283_v18 = vadd.f32 %v7991_v23, %v5816_v35  ;;  %v3946_v54 = vpop.f32.mrb[73].mxu0 }
 0x4e5   : > { %4135 = vst [vmem:[%s7997_s18 + $0x30] sm:$0xff] %v4103_v16  ;;  %v6285_v60 = vadd.f32 %v7991_v23, %v3946_v54 }
 0x4e6   : > { %v4106_v25 = vmax.f32 %v6283_v18, 0.0 }
 0x4e7   : > { %v4105_v15 = vmax.f32 %v6285_v60, 0.0  ;;  %v5819_v32 = vpop.f32.mrb[74].mxu0 }
 0x4e8   : > { %4138 = vst [vmem:[%s7997_s18 + $0x48] sm:$0xff] %v4106_v25  ;;  %v6287_v59 = vadd.f32 %v7991_v23, %v5819_v32  ;;  %v3956_v34 = vpop.f32.mrb[75].mxu0 }
 0x4e9   : > { %4137 = vst [vmem:[%s7997_s18 + $0x40] sm:$0xff] %v4105_v15  ;;  %v6289_v56 = vadd.f32 %v7991_v23, %v3956_v34 }
 0x4ea   : > { %v4108_v14 = vmax.f32 %v6287_v59, 0.0 }
 0x4eb   : > { %v4107_v58 = vmax.f32 %v6289_v56, 0.0  ;;  %v5822_v21 = vpop.f32.mrb[76].mxu0 }
 0x4ec   : > { %4140 = vst [vmem:[%s7997_s18 + $0x58] sm:$0xff] %v4108_v14  ;;  %v6291_v36 = vadd.f32 %v7991_v23, %v5822_v21  ;;  %v3966_v10 = vpop.f32.mrb[77].mxu0 }
 0x4ed   : > { %4139 = vst [vmem:[%s7997_s18 + $0x50] sm:$0xff] %v4107_v58  ;;  %v6293_v40 = vadd.f32 %v7991_v23, %v3966_v10 }
 0x4ee   : > { %v4110_v30 = vmax.f32 %v6291_v36, 0.0 }
 0x4ef   : > { %v4109_v4 = vmax.f32 %v6293_v40, 0.0  ;;  %v5825_v29 = vpop.f32.mrb[78].mxu0 }
 0x4f0   : > { %4142 = vst [vmem:[%s7997_s18 + $0x68] sm:$0xff] %v4110_v30  ;;  %v6295_v41 = vadd.f32 %v7991_v23, %v5825_v29  ;;  %v3976_v19 = vpop.f32.mrb[79].mxu0 }
 0x4f1   : > { %4141 = vst [vmem:[%s7997_s18 + $0x60] sm:$0xff] %v4109_v4  ;;  %v6297_v53 = vadd.f32 %v7991_v23, %v3976_v19 }
 0x4f2   : > { %v4112_v46 = vmax.f32 %v6295_v41, 0.0 }
 0x4f3   : > { %v4111_v22 = vmax.f32 %v6297_v53, 0.0  ;;  %v5828_v51 = vpop.f32.mrb[80].mxu0 }
 0x4f4   : > { %4144 = vst [vmem:[%s7997_s18 + $0x78] sm:$0xff] %v4112_v46  ;;  %v6299_v37 = vadd.f32 %v7991_v23, %v5828_v51  ;;  %v3986_v47 = vpop.f32.mrb[81].mxu0 }
 0x4f5   : > { %4143 = vst [vmem:[%s7997_s18 + $0x70] sm:$0xff] %v4111_v22  ;;  %v6301_v52 = vadd.f32 %v7991_v23, %v3986_v47 }
 0x4f6   : > { %v4114_v43 = vmax.f32 %v6299_v37, 0.0 }
 0x4f7   : > { %v4113_v39 = vmax.f32 %v6301_v52, 0.0  ;;  %v5831_v6 = vpop.f32.mrb[82].mxu0 }
 0x4f8   : > { %4146 = vst [vmem:[%s7997_s18 + $0x88] sm:$0xff] %v4114_v43  ;;  %v6303_v28 = vadd.f32 %v7991_v23, %v5831_v6  ;;  %v3996_v50 = vpop.f32.mrb[83].mxu0 }
 0x4f9   : > { %4145 = vst [vmem:[%s7997_s18 + $0x80] sm:$0xff] %v4113_v39  ;;  %v6305_v11 = vadd.f32 %v7991_v23, %v3996_v50 }
 0x4fa   : > { %v4116_v9 = vmax.f32 %v6303_v28, 0.0 }
 0x4fb   : > { %v4115_v63 = vmax.f32 %v6305_v11, 0.0  ;;  %v5834_v1 = vpop.f32.mrb[84].mxu0 }
 0x4fc   : > { %4148 = vst [vmem:[%s7997_s18 + $0x98] sm:$0xff] %v4116_v9  ;;  %v6307_v24 = vadd.f32 %v7991_v23, %v5834_v1  ;;  %v4006_v12 = vpop.f32.mrb[85].mxu0 }
 0x4fd   : > { %4147 = vst [vmem:[%s7997_s18 + $0x90] sm:$0xff] %v4115_v63  ;;  %v6309_v57 = vadd.f32 %v7991_v23, %v4006_v12 }
 0x4fe   : > { %v4118_v26 = vmax.f32 %v6307_v24, 0.0 }
 0x4ff   : > { %v4117_v17 = vmax.f32 %v6309_v57, 0.0  ;;  %v5837_v27 = vpop.f32.mrb[86].mxu0 }
 0x500   : > { %4150 = vst [vmem:[%s7997_s18 + $0xa8] sm:$0xff] %v4118_v26  ;;  %v6311_v61 = vadd.f32 %v7991_v23, %v5837_v27  ;;  %v4016_v8 = vpop.f32.mrb[87].mxu0 }
 0x501   : > { %4149 = vst [vmem:[%s7997_s18 + $0xa0] sm:$0xff] %v4117_v17  ;;  %v6313_v44 = vadd.f32 %v7991_v23, %v4016_v8 }
 0x502   : > { %v4120_v62 = vmax.f32 %v6311_v61, 0.0 }
 0x503   : > { %v4119_v31 = vmax.f32 %v6313_v44, 0.0  ;;  %v5840_v48 = vpop.f32.mrb[88].mxu0 }
 0x504   : > { %4152 = vst [vmem:[%s7997_s18 + $0xb8] sm:$0xff] %v4120_v62  ;;  %v6315_v38 = vadd.f32 %v7991_v23, %v5840_v48  ;;  %v4026_v3 = vpop.f32.mrb[89].mxu0 }
 0x505   : > { %4151 = vst [vmem:[%s7997_s18 + $0xb0] sm:$0xff] %v4119_v31  ;;  %v6317_v49 = vadd.f32 %v7991_v23, %v4026_v3 }
 0x506   : > { %v4122_v45 = vmax.f32 %v6315_v38, 0.0 }
 0x507   : > { %v4121_v0 = vmax.f32 %v6317_v49, 0.0  ;;  %v5843_v20 = vpop.f32.mrb[90].mxu0 }
 0x508   : > { %4154 = vst [vmem:[%s7997_s18 + $0xc8] sm:$0xff] %v4122_v45  ;;  %v6319_v42 = vadd.f32 %v7991_v23, %v5843_v20  ;;  %v4036_v7 = vpop.f32.mrb[91].mxu0 }
 0x509   : > { %4153 = vst [vmem:[%s7997_s18 + $0xc0] sm:$0xff] %v4121_v0  ;;  %v6321_v2 = vadd.f32 %v7991_v23, %v4036_v7 }
 0x50a   : > { %v4124_v5 = vmax.f32 %v6319_v42, 0.0 }
 0x50b   : > { %v4123_v13 = vmax.f32 %v6321_v2, 0.0  ;;  %v5846_v55 = vpop.f32.mrb[92].mxu0 }
 0x50c   : > { %4156 = vst [vmem:[%s7997_s18 + $0xd8] sm:$0xff] %v4124_v5  ;;  %v6323_v33 = vadd.f32 %v7991_v23, %v5846_v55  ;;  %v4046_v16 = vpop.f32.mrb[93].mxu0 }
 0x50d   : > { %4155 = vst [vmem:[%s7997_s18 + $0xd0] sm:$0xff] %v4123_v13  ;;  %v6325_v35 = vadd.f32 %v7991_v23, %v4046_v16 }
 0x50e   : > { %v4126_v18 = vmax.f32 %v6323_v33, 0.0 }
 0x50f   : > { %v4125_v54 = vmax.f32 %v6325_v35, 0.0  ;;  %v5849_v60 = vpop.f32.mrb[94].mxu0 }
 0x510   : > { %4158 = vst [vmem:[%s7997_s18 + $0xe8] sm:$0xff] %v4126_v18  ;;  %v6327_v25 = vadd.f32 %v7991_v23, %v5849_v60  ;;  %v4056_v15 = vpop.f32.mrb[95].mxu0 }
 0x511   : > { %4157 = vst [vmem:[%s7997_s18 + $0xe0] sm:$0xff] %v4125_v54  ;;  %v6329_v32 = vadd.f32 %v7991_v23, %v4056_v15 }
 0x512   : > { %v4128_v59 = vmax.f32 %v6327_v25, 0.0 }
 0x513   : > { %v4127_v34 = vmax.f32 %v6329_v32, 0.0 }
 0x514   : > { %4160 = vst [vmem:[%s7997_s18 + $0xf8] sm:$0xff] %v4128_v59 }
 0x515   : > { %4159 = vst [vmem:[%s7997_s18 + $0xf0] sm:$0xff] %v4127_v34 }
 0x516   : > { %6866 = shalt.err (!%p6863_p13)
}
 0x517   : > { %s6867_s22 = scalar_lea.hbm %s8062_s15, 4096  ;;  %s6871_s18 = scalar_lea.hbm %s8177_s9, 8192 }
 0x518   : > { %p6868_p9 = scmp.ne.s32.totalorder %s8062_s15, %s6867_s22  ;;  %p6872_p4 = scmp.lt.u32.totalorder %s8062_s15, %s8177_s9 }
 0x519   : > { %p6873_p8 = scmp.lt.u32.totalorder %s6871_s18, %s6867_s22  ;;  %p6875_p3 = scmp.lt.u32.totalorder %s6867_s22, %s8062_s15 }
 0x51a   : > { %p6869_p0 = pnand %p6868_p9, %p7161_p10 }
 0x51b   : > { %p6874_p6 = por %p6873_p8, %p6872_p4 }
 0x51c   : > { %p6870_p11 = pneg %p6869_p0 }
 0x51d   : > { %p6876_p5 = por %p6875_p3, %p6874_p6 }
 0x51f   : > { %p6877_p7 = pnand %p6876_p5, %p6870_p11 }
 0x521   : > { %6880 = shalt.err (!%p6877_p7)
}
 0x522   : > { %s6938_s24 = smov 128   ;;  %s6939_s17 = smov 8  }
 0x523   : > { %6604 = dma.vmem_to_hbm [thread:$0]  (%p7161_p10), %s8064_s23, 4096, %s8062_s15, %s4162_s13, %s6938_s24, %s6938_s24, %s6939_s17  }
 0x524 PF: > { %s8178_s25 = sld [smem:[#allocation17_spill]]  ;;  %s8179_s26 = sld [smem:[#allocation18_spill]] }
 0x525   : > { %p8181_p1 = scmp.ge.s32.totalorder %s6927_s12, 2 }
 0x52a   : > { %s4190_s19 = sand.u32 1, %s8178_s25   ;;  %p8180_p12 = scmp.ne.s32.totalorder %s8179_s26, 0 }
 0x52b   : > { %s4191_s22 = scalar_lea.sflag [#allocation5], %s4190_s19 }
 0x52c   : > { %p6624_p2 = pnand %p8181_p1, %p8180_p12 }
 0x52e   : > { %6910 = dma.done.wait (!%p6624_p2), %s4191_s22, 4096  }
 0x52f   : > { %6912 = vsyncadd (!%p6624_p2), %s4191_s22, 4294963200  ;;  %p24_p13 = scmp.ge.s32.totalorder %s7151_s14, 4   ;;  %s8182_s30 = smov %s6919_s10 }
 0x530   : > { %s8183_s10 = smov %s6923_s11  ;;  %s8184_s11 = smov %s7167_s28 }
 0x531   : > { %s8185_s12 = smov %s7151_s14  ;;  %26 = sbr.rel (!%p24_p13) target bundleno = 9 (0x9), region = 127 }
 0x538   :  { %4196 = vsyncpa [#allocation4], 1 }
 0x539   :  { %4198 = vsyncpa [#allocation4 + $0x1], 1 }
 0x53a   :  { %4199 = vsyncpa [#allocation7], 1 }
 0x53b   :  { %4200 = vsyncpa [#allocation10], 1 }
 0x53c   :  { %4201 = vsyncpa [#allocation5], 1 }
 0x53d   :  { %4203 = vsyncpa [#allocation5 + $0x1], 1 }

</bundles_post_ra>
